<compile_context>
chip_gen: v5e
topology: v5e:2x2
jax: 0.10.0
libtpu: 0.0.40
codegen_flags: <defaults>
</compile_context>

<pallas_src>
import functools

import jax
import jax.numpy as jnp
from jax.experimental import pallas as pl
from jax.experimental.pallas import tpu as pltpu

EPS = 1e-6          # matches partial(nn.LayerNorm, eps=1e-6)
LANE_PAD = 128      # lane-dense output width for the heads


# ----------------------------- in-kernel helpers -----------------------------

def _layer_norm(x, w, b):
    mu = jnp.mean(x, axis=-1, keepdims=True)
    xc = x - mu
    var = jnp.mean(xc * xc, axis=-1, keepdims=True)
    return xc * jax.lax.rsqrt(var + EPS) * w + b


def _gelu(x):
    # tanh-form GELU: tanh runs on the EUP slot.  Deviates from torch.nn.GELU()
    # (exact erf form) by ~1e-3 abs, comparable to the bf16 matmul noise.
    c = 0.7978845608028654  # sqrt(2/pi)
    return 0.5 * x * (1.0 + jnp.tanh(c * (x + 0.044715 * (x * x * x))))


def _mm(a, b):
    # bf16 MXU operands, f32 accumulation.
    return jnp.dot(a.astype(jnp.bfloat16), b, preferred_element_type=jnp.float32)


def _mm_nt(a, b):
    # a @ b.T (no materialized transpose), bf16 operands, f32 accumulation.
    return jax.lax.dot_general(a.astype(jnp.bfloat16), b.astype(jnp.bfloat16),
                               (((1,), (1,)), ((), ())),
                               preferred_element_type=jnp.float32)


# ------------------------------ fused kernel ----------------------------------

def _fused_kernel(num_layers, num_heads,
                  x_ref,
                  ln1w_ref, ln1b_ref, dww_ref, dwb_ref, pww_ref, pwb_ref,
                  wq_ref, bq_ref, wk_ref, bk_ref, wv_ref, bv_ref,
                  wo_ref, bo_ref,
                  ln2w_ref, ln2b_ref, w1_ref, b1_ref, w2_ref, b2_ref,
                  lnw_ref, lnb_ref, hw_ref, hb_ref, sw_ref, sb_ref,
                  out_ref):
    T, H = x_ref.shape
    hd = H // num_heads
    scale = 1.0 / float(hd) ** 0.5

    x = x_ref[...]                                   # (T, H) f32, one batch

    # Token-shift matrices for the depthwise conv, built in-kernel from iota:
    # (Sp @ x)[t] = x[t-1] (0 at t=0), (Sn @ x)[t] = x[t+1] (0 at t=T-1).
    row = jax.lax.broadcasted_iota(jnp.int32, (T, T), 0)
    col = jax.lax.broadcasted_iota(jnp.int32, (T, T), 1)
    shift_prev = (col == row - 1).astype(jnp.float32)
    shift_next = (col == row + 1).astype(jnp.float32)

    # class-token row selector for the head output (row 0 of every batch block)
    cls_mask = (jax.lax.broadcasted_iota(jnp.int32, (T, 1), 0) == 0
                ).astype(jnp.float32)

    # TODO(synk): at production L/H/mlp_dim, move the layer loop onto an
    # "arbitrary" grid axis with per-layer weight BlockSpecs so only ~2 layers
    # of weights are VMEM-resident; at these toy sizes everything fits easily.
    for l in range(num_layers):       # static unroll (num_layers is small)
        x_in = x

        # ---- LayerNorm 1 (f32) ----
        xl = _layer_norm(x, ln1w_ref[l], ln1b_ref[l])

        # ---- depthwise Conv1d (kernel=3, pad=1, groups=H) along tokens ----
        dww = dww_ref[l]              # (3, H): taps [t-1, t, t+1] per channel
        x_prev = jnp.dot(shift_prev, xl, preferred_element_type=jnp.float32)
        x_next = jnp.dot(shift_next, xl, preferred_element_type=jnp.float32)
        dw = (x_prev * dww[0:1, :] + xl * dww[1:2, :] + x_next * dww[2:3, :]
              + dwb_ref[l])

        # ---- pointwise Conv1d (kernel=1) ----
        pw = _mm(dw, pww_ref[l]) + pwb_ref[l]

        # ---- multi-head self-attention (dropout=0 -> identity) ----
        q = _mm(pw, wq_ref[l]) + bq_ref[l]
        k = _mm(pw, wk_ref[l]) + bk_ref[l]
        v = _mm(pw, wv_ref[l]) + bv_ref[l]
        q16 = q.astype(jnp.bfloat16)
        k16 = k.astype(jnp.bfloat16)
        v16 = v.astype(jnp.bfloat16)
        wo_l = wo_ref[l]
        # Per-head accumulation through the output projection: no lane concat,
        # every matmul output is lane-dense and the MXU does the head sum.
        # TODO(synk): with larger head_dim, replace this python loop with one
        # head-batched dot_general to fatten the contraction per MXU issue.
        attn = jnp.zeros((T, H), jnp.float32)
        for h in range(num_heads):
            sl = slice(h * hd, (h + 1) * hd)
            s = _mm_nt(q16[:, sl], k16[:, sl]) * scale        # (T, T) f32
            s = s - jnp.max(s, axis=-1, keepdims=True)
            e = jnp.exp(s)
            p = e * pl.reciprocal(jnp.sum(e, axis=-1, keepdims=True),
                                  approx=True)
            hv = _mm(p, v16[:, sl])                           # (T, hd)
            attn = attn + _mm(hv, wo_l[sl, :])                # (T, H)
        attn = attn + bo_ref[l]

        # ---- residual 1, LayerNorm 2, MLP (Linear -> GELU -> Linear) ----
        xr = attn + x_in
        y = _layer_norm(xr, ln2w_ref[l], ln2b_ref[l])
        h1 = _gelu(_mm(y, w1_ref[l]) + b1_ref[l])
        x = xr + _mm(h1, w2_ref[l]) + b2_ref[l]

    # ---- final LayerNorm + classifier/snippet heads (lane-dense output) ----
    xn = _layer_norm(x, lnw_ref[...], lnb_ref[...])
    logit_cls = _mm(xn, hw_ref[...]) + hb_ref[...]            # (T, 128)
    logit_snip = _mm(xn, sw_ref[...]) + sb_ref[...]           # (T, 128)
    logits = cls_mask * logit_cls + (1.0 - cls_mask) * logit_snip
    out_ref[...] = jax.nn.sigmoid(logits)


# --------------------------------- forward ------------------------------------

@functools.partial(jax.jit, static_argnames=("num_heads", "num_classes"))
def msl_transformer_forward(x, params, num_heads, num_classes):
    """Returns (snippet_scores, class_score) matching the PyTorch (x, p)."""
    N, S, H = x.shape
    T = S + 1
    C = num_classes

    # glue: prepend class token + positional embedding (dropout p=0 -> identity)
    cls_tok = jnp.broadcast_to(params['class_token'], (N, 1, H))
    h0 = jnp.concatenate([cls_tok, x], axis=1) + params['pos_embedding']  # (N,T,H)

    num_layers = params['wq'].shape[0]

    weights = (params['ln1_w'], params['ln1_b'], params['dw_w'], params['dw_b'],
               params['pw_w'], params['pw_b'],
               params['wq'], params['bq'], params['wk'], params['bk'],
               params['wv'], params['bv'], params['wo'], params['bo'],
               params['ln2_w'], params['ln2_b'],
               params['w1'], params['b1'], params['w2'], params['b2'],
               params['ln_w'], params['ln_b'],
               params['head_w'], params['head_b'],
               params['snip_w'], params['snip_b'])

    def w_spec(a):
        nd = a.ndim
        return pl.BlockSpec(a.shape, lambda n, _nd=nd: (0,) * _nd)

    in_specs = ([pl.BlockSpec((None, T, H), lambda n: (n, 0, 0))]
                + [w_spec(a) for a in weights])

    # Scoped-VMEM budget sized to actual residency (all stacked weights + a few
    # double-buffered activation blocks), with a floor and a cap below physical.
    resident = sum(int(a.size) * a.dtype.itemsize for a in (h0,) + weights)
    vmem_limit = int(min(112 << 20, max(32 << 20, 2 * resident + (4 << 20))))

    out = pl.pallas_call(
        functools.partial(_fused_kernel, num_layers, num_heads),
        grid=(N,),
        in_specs=in_specs,
        out_specs=pl.BlockSpec((None, T, LANE_PAD), lambda n: (n, 0, 0)),
        out_shape=jax.ShapeDtypeStruct((N, T, LANE_PAD), jnp.float32),
        compiler_params=pltpu.CompilerParams(
            dimension_semantics=("parallel",),
            vmem_limit_bytes=vmem_limit),
    )(h0, *weights)

    p = out[:, 0, :C]           # classifier head on the class token
    snip = out[:, 1:, :C]       # snippet head on the remaining tokens
    # TODO(synk): torch .squeeze() would also drop size-1 batch/class dims;
    # with N>1 and num_classes>1 the shapes are identical, so we keep them static.
    return snip, p


# ------------------------------ parameter setup -------------------------------

def init_params(key, seq_length, num_layers, hidden_dim, mlp_dim, num_classes):
    T = seq_length + 1
    H, M, L, C = hidden_dim, mlp_dim, num_layers, num_classes
    keys = jax.random.split(key, 32)
    ki = iter(keys)

    def nrm(shape, scale):
        return (scale * jax.random.normal(next(ki), shape)).astype(jnp.float32)

    def bf16(a):
        return a.astype(jnp.bfloat16)

    def pad_cols(w, cols=LANE_PAD):   # zero-pad class dim to a 128-lane slab
        out = jnp.zeros((w.shape[0], cols), jnp.float32)
        return out.at[:, :w.shape[1]].set(w)

    head_w, head_b = nrm((H, C), 0.05), nrm((1, C), 0.05)
    snip_w, snip_b = nrm((H, C), 0.05), nrm((1, C), 0.05)

    params = {
        'class_token': jnp.zeros((1, 1, H), jnp.float32),   # as in the module
        'pos_embedding': nrm((1, T, H), 0.02),
        # per-layer weights stacked on a leading L axis, pre-transposed (in,out);
        # pure-matmul weights pre-cast to bf16 (MXU operands), the rest f32.
        'ln1_w': jnp.ones((L, 1, H), jnp.float32),
        'ln1_b': jnp.zeros((L, 1, H), jnp.float32),
        'dw_w': nrm((L, 3, H), 0.3),      # depthwise taps: PyTorch (H,1,3)->(3,H)
        'dw_b': nrm((L, 1, H), 0.05),
        'pw_w': bf16(nrm((L, H, H), 0.1)),   # PyTorch (H,H,1) -> (in,out)
        'pw_b': nrm((L, 1, H), 0.05),
        'wq': bf16(nrm((L, H, H), 0.1)), 'bq': nrm((L, 1, H), 0.02),
        'wk': bf16(nrm((L, H, H), 0.1)), 'bk': nrm((L, 1, H), 0.02),
        'wv': bf16(nrm((L, H, H), 0.1)), 'bv': nrm((L, 1, H), 0.02),
        'wo': bf16(nrm((L, H, H), 0.1)), 'bo': nrm((L, 1, H), 0.02),
        'ln2_w': jnp.ones((L, 1, H), jnp.float32),
        'ln2_b': jnp.zeros((L, 1, H), jnp.float32),
        'w1': bf16(nrm((L, H, M), 0.1)), 'b1': nrm((L, 1, M), 1e-6),
        'w2': bf16(nrm((L, M, H), 0.1)), 'b2': nrm((L, 1, H), 1e-6),
        # final LayerNorm + heads (lane padding hoisted here, out of forward)
        'ln_w': jnp.ones((1, H), jnp.float32),
        'ln_b': jnp.zeros((1, H), jnp.float32),
        'head_w': bf16(pad_cols(head_w)), 'head_b': pad_cols(head_b),
        'snip_w': bf16(pad_cols(snip_w)), 'snip_b': pad_cols(snip_b),
    }
    return params


# ----------------------------------- main --------------------------------------

if __name__ == "__main__":
    seq_length = 8
    num_layers = 2
    num_heads = 4
    hidden_dim = 32
    mlp_dim = 64
    num_classes = 10
    batch = 2

    key = jax.random.PRNGKey(0)
    pkey, xkey = jax.random.split(key)
    params = init_params(pkey, seq_length, num_layers, hidden_dim, mlp_dim,
                         num_classes)
    x = jax.random.normal(xkey, (batch, seq_length, hidden_dim),
                          dtype=jnp.float32)

    snip, p = msl_transformer_forward(x, params, num_heads=num_heads,
                                      num_classes=num_classes)
    jax.block_until_ready((snip, p))

    assert snip.shape == (batch, seq_length, num_classes), snip.shape
    assert p.shape == (batch, num_classes), p.shape
    assert bool(jnp.all(jnp.isfinite(snip))) and bool(jnp.all(jnp.isfinite(p)))
    print("KERNEL_OK")
</pallas_src>

<mosaic_0001>
module attributes {stable_mosaic.version = 11 : i64} {
  func.func @_fused_kernel(%arg0: i32, %arg1: memref<1x9x32xf32, #tpu.memory_space<vmem>>, %arg2: memref<2x1x32xf32, #tpu.memory_space<vmem>>, %arg3: memref<2x1x32xf32, #tpu.memory_space<vmem>>, %arg4: memref<2x3x32xf32, #tpu.memory_space<vmem>>, %arg5: memref<2x1x32xf32, #tpu.memory_space<vmem>>, %arg6: memref<2x32x32xbf16, #tpu.memory_space<vmem>>, %arg7: memref<2x1x32xf32, #tpu.memory_space<vmem>>, %arg8: memref<2x32x32xbf16, #tpu.memory_space<vmem>>, %arg9: memref<2x1x32xf32, #tpu.memory_space<vmem>>, %arg10: memref<2x32x32xbf16, #tpu.memory_space<vmem>>, %arg11: memref<2x1x32xf32, #tpu.memory_space<vmem>>, %arg12: memref<2x32x32xbf16, #tpu.memory_space<vmem>>, %arg13: memref<2x1x32xf32, #tpu.memory_space<vmem>>, %arg14: memref<2x32x32xbf16, #tpu.memory_space<vmem>>, %arg15: memref<2x1x32xf32, #tpu.memory_space<vmem>>, %arg16: memref<2x1x32xf32, #tpu.memory_space<vmem>>, %arg17: memref<2x1x32xf32, #tpu.memory_space<vmem>>, %arg18: memref<2x32x64xbf16, #tpu.memory_space<vmem>>, %arg19: memref<2x1x64xf32, #tpu.memory_space<vmem>>, %arg20: memref<2x64x32xbf16, #tpu.memory_space<vmem>>, %arg21: memref<2x1x32xf32, #tpu.memory_space<vmem>>, %arg22: memref<1x32xf32, #tpu.memory_space<vmem>>, %arg23: memref<1x32xf32, #tpu.memory_space<vmem>>, %arg24: memref<32x128xbf16, #tpu.memory_space<vmem>>, %arg25: memref<1x128xf32, #tpu.memory_space<vmem>>, %arg26: memref<32x128xbf16, #tpu.memory_space<vmem>>, %arg27: memref<1x128xf32, #tpu.memory_space<vmem>>, %arg28: memref<1x9x128xf32, #tpu.memory_space<vmem>>) attributes {dimension_semantics = [#tpu.dimension_semantics<parallel>], iteration_bounds = array<i64: 2>, scalar_prefetch = 0 : i64, scratch_operands = 0 : i64, tpu.core_type = #tpu.core_type<tc>, window_params = [{transform_indices = @transform_0, window_bounds = array<i64: 1, 9, 32>}, {pipeline_mode = #tpu.pipeline_mode<synchronous>, transform_indices = @transform_1, window_bounds = array<i64: 2, 1, 32>}, {pipeline_mode = #tpu.pipeline_mode<synchronous>, transform_indices = @transform_2, window_bounds = array<i64: 2, 1, 32>}, {pipeline_mode = #tpu.pipeline_mode<synchronous>, transform_indices = @transform_3, window_bounds = array<i64: 2, 3, 32>}, {pipeline_mode = #tpu.pipeline_mode<synchronous>, transform_indices = @transform_4, window_bounds = array<i64: 2, 1, 32>}, {pipeline_mode = #tpu.pipeline_mode<synchronous>, transform_indices = @transform_5, window_bounds = array<i64: 2, 32, 32>}, {pipeline_mode = #tpu.pipeline_mode<synchronous>, transform_indices = @transform_6, window_bounds = array<i64: 2, 1, 32>}, {pipeline_mode = #tpu.pipeline_mode<synchronous>, transform_indices = @transform_7, window_bounds = array<i64: 2, 32, 32>}, {pipeline_mode = #tpu.pipeline_mode<synchronous>, transform_indices = @transform_8, window_bounds = array<i64: 2, 1, 32>}, {pipeline_mode = #tpu.pipeline_mode<synchronous>, transform_indices = @transform_9, window_bounds = array<i64: 2, 32, 32>}, {pipeline_mode = #tpu.pipeline_mode<synchronous>, transform_indices = @transform_10, window_bounds = array<i64: 2, 1, 32>}, {pipeline_mode = #tpu.pipeline_mode<synchronous>, transform_indices = @transform_11, window_bounds = array<i64: 2, 32, 32>}, {pipeline_mode = #tpu.pipeline_mode<synchronous>, transform_indices = @transform_12, window_bounds = array<i64: 2, 1, 32>}, {pipeline_mode = #tpu.pipeline_mode<synchronous>, transform_indices = @transform_13, window_bounds = array<i64: 2, 32, 32>}, {pipeline_mode = #tpu.pipeline_mode<synchronous>, transform_indices = @transform_14, window_bounds = array<i64: 2, 1, 32>}, {pipeline_mode = #tpu.pipeline_mode<synchronous>, transform_indices = @transform_15, window_bounds = array<i64: 2, 1, 32>}, {pipeline_mode = #tpu.pipeline_mode<synchronous>, transform_indices = @transform_16, window_bounds = array<i64: 2, 1, 32>}, {pipeline_mode = #tpu.pipeline_mode<synchronous>, transform_indices = @transform_17, window_bounds = array<i64: 2, 32, 64>}, {pipeline_mode = #tpu.pipeline_mode<synchronous>, transform_indices = @transform_18, window_bounds = array<i64: 2, 1, 64>}, {pipeline_mode = #tpu.pipeline_mode<synchronous>, transform_indices = @transform_19, window_bounds = array<i64: 2, 64, 32>}, {pipeline_mode = #tpu.pipeline_mode<synchronous>, transform_indices = @transform_20, window_bounds = array<i64: 2, 1, 32>}, {pipeline_mode = #tpu.pipeline_mode<synchronous>, transform_indices = @transform_21, window_bounds = array<i64: 1, 32>}, {pipeline_mode = #tpu.pipeline_mode<synchronous>, transform_indices = @transform_22, window_bounds = array<i64: 1, 32>}, {pipeline_mode = #tpu.pipeline_mode<synchronous>, transform_indices = @transform_23, window_bounds = array<i64: 32, 128>}, {pipeline_mode = #tpu.pipeline_mode<synchronous>, transform_indices = @transform_24, window_bounds = array<i64: 1, 128>}, {pipeline_mode = #tpu.pipeline_mode<synchronous>, transform_indices = @transform_25, window_bounds = array<i64: 32, 128>}, {pipeline_mode = #tpu.pipeline_mode<synchronous>, transform_indices = @transform_26, window_bounds = array<i64: 1, 128>}, {transform_indices = @transform_27, window_bounds = array<i64: 1, 9, 128>}]} {
    %c0 = arith.constant 0 : index
    %c0_0 = arith.constant 0 : index
    %c0_1 = arith.constant 0 : index
    %0 = vector.load %arg1[%c0, %c0_0, %c0_1] : memref<1x9x32xf32, #tpu.memory_space<vmem>>, vector<1x9x32xf32>
    %1 = vector.shape_cast %0 : vector<1x9x32xf32> to vector<9x32xf32>
    %2 = tpu.iota {dimensions = array<i32: 0>} : vector<9x9xi32>
    %3 = tpu.iota {dimensions = array<i32: 1>} : vector<9x9xi32>
    %c1_i32 = arith.constant 1 : i32
    %4 = vector.broadcast %c1_i32 : i32 to vector<9x9xi32>
    %5 = arith.subi %2, %4 : vector<9x9xi32>
    %6 = arith.cmpi eq, %3, %5 : vector<9x9xi32>
    %7 = arith.extui %6 : vector<9x9xi1> to vector<9x9xi32>
    %8 = arith.sitofp %7 : vector<9x9xi32> to vector<9x9xf32>
    %c1_i32_2 = arith.constant 1 : i32
    %9 = vector.broadcast %c1_i32_2 : i32 to vector<9x9xi32>
    %10 = arith.addi %2, %9 : vector<9x9xi32>
    %11 = arith.cmpi eq, %3, %10 : vector<9x9xi32>
    %12 = arith.extui %11 : vector<9x9xi1> to vector<9x9xi32>
    %13 = arith.sitofp %12 : vector<9x9xi32> to vector<9x9xf32>
    %14 = tpu.iota {dimensions = array<i32: 0>} : vector<9x1xi32>
    %c0_i32 = arith.constant 0 : i32
    %15 = vector.broadcast %c0_i32 : i32 to vector<9x1xi32>
    %16 = arith.cmpi eq, %14, %15 : vector<9x1xi32>
    %17 = arith.extui %16 : vector<9x1xi1> to vector<9x1xi32>
    %18 = arith.sitofp %17 : vector<9x1xi32> to vector<9x1xf32>
    %c0_3 = arith.constant 0 : index
    %c0_4 = arith.constant 0 : index
    %c0_5 = arith.constant 0 : index
    %19 = vector.load %arg2[%c0_3, %c0_4, %c0_5] : memref<2x1x32xf32, #tpu.memory_space<vmem>>, vector<1x1x32xf32>
    %20 = vector.shape_cast %19 : vector<1x1x32xf32> to vector<1x32xf32>
    %c0_6 = arith.constant 0 : index
    %c0_7 = arith.constant 0 : index
    %c0_8 = arith.constant 0 : index
    %21 = vector.load %arg3[%c0_6, %c0_7, %c0_8] : memref<2x1x32xf32, #tpu.memory_space<vmem>>, vector<1x1x32xf32>
    %22 = vector.shape_cast %21 : vector<1x1x32xf32> to vector<1x32xf32>
    %cst = arith.constant dense<0.000000e+00> : vector<9xf32>
    %23 = vector.multi_reduction <add>, %1, %cst [1] : vector<9x32xf32> to vector<9xf32>
    %24 = vector.shape_cast %23 : vector<9xf32> to vector<9x1xf32>
    %cst_9 = arith.constant 3.200000e+01 : f32
    %25 = vector.broadcast %cst_9 : f32 to vector<9x1xf32>
    %26 = arith.divf %24, %25 : vector<9x1xf32>
    %27 = vector.broadcast %26 : vector<9x1xf32> to vector<9x32xf32>
    %28 = arith.subf %1, %27 : vector<9x32xf32>
    %29 = arith.mulf %28, %28 : vector<9x32xf32>
    %cst_10 = arith.constant dense<0.000000e+00> : vector<9xf32>
    %30 = vector.multi_reduction <add>, %29, %cst_10 [1] : vector<9x32xf32> to vector<9xf32>
    %31 = vector.shape_cast %30 : vector<9xf32> to vector<9x1xf32>
    %cst_11 = arith.constant 3.200000e+01 : f32
    %32 = vector.broadcast %cst_11 : f32 to vector<9x1xf32>
    %33 = arith.divf %31, %32 : vector<9x1xf32>
    %cst_12 = arith.constant 9.99999997E-7 : f32
    %34 = vector.broadcast %cst_12 : f32 to vector<9x1xf32>
    %35 = arith.addf %33, %34 : vector<9x1xf32>
    %36 = math.rsqrt %35 : vector<9x1xf32>
    %37 = vector.broadcast %36 : vector<9x1xf32> to vector<9x32xf32>
    %38 = arith.mulf %28, %37 : vector<9x32xf32>
    %39 = vector.broadcast %20 : vector<1x32xf32> to vector<9x32xf32>
    %40 = arith.mulf %38, %39 : vector<9x32xf32>
    %41 = vector.broadcast %22 : vector<1x32xf32> to vector<9x32xf32>
    %42 = arith.addf %40, %41 : vector<9x32xf32>
    %c0_13 = arith.constant 0 : index
    %c0_14 = arith.constant 0 : index
    %c0_15 = arith.constant 0 : index
    %43 = vector.load %arg4[%c0_13, %c0_14, %c0_15] : memref<2x3x32xf32, #tpu.memory_space<vmem>>, vector<1x3x32xf32>
    %44 = vector.shape_cast %43 : vector<1x3x32xf32> to vector<3x32xf32>
    %cst_16 = arith.constant dense<0.000000e+00> : vector<9x32xf32>
    %45 = tpu.matmul %8, %42, %cst_16 {dimension_numbers = #tpu.dot_dimension_numbers<[1], [0], [0], [1], [0, 0, 1, 1], [], []>} : vector<9x9xf32>, vector<9x32xf32>, vector<9x32xf32> -> vector<9x32xf32>
    %cst_17 = arith.constant dense<0.000000e+00> : vector<9x32xf32>
    %46 = tpu.matmul %13, %42, %cst_17 {dimension_numbers = #tpu.dot_dimension_numbers<[1], [0], [0], [1], [0, 0, 1, 1], [], []>} : vector<9x9xf32>, vector<9x32xf32>, vector<9x32xf32> -> vector<9x32xf32>
    %47 = vector.extract_strided_slice %44 {offsets = [0, 0], sizes = [1, 32], strides = [1, 1]} : vector<3x32xf32> to vector<1x32xf32>
    %48 = vector.broadcast %47 : vector<1x32xf32> to vector<9x32xf32>
    %49 = arith.mulf %45, %48 : vector<9x32xf32>
    %50 = vector.extract_strided_slice %44 {offsets = [1, 0], sizes = [1, 32], strides = [1, 1]} : vector<3x32xf32> to vector<1x32xf32>
    %51 = vector.broadcast %50 : vector<1x32xf32> to vector<9x32xf32>
    %52 = arith.mulf %42, %51 : vector<9x32xf32>
    %53 = arith.addf %49, %52 : vector<9x32xf32>
    %54 = vector.extract_strided_slice %44 {offsets = [2, 0], sizes = [1, 32], strides = [1, 1]} : vector<3x32xf32> to vector<1x32xf32>
    %55 = vector.broadcast %54 : vector<1x32xf32> to vector<9x32xf32>
    %56 = arith.mulf %46, %55 : vector<9x32xf32>
    %57 = arith.addf %53, %56 : vector<9x32xf32>
    %c0_18 = arith.constant 0 : index
    %c0_19 = arith.constant 0 : index
    %c0_20 = arith.constant 0 : index
    %58 = vector.load %arg5[%c0_18, %c0_19, %c0_20] : memref<2x1x32xf32, #tpu.memory_space<vmem>>, vector<1x1x32xf32>
    %59 = vector.shape_cast %58 : vector<1x1x32xf32> to vector<1x32xf32>
    %60 = vector.broadcast %59 : vector<1x32xf32> to vector<9x32xf32>
    %61 = arith.addf %57, %60 : vector<9x32xf32>
    %c0_21 = arith.constant 0 : index
    %c0_22 = arith.constant 0 : index
    %c0_23 = arith.constant 0 : index
    %62 = vector.load %arg6[%c0_21, %c0_22, %c0_23] : memref<2x32x32xbf16, #tpu.memory_space<vmem>>, vector<1x32x32xbf16>
    %63 = vector.shape_cast %62 : vector<1x32x32xbf16> to vector<32x32xbf16>
    %64 = arith.truncf %61 : vector<9x32xf32> to vector<9x32xbf16>
    %cst_24 = arith.constant dense<0.000000e+00> : vector<9x32xf32>
    %65 = tpu.matmul %64, %63, %cst_24 {dimension_numbers = #tpu.dot_dimension_numbers<[1], [0], [0], [1], [0, 0, 1, 1], [], []>} : vector<9x32xbf16>, vector<32x32xbf16>, vector<9x32xf32> -> vector<9x32xf32>
    %c0_25 = arith.constant 0 : index
    %c0_26 = arith.constant 0 : index
    %c0_27 = arith.constant 0 : index
    %66 = vector.load %arg7[%c0_25, %c0_26, %c0_27] : memref<2x1x32xf32, #tpu.memory_space<vmem>>, vector<1x1x32xf32>
    %67 = vector.shape_cast %66 : vector<1x1x32xf32> to vector<1x32xf32>
    %68 = vector.broadcast %67 : vector<1x32xf32> to vector<9x32xf32>
    %69 = arith.addf %65, %68 : vector<9x32xf32>
    %c0_28 = arith.constant 0 : index
    %c0_29 = arith.constant 0 : index
    %c0_30 = arith.constant 0 : index
    %70 = vector.load %arg8[%c0_28, %c0_29, %c0_30] : memref<2x32x32xbf16, #tpu.memory_space<vmem>>, vector<1x32x32xbf16>
    %71 = vector.shape_cast %70 : vector<1x32x32xbf16> to vector<32x32xbf16>
    %72 = arith.truncf %69 : vector<9x32xf32> to vector<9x32xbf16>
    %cst_31 = arith.constant dense<0.000000e+00> : vector<9x32xf32>
    %73 = tpu.matmul %72, %71, %cst_31 {dimension_numbers = #tpu.dot_dimension_numbers<[1], [0], [0], [1], [0, 0, 1, 1], [], []>} : vector<9x32xbf16>, vector<32x32xbf16>, vector<9x32xf32> -> vector<9x32xf32>
    %c0_32 = arith.constant 0 : index
    %c0_33 = arith.constant 0 : index
    %c0_34 = arith.constant 0 : index
    %74 = vector.load %arg9[%c0_32, %c0_33, %c0_34] : memref<2x1x32xf32, #tpu.memory_space<vmem>>, vector<1x1x32xf32>
    %75 = vector.shape_cast %74 : vector<1x1x32xf32> to vector<1x32xf32>
    %76 = vector.broadcast %75 : vector<1x32xf32> to vector<9x32xf32>
    %77 = arith.addf %73, %76 : vector<9x32xf32>
    %c0_35 = arith.constant 0 : index
    %c0_36 = arith.constant 0 : index
    %c0_37 = arith.constant 0 : index
    %78 = vector.load %arg10[%c0_35, %c0_36, %c0_37] : memref<2x32x32xbf16, #tpu.memory_space<vmem>>, vector<1x32x32xbf16>
    %79 = vector.shape_cast %78 : vector<1x32x32xbf16> to vector<32x32xbf16>
    %80 = arith.truncf %69 : vector<9x32xf32> to vector<9x32xbf16>
    %cst_38 = arith.constant dense<0.000000e+00> : vector<9x32xf32>
    %81 = tpu.matmul %80, %79, %cst_38 {dimension_numbers = #tpu.dot_dimension_numbers<[1], [0], [0], [1], [0, 0, 1, 1], [], []>} : vector<9x32xbf16>, vector<32x32xbf16>, vector<9x32xf32> -> vector<9x32xf32>
    %c0_39 = arith.constant 0 : index
    %c0_40 = arith.constant 0 : index
    %c0_41 = arith.constant 0 : index
    %82 = vector.load %arg11[%c0_39, %c0_40, %c0_41] : memref<2x1x32xf32, #tpu.memory_space<vmem>>, vector<1x1x32xf32>
    %83 = vector.shape_cast %82 : vector<1x1x32xf32> to vector<1x32xf32>
    %84 = vector.broadcast %83 : vector<1x32xf32> to vector<9x32xf32>
    %85 = arith.addf %81, %84 : vector<9x32xf32>
    %c0_42 = arith.constant 0 : index
    %c0_43 = arith.constant 0 : index
    %c0_44 = arith.constant 0 : index
    %86 = vector.load %arg12[%c0_42, %c0_43, %c0_44] : memref<2x32x32xbf16, #tpu.memory_space<vmem>>, vector<1x32x32xbf16>
    %87 = vector.shape_cast %86 : vector<1x32x32xbf16> to vector<32x32xbf16>
    %88 = arith.truncf %69 : vector<9x32xf32> to vector<9x32xbf16>
    %cst_45 = arith.constant dense<0.000000e+00> : vector<9x32xf32>
    %89 = tpu.matmul %88, %87, %cst_45 {dimension_numbers = #tpu.dot_dimension_numbers<[1], [0], [0], [1], [0, 0, 1, 1], [], []>} : vector<9x32xbf16>, vector<32x32xbf16>, vector<9x32xf32> -> vector<9x32xf32>
    %c0_46 = arith.constant 0 : index
    %c0_47 = arith.constant 0 : index
    %c0_48 = arith.constant 0 : index
    %90 = vector.load %arg13[%c0_46, %c0_47, %c0_48] : memref<2x1x32xf32, #tpu.memory_space<vmem>>, vector<1x1x32xf32>
    %91 = vector.shape_cast %90 : vector<1x1x32xf32> to vector<1x32xf32>
    %92 = vector.broadcast %91 : vector<1x32xf32> to vector<9x32xf32>
    %93 = arith.addf %89, %92 : vector<9x32xf32>
    %94 = arith.truncf %77 : vector<9x32xf32> to vector<9x32xbf16>
    %95 = arith.truncf %85 : vector<9x32xf32> to vector<9x32xbf16>
    %96 = arith.truncf %93 : vector<9x32xf32> to vector<9x32xbf16>
    %c0_49 = arith.constant 0 : index
    %c0_50 = arith.constant 0 : index
    %c0_51 = arith.constant 0 : index
    %97 = vector.load %arg14[%c0_49, %c0_50, %c0_51] : memref<2x32x32xbf16, #tpu.memory_space<vmem>>, vector<1x32x32xbf16>
    %98 = vector.shape_cast %97 : vector<1x32x32xbf16> to vector<32x32xbf16>
    %cst_52 = arith.constant 0.000000e+00 : f32
    %99 = vector.broadcast %cst_52 : f32 to vector<9x32xf32>
    %100 = vector.extract_strided_slice %94 {offsets = [0, 0], sizes = [9, 8], strides = [1, 1]} : vector<9x32xbf16> to vector<9x8xbf16>
    %101 = vector.extract_strided_slice %95 {offsets = [0, 0], sizes = [9, 8], strides = [1, 1]} : vector<9x32xbf16> to vector<9x8xbf16>
    %cst_53 = arith.constant dense<0.000000e+00> : vector<9x9xf32>
    %102 = tpu.matmul %100, %101, %cst_53 {dimension_numbers = #tpu.dot_dimension_numbers<[1], [1], [0], [0], [0, 0, 1, 0], [], []>} : vector<9x8xbf16>, vector<9x8xbf16>, vector<9x9xf32> -> vector<9x9xf32>
    %cst_54 = arith.constant 0.353553385 : f32
    %103 = vector.broadcast %cst_54 : f32 to vector<9x9xf32>
    %104 = arith.mulf %102, %103 : vector<9x9xf32>
    %cst_55 = arith.constant dense<0xFF800000> : vector<9xf32>
    %105 = vector.multi_reduction <maximumf>, %104, %cst_55 [1] : vector<9x9xf32> to vector<9xf32>
    %106 = vector.shape_cast %105 : vector<9xf32> to vector<9x1xf32>
    %107 = vector.broadcast %106 : vector<9x1xf32> to vector<9x9xf32>
    %108 = arith.subf %104, %107 : vector<9x9xf32>
    %109 = math.exp %108 : vector<9x9xf32>
    %cst_56 = arith.constant dense<0.000000e+00> : vector<9xf32>
    %110 = vector.multi_reduction <add>, %109, %cst_56 [1] : vector<9x9xf32> to vector<9xf32>
    %111 = vector.shape_cast %110 : vector<9xf32> to vector<9x1xf32>
    %112 = tpu.reciprocal %111 {approx = true} : vector<9x1xf32> -> vector<9x1xf32>
    %113 = vector.broadcast %112 : vector<9x1xf32> to vector<9x9xf32>
    %114 = arith.mulf %109, %113 : vector<9x9xf32>
    %115 = vector.extract_strided_slice %96 {offsets = [0, 0], sizes = [9, 8], strides = [1, 1]} : vector<9x32xbf16> to vector<9x8xbf16>
    %116 = arith.truncf %114 : vector<9x9xf32> to vector<9x9xbf16>
    %cst_57 = arith.constant dense<0.000000e+00> : vector<9x8xf32>
    %117 = tpu.matmul %116, %115, %cst_57 {dimension_numbers = #tpu.dot_dimension_numbers<[1], [0], [0], [1], [0, 0, 1, 1], [], []>} : vector<9x9xbf16>, vector<9x8xbf16>, vector<9x8xf32> -> vector<9x8xf32>
    %118 = vector.extract_strided_slice %98 {offsets = [0, 0], sizes = [8, 32], strides = [1, 1]} : vector<32x32xbf16> to vector<8x32xbf16>
    %119 = arith.truncf %117 : vector<9x8xf32> to vector<9x8xbf16>
    %cst_58 = arith.constant dense<0.000000e+00> : vector<9x32xf32>
    %120 = tpu.matmul %119, %118, %cst_58 {dimension_numbers = #tpu.dot_dimension_numbers<[1], [0], [0], [1], [0, 0, 1, 1], [], []>} : vector<9x8xbf16>, vector<8x32xbf16>, vector<9x32xf32> -> vector<9x32xf32>
    %121 = arith.addf %99, %120 : vector<9x32xf32>
    %122 = vector.extract_strided_slice %94 {offsets = [0, 8], sizes = [9, 8], strides = [1, 1]} : vector<9x32xbf16> to vector<9x8xbf16>
    %123 = vector.extract_strided_slice %95 {offsets = [0, 8], sizes = [9, 8], strides = [1, 1]} : vector<9x32xbf16> to vector<9x8xbf16>
    %cst_59 = arith.constant dense<0.000000e+00> : vector<9x9xf32>
    %124 = tpu.matmul %122, %123, %cst_59 {dimension_numbers = #tpu.dot_dimension_numbers<[1], [1], [0], [0], [0, 0, 1, 0], [], []>} : vector<9x8xbf16>, vector<9x8xbf16>, vector<9x9xf32> -> vector<9x9xf32>
    %cst_60 = arith.constant 0.353553385 : f32
    %125 = vector.broadcast %cst_60 : f32 to vector<9x9xf32>
    %126 = arith.mulf %124, %125 : vector<9x9xf32>
    %cst_61 = arith.constant dense<0xFF800000> : vector<9xf32>
    %127 = vector.multi_reduction <maximumf>, %126, %cst_61 [1] : vector<9x9xf32> to vector<9xf32>
    %128 = vector.shape_cast %127 : vector<9xf32> to vector<9x1xf32>
    %129 = vector.broadcast %128 : vector<9x1xf32> to vector<9x9xf32>
    %130 = arith.subf %126, %129 : vector<9x9xf32>
    %131 = math.exp %130 : vector<9x9xf32>
    %cst_62 = arith.constant dense<0.000000e+00> : vector<9xf32>
    %132 = vector.multi_reduction <add>, %131, %cst_62 [1] : vector<9x9xf32> to vector<9xf32>
    %133 = vector.shape_cast %132 : vector<9xf32> to vector<9x1xf32>
    %134 = tpu.reciprocal %133 {approx = true} : vector<9x1xf32> -> vector<9x1xf32>
    %135 = vector.broadcast %134 : vector<9x1xf32> to vector<9x9xf32>
    %136 = arith.mulf %131, %135 : vector<9x9xf32>
    %137 = vector.extract_strided_slice %96 {offsets = [0, 8], sizes = [9, 8], strides = [1, 1]} : vector<9x32xbf16> to vector<9x8xbf16>
    %138 = arith.truncf %136 : vector<9x9xf32> to vector<9x9xbf16>
    %cst_63 = arith.constant dense<0.000000e+00> : vector<9x8xf32>
    %139 = tpu.matmul %138, %137, %cst_63 {dimension_numbers = #tpu.dot_dimension_numbers<[1], [0], [0], [1], [0, 0, 1, 1], [], []>} : vector<9x9xbf16>, vector<9x8xbf16>, vector<9x8xf32> -> vector<9x8xf32>
    %140 = vector.extract_strided_slice %98 {offsets = [8, 0], sizes = [8, 32], strides = [1, 1]} : vector<32x32xbf16> to vector<8x32xbf16>
    %141 = arith.truncf %139 : vector<9x8xf32> to vector<9x8xbf16>
    %cst_64 = arith.constant dense<0.000000e+00> : vector<9x32xf32>
    %142 = tpu.matmul %141, %140, %cst_64 {dimension_numbers = #tpu.dot_dimension_numbers<[1], [0], [0], [1], [0, 0, 1, 1], [], []>} : vector<9x8xbf16>, vector<8x32xbf16>, vector<9x32xf32> -> vector<9x32xf32>
    %143 = arith.addf %121, %142 : vector<9x32xf32>
    %144 = vector.extract_strided_slice %94 {offsets = [0, 16], sizes = [9, 8], strides = [1, 1]} : vector<9x32xbf16> to vector<9x8xbf16>
    %145 = vector.extract_strided_slice %95 {offsets = [0, 16], sizes = [9, 8], strides = [1, 1]} : vector<9x32xbf16> to vector<9x8xbf16>
    %cst_65 = arith.constant dense<0.000000e+00> : vector<9x9xf32>
    %146 = tpu.matmul %144, %145, %cst_65 {dimension_numbers = #tpu.dot_dimension_numbers<[1], [1], [0], [0], [0, 0, 1, 0], [], []>} : vector<9x8xbf16>, vector<9x8xbf16>, vector<9x9xf32> -> vector<9x9xf32>
    %cst_66 = arith.constant 0.353553385 : f32
    %147 = vector.broadcast %cst_66 : f32 to vector<9x9xf32>
    %148 = arith.mulf %146, %147 : vector<9x9xf32>
    %cst_67 = arith.constant dense<0xFF800000> : vector<9xf32>
    %149 = vector.multi_reduction <maximumf>, %148, %cst_67 [1] : vector<9x9xf32> to vector<9xf32>
    %150 = vector.shape_cast %149 : vector<9xf32> to vector<9x1xf32>
    %151 = vector.broadcast %150 : vector<9x1xf32> to vector<9x9xf32>
    %152 = arith.subf %148, %151 : vector<9x9xf32>
    %153 = math.exp %152 : vector<9x9xf32>
    %cst_68 = arith.constant dense<0.000000e+00> : vector<9xf32>
    %154 = vector.multi_reduction <add>, %153, %cst_68 [1] : vector<9x9xf32> to vector<9xf32>
    %155 = vector.shape_cast %154 : vector<9xf32> to vector<9x1xf32>
    %156 = tpu.reciprocal %155 {approx = true} : vector<9x1xf32> -> vector<9x1xf32>
    %157 = vector.broadcast %156 : vector<9x1xf32> to vector<9x9xf32>
    %158 = arith.mulf %153, %157 : vector<9x9xf32>
    %159 = vector.extract_strided_slice %96 {offsets = [0, 16], sizes = [9, 8], strides = [1, 1]} : vector<9x32xbf16> to vector<9x8xbf16>
    %160 = arith.truncf %158 : vector<9x9xf32> to vector<9x9xbf16>
    %cst_69 = arith.constant dense<0.000000e+00> : vector<9x8xf32>
    %161 = tpu.matmul %160, %159, %cst_69 {dimension_numbers = #tpu.dot_dimension_numbers<[1], [0], [0], [1], [0, 0, 1, 1], [], []>} : vector<9x9xbf16>, vector<9x8xbf16>, vector<9x8xf32> -> vector<9x8xf32>
    %162 = vector.extract_strided_slice %98 {offsets = [16, 0], sizes = [8, 32], strides = [1, 1]} : vector<32x32xbf16> to vector<8x32xbf16>
    %163 = arith.truncf %161 : vector<9x8xf32> to vector<9x8xbf16>
    %cst_70 = arith.constant dense<0.000000e+00> : vector<9x32xf32>
    %164 = tpu.matmul %163, %162, %cst_70 {dimension_numbers = #tpu.dot_dimension_numbers<[1], [0], [0], [1], [0, 0, 1, 1], [], []>} : vector<9x8xbf16>, vector<8x32xbf16>, vector<9x32xf32> -> vector<9x32xf32>
    %165 = arith.addf %143, %164 : vector<9x32xf32>
    %166 = vector.extract_strided_slice %94 {offsets = [0, 24], sizes = [9, 8], strides = [1, 1]} : vector<9x32xbf16> to vector<9x8xbf16>
    %167 = vector.extract_strided_slice %95 {offsets = [0, 24], sizes = [9, 8], strides = [1, 1]} : vector<9x32xbf16> to vector<9x8xbf16>
    %cst_71 = arith.constant dense<0.000000e+00> : vector<9x9xf32>
    %168 = tpu.matmul %166, %167, %cst_71 {dimension_numbers = #tpu.dot_dimension_numbers<[1], [1], [0], [0], [0, 0, 1, 0], [], []>} : vector<9x8xbf16>, vector<9x8xbf16>, vector<9x9xf32> -> vector<9x9xf32>
    %cst_72 = arith.constant 0.353553385 : f32
    %169 = vector.broadcast %cst_72 : f32 to vector<9x9xf32>
    %170 = arith.mulf %168, %169 : vector<9x9xf32>
    %cst_73 = arith.constant dense<0xFF800000> : vector<9xf32>
    %171 = vector.multi_reduction <maximumf>, %170, %cst_73 [1] : vector<9x9xf32> to vector<9xf32>
    %172 = vector.shape_cast %171 : vector<9xf32> to vector<9x1xf32>
    %173 = vector.broadcast %172 : vector<9x1xf32> to vector<9x9xf32>
    %174 = arith.subf %170, %173 : vector<9x9xf32>
    %175 = math.exp %174 : vector<9x9xf32>
    %cst_74 = arith.constant dense<0.000000e+00> : vector<9xf32>
    %176 = vector.multi_reduction <add>, %175, %cst_74 [1] : vector<9x9xf32> to vector<9xf32>
    %177 = vector.shape_cast %176 : vector<9xf32> to vector<9x1xf32>
    %178 = tpu.reciprocal %177 {approx = true} : vector<9x1xf32> -> vector<9x1xf32>
    %179 = vector.broadcast %178 : vector<9x1xf32> to vector<9x9xf32>
    %180 = arith.mulf %175, %179 : vector<9x9xf32>
    %181 = vector.extract_strided_slice %96 {offsets = [0, 24], sizes = [9, 8], strides = [1, 1]} : vector<9x32xbf16> to vector<9x8xbf16>
    %182 = arith.truncf %180 : vector<9x9xf32> to vector<9x9xbf16>
    %cst_75 = arith.constant dense<0.000000e+00> : vector<9x8xf32>
    %183 = tpu.matmul %182, %181, %cst_75 {dimension_numbers = #tpu.dot_dimension_numbers<[1], [0], [0], [1], [0, 0, 1, 1], [], []>} : vector<9x9xbf16>, vector<9x8xbf16>, vector<9x8xf32> -> vector<9x8xf32>
    %184 = vector.extract_strided_slice %98 {offsets = [24, 0], sizes = [8, 32], strides = [1, 1]} : vector<32x32xbf16> to vector<8x32xbf16>
    %185 = arith.truncf %183 : vector<9x8xf32> to vector<9x8xbf16>
    %cst_76 = arith.constant dense<0.000000e+00> : vector<9x32xf32>
    %186 = tpu.matmul %185, %184, %cst_76 {dimension_numbers = #tpu.dot_dimension_numbers<[1], [0], [0], [1], [0, 0, 1, 1], [], []>} : vector<9x8xbf16>, vector<8x32xbf16>, vector<9x32xf32> -> vector<9x32xf32>
    %187 = arith.addf %165, %186 : vector<9x32xf32>
    %c0_77 = arith.constant 0 : index
    %c0_78 = arith.constant 0 : index
    %c0_79 = arith.constant 0 : index
    %188 = vector.load %arg15[%c0_77, %c0_78, %c0_79] : memref<2x1x32xf32, #tpu.memory_space<vmem>>, vector<1x1x32xf32>
    %189 = vector.shape_cast %188 : vector<1x1x32xf32> to vector<1x32xf32>
    %190 = vector.broadcast %189 : vector<1x32xf32> to vector<9x32xf32>
    %191 = arith.addf %187, %190 : vector<9x32xf32>
    %192 = arith.addf %191, %1 : vector<9x32xf32>
    %c0_80 = arith.constant 0 : index
    %c0_81 = arith.constant 0 : index
    %c0_82 = arith.constant 0 : index
    %193 = vector.load %arg16[%c0_80, %c0_81, %c0_82] : memref<2x1x32xf32, #tpu.memory_space<vmem>>, vector<1x1x32xf32>
    %194 = vector.shape_cast %193 : vector<1x1x32xf32> to vector<1x32xf32>
    %c0_83 = arith.constant 0 : index
    %c0_84 = arith.constant 0 : index
    %c0_85 = arith.constant 0 : index
    %195 = vector.load %arg17[%c0_83, %c0_84, %c0_85] : memref<2x1x32xf32, #tpu.memory_space<vmem>>, vector<1x1x32xf32>
    %196 = vector.shape_cast %195 : vector<1x1x32xf32> to vector<1x32xf32>
    %cst_86 = arith.constant dense<0.000000e+00> : vector<9xf32>
    %197 = vector.multi_reduction <add>, %192, %cst_86 [1] : vector<9x32xf32> to vector<9xf32>
    %198 = vector.shape_cast %197 : vector<9xf32> to vector<9x1xf32>
    %cst_87 = arith.constant 3.200000e+01 : f32
    %199 = vector.broadcast %cst_87 : f32 to vector<9x1xf32>
    %200 = arith.divf %198, %199 : vector<9x1xf32>
    %201 = vector.broadcast %200 : vector<9x1xf32> to vector<9x32xf32>
    %202 = arith.subf %192, %201 : vector<9x32xf32>
    %203 = arith.mulf %202, %202 : vector<9x32xf32>
    %cst_88 = arith.constant dense<0.000000e+00> : vector<9xf32>
    %204 = vector.multi_reduction <add>, %203, %cst_88 [1] : vector<9x32xf32> to vector<9xf32>
    %205 = vector.shape_cast %204 : vector<9xf32> to vector<9x1xf32>
    %cst_89 = arith.constant 3.200000e+01 : f32
    %206 = vector.broadcast %cst_89 : f32 to vector<9x1xf32>
    %207 = arith.divf %205, %206 : vector<9x1xf32>
    %cst_90 = arith.constant 9.99999997E-7 : f32
    %208 = vector.broadcast %cst_90 : f32 to vector<9x1xf32>
    %209 = arith.addf %207, %208 : vector<9x1xf32>
    %210 = math.rsqrt %209 : vector<9x1xf32>
    %211 = vector.broadcast %210 : vector<9x1xf32> to vector<9x32xf32>
    %212 = arith.mulf %202, %211 : vector<9x32xf32>
    %213 = vector.broadcast %194 : vector<1x32xf32> to vector<9x32xf32>
    %214 = arith.mulf %212, %213 : vector<9x32xf32>
    %215 = vector.broadcast %196 : vector<1x32xf32> to vector<9x32xf32>
    %216 = arith.addf %214, %215 : vector<9x32xf32>
    %c0_91 = arith.constant 0 : index
    %c0_92 = arith.constant 0 : index
    %c0_93 = arith.constant 0 : index
    %217 = vector.load %arg18[%c0_91, %c0_92, %c0_93] : memref<2x32x64xbf16, #tpu.memory_space<vmem>>, vector<1x32x64xbf16>
    %218 = vector.shape_cast %217 : vector<1x32x64xbf16> to vector<32x64xbf16>
    %219 = arith.truncf %216 : vector<9x32xf32> to vector<9x32xbf16>
    %cst_94 = arith.constant dense<0.000000e+00> : vector<9x64xf32>
    %220 = tpu.matmul %219, %218, %cst_94 {dimension_numbers = #tpu.dot_dimension_numbers<[1], [0], [0], [1], [0, 0, 1, 1], [], []>} : vector<9x32xbf16>, vector<32x64xbf16>, vector<9x64xf32> -> vector<9x64xf32>
    %c0_95 = arith.constant 0 : index
    %c0_96 = arith.constant 0 : index
    %c0_97 = arith.constant 0 : index
    %221 = vector.load %arg19[%c0_95, %c0_96, %c0_97] : memref<2x1x64xf32, #tpu.memory_space<vmem>>, vector<1x1x64xf32>
    %222 = vector.shape_cast %221 : vector<1x1x64xf32> to vector<1x64xf32>
    %223 = vector.broadcast %222 : vector<1x64xf32> to vector<9x64xf32>
    %224 = arith.addf %220, %223 : vector<9x64xf32>
    %cst_98 = arith.constant 5.000000e-01 : f32
    %225 = vector.broadcast %cst_98 : f32 to vector<9x64xf32>
    %226 = arith.mulf %225, %224 : vector<9x64xf32>
    %227 = arith.mulf %224, %224 : vector<9x64xf32>
    %228 = arith.mulf %227, %224 : vector<9x64xf32>
    %cst_99 = arith.constant 4.471500e-02 : f32
    %229 = vector.broadcast %cst_99 : f32 to vector<9x64xf32>
    %230 = arith.mulf %229, %228 : vector<9x64xf32>
    %231 = arith.addf %224, %230 : vector<9x64xf32>
    %cst_100 = arith.constant 0.797884583 : f32
    %232 = vector.broadcast %cst_100 : f32 to vector<9x64xf32>
    %233 = arith.mulf %232, %231 : vector<9x64xf32>
    %234 = math.tanh %233 : vector<9x64xf32>
    %cst_101 = arith.constant 1.000000e+00 : f32
    %235 = vector.broadcast %cst_101 : f32 to vector<9x64xf32>
    %236 = arith.addf %235, %234 : vector<9x64xf32>
    %237 = arith.mulf %226, %236 : vector<9x64xf32>
    %c0_102 = arith.constant 0 : index
    %c0_103 = arith.constant 0 : index
    %c0_104 = arith.constant 0 : index
    %238 = vector.load %arg20[%c0_102, %c0_103, %c0_104] : memref<2x64x32xbf16, #tpu.memory_space<vmem>>, vector<1x64x32xbf16>
    %239 = vector.shape_cast %238 : vector<1x64x32xbf16> to vector<64x32xbf16>
    %240 = arith.truncf %237 : vector<9x64xf32> to vector<9x64xbf16>
    %cst_105 = arith.constant dense<0.000000e+00> : vector<9x32xf32>
    %241 = tpu.matmul %240, %239, %cst_105 {dimension_numbers = #tpu.dot_dimension_numbers<[1], [0], [0], [1], [0, 0, 1, 1], [], []>} : vector<9x64xbf16>, vector<64x32xbf16>, vector<9x32xf32> -> vector<9x32xf32>
    %242 = arith.addf %192, %241 : vector<9x32xf32>
    %c0_106 = arith.constant 0 : index
    %c0_107 = arith.constant 0 : index
    %c0_108 = arith.constant 0 : index
    %243 = vector.load %arg21[%c0_106, %c0_107, %c0_108] : memref<2x1x32xf32, #tpu.memory_space<vmem>>, vector<1x1x32xf32>
    %244 = vector.shape_cast %243 : vector<1x1x32xf32> to vector<1x32xf32>
    %245 = vector.broadcast %244 : vector<1x32xf32> to vector<9x32xf32>
    %246 = arith.addf %242, %245 : vector<9x32xf32>
    %c1 = arith.constant 1 : index
    %c0_109 = arith.constant 0 : index
    %c0_110 = arith.constant 0 : index
    %247 = vector.load %arg2[%c1, %c0_109, %c0_110] : memref<2x1x32xf32, #tpu.memory_space<vmem>>, vector<1x1x32xf32>
    %248 = vector.shape_cast %247 : vector<1x1x32xf32> to vector<1x32xf32>
    %c1_111 = arith.constant 1 : index
    %c0_112 = arith.constant 0 : index
    %c0_113 = arith.constant 0 : index
    %249 = vector.load %arg3[%c1_111, %c0_112, %c0_113] : memref<2x1x32xf32, #tpu.memory_space<vmem>>, vector<1x1x32xf32>
    %250 = vector.shape_cast %249 : vector<1x1x32xf32> to vector<1x32xf32>
    %cst_114 = arith.constant dense<0.000000e+00> : vector<9xf32>
    %251 = vector.multi_reduction <add>, %246, %cst_114 [1] : vector<9x32xf32> to vector<9xf32>
    %252 = vector.shape_cast %251 : vector<9xf32> to vector<9x1xf32>
    %cst_115 = arith.constant 3.200000e+01 : f32
    %253 = vector.broadcast %cst_115 : f32 to vector<9x1xf32>
    %254 = arith.divf %252, %253 : vector<9x1xf32>
    %255 = vector.broadcast %254 : vector<9x1xf32> to vector<9x32xf32>
    %256 = arith.subf %246, %255 : vector<9x32xf32>
    %257 = arith.mulf %256, %256 : vector<9x32xf32>
    %cst_116 = arith.constant dense<0.000000e+00> : vector<9xf32>
    %258 = vector.multi_reduction <add>, %257, %cst_116 [1] : vector<9x32xf32> to vector<9xf32>
    %259 = vector.shape_cast %258 : vector<9xf32> to vector<9x1xf32>
    %cst_117 = arith.constant 3.200000e+01 : f32
    %260 = vector.broadcast %cst_117 : f32 to vector<9x1xf32>
    %261 = arith.divf %259, %260 : vector<9x1xf32>
    %cst_118 = arith.constant 9.99999997E-7 : f32
    %262 = vector.broadcast %cst_118 : f32 to vector<9x1xf32>
    %263 = arith.addf %261, %262 : vector<9x1xf32>
    %264 = math.rsqrt %263 : vector<9x1xf32>
    %265 = vector.broadcast %264 : vector<9x1xf32> to vector<9x32xf32>
    %266 = arith.mulf %256, %265 : vector<9x32xf32>
    %267 = vector.broadcast %248 : vector<1x32xf32> to vector<9x32xf32>
    %268 = arith.mulf %266, %267 : vector<9x32xf32>
    %269 = vector.broadcast %250 : vector<1x32xf32> to vector<9x32xf32>
    %270 = arith.addf %268, %269 : vector<9x32xf32>
    %c1_119 = arith.constant 1 : index
    %c0_120 = arith.constant 0 : index
    %c0_121 = arith.constant 0 : index
    %271 = vector.load %arg4[%c1_119, %c0_120, %c0_121] : memref<2x3x32xf32, #tpu.memory_space<vmem>>, vector<1x3x32xf32>
    %272 = vector.shape_cast %271 : vector<1x3x32xf32> to vector<3x32xf32>
    %cst_122 = arith.constant dense<0.000000e+00> : vector<9x32xf32>
    %273 = tpu.matmul %8, %270, %cst_122 {dimension_numbers = #tpu.dot_dimension_numbers<[1], [0], [0], [1], [0, 0, 1, 1], [], []>} : vector<9x9xf32>, vector<9x32xf32>, vector<9x32xf32> -> vector<9x32xf32>
    %cst_123 = arith.constant dense<0.000000e+00> : vector<9x32xf32>
    %274 = tpu.matmul %13, %270, %cst_123 {dimension_numbers = #tpu.dot_dimension_numbers<[1], [0], [0], [1], [0, 0, 1, 1], [], []>} : vector<9x9xf32>, vector<9x32xf32>, vector<9x32xf32> -> vector<9x32xf32>
    %275 = vector.extract_strided_slice %272 {offsets = [0, 0], sizes = [1, 32], strides = [1, 1]} : vector<3x32xf32> to vector<1x32xf32>
    %276 = vector.broadcast %275 : vector<1x32xf32> to vector<9x32xf32>
    %277 = arith.mulf %273, %276 : vector<9x32xf32>
    %278 = vector.extract_strided_slice %272 {offsets = [1, 0], sizes = [1, 32], strides = [1, 1]} : vector<3x32xf32> to vector<1x32xf32>
    %279 = vector.broadcast %278 : vector<1x32xf32> to vector<9x32xf32>
    %280 = arith.mulf %270, %279 : vector<9x32xf32>
    %281 = arith.addf %277, %280 : vector<9x32xf32>
    %282 = vector.extract_strided_slice %272 {offsets = [2, 0], sizes = [1, 32], strides = [1, 1]} : vector<3x32xf32> to vector<1x32xf32>
    %283 = vector.broadcast %282 : vector<1x32xf32> to vector<9x32xf32>
    %284 = arith.mulf %274, %283 : vector<9x32xf32>
    %285 = arith.addf %281, %284 : vector<9x32xf32>
    %c1_124 = arith.constant 1 : index
    %c0_125 = arith.constant 0 : index
    %c0_126 = arith.constant 0 : index
    %286 = vector.load %arg5[%c1_124, %c0_125, %c0_126] : memref<2x1x32xf32, #tpu.memory_space<vmem>>, vector<1x1x32xf32>
    %287 = vector.shape_cast %286 : vector<1x1x32xf32> to vector<1x32xf32>
    %288 = vector.broadcast %287 : vector<1x32xf32> to vector<9x32xf32>
    %289 = arith.addf %285, %288 : vector<9x32xf32>
    %c1_127 = arith.constant 1 : index
    %c0_128 = arith.constant 0 : index
    %c0_129 = arith.constant 0 : index
    %290 = vector.load %arg6[%c1_127, %c0_128, %c0_129] : memref<2x32x32xbf16, #tpu.memory_space<vmem>>, vector<1x32x32xbf16>
    %291 = vector.shape_cast %290 : vector<1x32x32xbf16> to vector<32x32xbf16>
    %292 = arith.truncf %289 : vector<9x32xf32> to vector<9x32xbf16>
    %cst_130 = arith.constant dense<0.000000e+00> : vector<9x32xf32>
    %293 = tpu.matmul %292, %291, %cst_130 {dimension_numbers = #tpu.dot_dimension_numbers<[1], [0], [0], [1], [0, 0, 1, 1], [], []>} : vector<9x32xbf16>, vector<32x32xbf16>, vector<9x32xf32> -> vector<9x32xf32>
    %c1_131 = arith.constant 1 : index
    %c0_132 = arith.constant 0 : index
    %c0_133 = arith.constant 0 : index
    %294 = vector.load %arg7[%c1_131, %c0_132, %c0_133] : memref<2x1x32xf32, #tpu.memory_space<vmem>>, vector<1x1x32xf32>
    %295 = vector.shape_cast %294 : vector<1x1x32xf32> to vector<1x32xf32>
    %296 = vector.broadcast %295 : vector<1x32xf32> to vector<9x32xf32>
    %297 = arith.addf %293, %296 : vector<9x32xf32>
    %c1_134 = arith.constant 1 : index
    %c0_135 = arith.constant 0 : index
    %c0_136 = arith.constant 0 : index
    %298 = vector.load %arg8[%c1_134, %c0_135, %c0_136] : memref<2x32x32xbf16, #tpu.memory_space<vmem>>, vector<1x32x32xbf16>
    %299 = vector.shape_cast %298 : vector<1x32x32xbf16> to vector<32x32xbf16>
    %300 = arith.truncf %297 : vector<9x32xf32> to vector<9x32xbf16>
    %cst_137 = arith.constant dense<0.000000e+00> : vector<9x32xf32>
    %301 = tpu.matmul %300, %299, %cst_137 {dimension_numbers = #tpu.dot_dimension_numbers<[1], [0], [0], [1], [0, 0, 1, 1], [], []>} : vector<9x32xbf16>, vector<32x32xbf16>, vector<9x32xf32> -> vector<9x32xf32>
    %c1_138 = arith.constant 1 : index
    %c0_139 = arith.constant 0 : index
    %c0_140 = arith.constant 0 : index
    %302 = vector.load %arg9[%c1_138, %c0_139, %c0_140] : memref<2x1x32xf32, #tpu.memory_space<vmem>>, vector<1x1x32xf32>
    %303 = vector.shape_cast %302 : vector<1x1x32xf32> to vector<1x32xf32>
    %304 = vector.broadcast %303 : vector<1x32xf32> to vector<9x32xf32>
    %305 = arith.addf %301, %304 : vector<9x32xf32>
    %c1_141 = arith.constant 1 : index
    %c0_142 = arith.constant 0 : index
    %c0_143 = arith.constant 0 : index
    %306 = vector.load %arg10[%c1_141, %c0_142, %c0_143] : memref<2x32x32xbf16, #tpu.memory_space<vmem>>, vector<1x32x32xbf16>
    %307 = vector.shape_cast %306 : vector<1x32x32xbf16> to vector<32x32xbf16>
    %308 = arith.truncf %297 : vector<9x32xf32> to vector<9x32xbf16>
    %cst_144 = arith.constant dense<0.000000e+00> : vector<9x32xf32>
    %309 = tpu.matmul %308, %307, %cst_144 {dimension_numbers = #tpu.dot_dimension_numbers<[1], [0], [0], [1], [0, 0, 1, 1], [], []>} : vector<9x32xbf16>, vector<32x32xbf16>, vector<9x32xf32> -> vector<9x32xf32>
    %c1_145 = arith.constant 1 : index
    %c0_146 = arith.constant 0 : index
    %c0_147 = arith.constant 0 : index
    %310 = vector.load %arg11[%c1_145, %c0_146, %c0_147] : memref<2x1x32xf32, #tpu.memory_space<vmem>>, vector<1x1x32xf32>
    %311 = vector.shape_cast %310 : vector<1x1x32xf32> to vector<1x32xf32>
    %312 = vector.broadcast %311 : vector<1x32xf32> to vector<9x32xf32>
    %313 = arith.addf %309, %312 : vector<9x32xf32>
    %c1_148 = arith.constant 1 : index
    %c0_149 = arith.constant 0 : index
    %c0_150 = arith.constant 0 : index
    %314 = vector.load %arg12[%c1_148, %c0_149, %c0_150] : memref<2x32x32xbf16, #tpu.memory_space<vmem>>, vector<1x32x32xbf16>
    %315 = vector.shape_cast %314 : vector<1x32x32xbf16> to vector<32x32xbf16>
    %316 = arith.truncf %297 : vector<9x32xf32> to vector<9x32xbf16>
    %cst_151 = arith.constant dense<0.000000e+00> : vector<9x32xf32>
    %317 = tpu.matmul %316, %315, %cst_151 {dimension_numbers = #tpu.dot_dimension_numbers<[1], [0], [0], [1], [0, 0, 1, 1], [], []>} : vector<9x32xbf16>, vector<32x32xbf16>, vector<9x32xf32> -> vector<9x32xf32>
    %c1_152 = arith.constant 1 : index
    %c0_153 = arith.constant 0 : index
    %c0_154 = arith.constant 0 : index
    %318 = vector.load %arg13[%c1_152, %c0_153, %c0_154] : memref<2x1x32xf32, #tpu.memory_space<vmem>>, vector<1x1x32xf32>
    %319 = vector.shape_cast %318 : vector<1x1x32xf32> to vector<1x32xf32>
    %320 = vector.broadcast %319 : vector<1x32xf32> to vector<9x32xf32>
    %321 = arith.addf %317, %320 : vector<9x32xf32>
    %322 = arith.truncf %305 : vector<9x32xf32> to vector<9x32xbf16>
    %323 = arith.truncf %313 : vector<9x32xf32> to vector<9x32xbf16>
    %324 = arith.truncf %321 : vector<9x32xf32> to vector<9x32xbf16>
    %c1_155 = arith.constant 1 : index
    %c0_156 = arith.constant 0 : index
    %c0_157 = arith.constant 0 : index
    %325 = vector.load %arg14[%c1_155, %c0_156, %c0_157] : memref<2x32x32xbf16, #tpu.memory_space<vmem>>, vector<1x32x32xbf16>
    %326 = vector.shape_cast %325 : vector<1x32x32xbf16> to vector<32x32xbf16>
    %cst_158 = arith.constant 0.000000e+00 : f32
    %327 = vector.broadcast %cst_158 : f32 to vector<9x32xf32>
    %328 = vector.extract_strided_slice %322 {offsets = [0, 0], sizes = [9, 8], strides = [1, 1]} : vector<9x32xbf16> to vector<9x8xbf16>
    %329 = vector.extract_strided_slice %323 {offsets = [0, 0], sizes = [9, 8], strides = [1, 1]} : vector<9x32xbf16> to vector<9x8xbf16>
    %cst_159 = arith.constant dense<0.000000e+00> : vector<9x9xf32>
    %330 = tpu.matmul %328, %329, %cst_159 {dimension_numbers = #tpu.dot_dimension_numbers<[1], [1], [0], [0], [0, 0, 1, 0], [], []>} : vector<9x8xbf16>, vector<9x8xbf16>, vector<9x9xf32> -> vector<9x9xf32>
    %cst_160 = arith.constant 0.353553385 : f32
    %331 = vector.broadcast %cst_160 : f32 to vector<9x9xf32>
    %332 = arith.mulf %330, %331 : vector<9x9xf32>
    %cst_161 = arith.constant dense<0xFF800000> : vector<9xf32>
    %333 = vector.multi_reduction <maximumf>, %332, %cst_161 [1] : vector<9x9xf32> to vector<9xf32>
    %334 = vector.shape_cast %333 : vector<9xf32> to vector<9x1xf32>
    %335 = vector.broadcast %334 : vector<9x1xf32> to vector<9x9xf32>
    %336 = arith.subf %332, %335 : vector<9x9xf32>
    %337 = math.exp %336 : vector<9x9xf32>
    %cst_162 = arith.constant dense<0.000000e+00> : vector<9xf32>
    %338 = vector.multi_reduction <add>, %337, %cst_162 [1] : vector<9x9xf32> to vector<9xf32>
    %339 = vector.shape_cast %338 : vector<9xf32> to vector<9x1xf32>
    %340 = tpu.reciprocal %339 {approx = true} : vector<9x1xf32> -> vector<9x1xf32>
    %341 = vector.broadcast %340 : vector<9x1xf32> to vector<9x9xf32>
    %342 = arith.mulf %337, %341 : vector<9x9xf32>
    %343 = vector.extract_strided_slice %324 {offsets = [0, 0], sizes = [9, 8], strides = [1, 1]} : vector<9x32xbf16> to vector<9x8xbf16>
    %344 = arith.truncf %342 : vector<9x9xf32> to vector<9x9xbf16>
    %cst_163 = arith.constant dense<0.000000e+00> : vector<9x8xf32>
    %345 = tpu.matmul %344, %343, %cst_163 {dimension_numbers = #tpu.dot_dimension_numbers<[1], [0], [0], [1], [0, 0, 1, 1], [], []>} : vector<9x9xbf16>, vector<9x8xbf16>, vector<9x8xf32> -> vector<9x8xf32>
    %346 = vector.extract_strided_slice %326 {offsets = [0, 0], sizes = [8, 32], strides = [1, 1]} : vector<32x32xbf16> to vector<8x32xbf16>
    %347 = arith.truncf %345 : vector<9x8xf32> to vector<9x8xbf16>
    %cst_164 = arith.constant dense<0.000000e+00> : vector<9x32xf32>
    %348 = tpu.matmul %347, %346, %cst_164 {dimension_numbers = #tpu.dot_dimension_numbers<[1], [0], [0], [1], [0, 0, 1, 1], [], []>} : vector<9x8xbf16>, vector<8x32xbf16>, vector<9x32xf32> -> vector<9x32xf32>
    %349 = arith.addf %327, %348 : vector<9x32xf32>
    %350 = vector.extract_strided_slice %322 {offsets = [0, 8], sizes = [9, 8], strides = [1, 1]} : vector<9x32xbf16> to vector<9x8xbf16>
    %351 = vector.extract_strided_slice %323 {offsets = [0, 8], sizes = [9, 8], strides = [1, 1]} : vector<9x32xbf16> to vector<9x8xbf16>
    %cst_165 = arith.constant dense<0.000000e+00> : vector<9x9xf32>
    %352 = tpu.matmul %350, %351, %cst_165 {dimension_numbers = #tpu.dot_dimension_numbers<[1], [1], [0], [0], [0, 0, 1, 0], [], []>} : vector<9x8xbf16>, vector<9x8xbf16>, vector<9x9xf32> -> vector<9x9xf32>
    %cst_166 = arith.constant 0.353553385 : f32
    %353 = vector.broadcast %cst_166 : f32 to vector<9x9xf32>
    %354 = arith.mulf %352, %353 : vector<9x9xf32>
    %cst_167 = arith.constant dense<0xFF800000> : vector<9xf32>
    %355 = vector.multi_reduction <maximumf>, %354, %cst_167 [1] : vector<9x9xf32> to vector<9xf32>
    %356 = vector.shape_cast %355 : vector<9xf32> to vector<9x1xf32>
    %357 = vector.broadcast %356 : vector<9x1xf32> to vector<9x9xf32>
    %358 = arith.subf %354, %357 : vector<9x9xf32>
    %359 = math.exp %358 : vector<9x9xf32>
    %cst_168 = arith.constant dense<0.000000e+00> : vector<9xf32>
    %360 = vector.multi_reduction <add>, %359, %cst_168 [1] : vector<9x9xf32> to vector<9xf32>
    %361 = vector.shape_cast %360 : vector<9xf32> to vector<9x1xf32>
    %362 = tpu.reciprocal %361 {approx = true} : vector<9x1xf32> -> vector<9x1xf32>
    %363 = vector.broadcast %362 : vector<9x1xf32> to vector<9x9xf32>
    %364 = arith.mulf %359, %363 : vector<9x9xf32>
    %365 = vector.extract_strided_slice %324 {offsets = [0, 8], sizes = [9, 8], strides = [1, 1]} : vector<9x32xbf16> to vector<9x8xbf16>
    %366 = arith.truncf %364 : vector<9x9xf32> to vector<9x9xbf16>
    %cst_169 = arith.constant dense<0.000000e+00> : vector<9x8xf32>
    %367 = tpu.matmul %366, %365, %cst_169 {dimension_numbers = #tpu.dot_dimension_numbers<[1], [0], [0], [1], [0, 0, 1, 1], [], []>} : vector<9x9xbf16>, vector<9x8xbf16>, vector<9x8xf32> -> vector<9x8xf32>
    %368 = vector.extract_strided_slice %326 {offsets = [8, 0], sizes = [8, 32], strides = [1, 1]} : vector<32x32xbf16> to vector<8x32xbf16>
    %369 = arith.truncf %367 : vector<9x8xf32> to vector<9x8xbf16>
    %cst_170 = arith.constant dense<0.000000e+00> : vector<9x32xf32>
    %370 = tpu.matmul %369, %368, %cst_170 {dimension_numbers = #tpu.dot_dimension_numbers<[1], [0], [0], [1], [0, 0, 1, 1], [], []>} : vector<9x8xbf16>, vector<8x32xbf16>, vector<9x32xf32> -> vector<9x32xf32>
    %371 = arith.addf %349, %370 : vector<9x32xf32>
    %372 = vector.extract_strided_slice %322 {offsets = [0, 16], sizes = [9, 8], strides = [1, 1]} : vector<9x32xbf16> to vector<9x8xbf16>
    %373 = vector.extract_strided_slice %323 {offsets = [0, 16], sizes = [9, 8], strides = [1, 1]} : vector<9x32xbf16> to vector<9x8xbf16>
    %cst_171 = arith.constant dense<0.000000e+00> : vector<9x9xf32>
    %374 = tpu.matmul %372, %373, %cst_171 {dimension_numbers = #tpu.dot_dimension_numbers<[1], [1], [0], [0], [0, 0, 1, 0], [], []>} : vector<9x8xbf16>, vector<9x8xbf16>, vector<9x9xf32> -> vector<9x9xf32>
    %cst_172 = arith.constant 0.353553385 : f32
    %375 = vector.broadcast %cst_172 : f32 to vector<9x9xf32>
    %376 = arith.mulf %374, %375 : vector<9x9xf32>
    %cst_173 = arith.constant dense<0xFF800000> : vector<9xf32>
    %377 = vector.multi_reduction <maximumf>, %376, %cst_173 [1] : vector<9x9xf32> to vector<9xf32>
    %378 = vector.shape_cast %377 : vector<9xf32> to vector<9x1xf32>
    %379 = vector.broadcast %378 : vector<9x1xf32> to vector<9x9xf32>
    %380 = arith.subf %376, %379 : vector<9x9xf32>
    %381 = math.exp %380 : vector<9x9xf32>
    %cst_174 = arith.constant dense<0.000000e+00> : vector<9xf32>
    %382 = vector.multi_reduction <add>, %381, %cst_174 [1] : vector<9x9xf32> to vector<9xf32>
    %383 = vector.shape_cast %382 : vector<9xf32> to vector<9x1xf32>
    %384 = tpu.reciprocal %383 {approx = true} : vector<9x1xf32> -> vector<9x1xf32>
    %385 = vector.broadcast %384 : vector<9x1xf32> to vector<9x9xf32>
    %386 = arith.mulf %381, %385 : vector<9x9xf32>
    %387 = vector.extract_strided_slice %324 {offsets = [0, 16], sizes = [9, 8], strides = [1, 1]} : vector<9x32xbf16> to vector<9x8xbf16>
    %388 = arith.truncf %386 : vector<9x9xf32> to vector<9x9xbf16>
    %cst_175 = arith.constant dense<0.000000e+00> : vector<9x8xf32>
    %389 = tpu.matmul %388, %387, %cst_175 {dimension_numbers = #tpu.dot_dimension_numbers<[1], [0], [0], [1], [0, 0, 1, 1], [], []>} : vector<9x9xbf16>, vector<9x8xbf16>, vector<9x8xf32> -> vector<9x8xf32>
    %390 = vector.extract_strided_slice %326 {offsets = [16, 0], sizes = [8, 32], strides = [1, 1]} : vector<32x32xbf16> to vector<8x32xbf16>
    %391 = arith.truncf %389 : vector<9x8xf32> to vector<9x8xbf16>
    %cst_176 = arith.constant dense<0.000000e+00> : vector<9x32xf32>
    %392 = tpu.matmul %391, %390, %cst_176 {dimension_numbers = #tpu.dot_dimension_numbers<[1], [0], [0], [1], [0, 0, 1, 1], [], []>} : vector<9x8xbf16>, vector<8x32xbf16>, vector<9x32xf32> -> vector<9x32xf32>
    %393 = arith.addf %371, %392 : vector<9x32xf32>
    %394 = vector.extract_strided_slice %322 {offsets = [0, 24], sizes = [9, 8], strides = [1, 1]} : vector<9x32xbf16> to vector<9x8xbf16>
    %395 = vector.extract_strided_slice %323 {offsets = [0, 24], sizes = [9, 8], strides = [1, 1]} : vector<9x32xbf16> to vector<9x8xbf16>
    %cst_177 = arith.constant dense<0.000000e+00> : vector<9x9xf32>
    %396 = tpu.matmul %394, %395, %cst_177 {dimension_numbers = #tpu.dot_dimension_numbers<[1], [1], [0], [0], [0, 0, 1, 0], [], []>} : vector<9x8xbf16>, vector<9x8xbf16>, vector<9x9xf32> -> vector<9x9xf32>
    %cst_178 = arith.constant 0.353553385 : f32
    %397 = vector.broadcast %cst_178 : f32 to vector<9x9xf32>
    %398 = arith.mulf %396, %397 : vector<9x9xf32>
    %cst_179 = arith.constant dense<0xFF800000> : vector<9xf32>
    %399 = vector.multi_reduction <maximumf>, %398, %cst_179 [1] : vector<9x9xf32> to vector<9xf32>
    %400 = vector.shape_cast %399 : vector<9xf32> to vector<9x1xf32>
    %401 = vector.broadcast %400 : vector<9x1xf32> to vector<9x9xf32>
    %402 = arith.subf %398, %401 : vector<9x9xf32>
    %403 = math.exp %402 : vector<9x9xf32>
    %cst_180 = arith.constant dense<0.000000e+00> : vector<9xf32>
    %404 = vector.multi_reduction <add>, %403, %cst_180 [1] : vector<9x9xf32> to vector<9xf32>
    %405 = vector.shape_cast %404 : vector<9xf32> to vector<9x1xf32>
    %406 = tpu.reciprocal %405 {approx = true} : vector<9x1xf32> -> vector<9x1xf32>
    %407 = vector.broadcast %406 : vector<9x1xf32> to vector<9x9xf32>
    %408 = arith.mulf %403, %407 : vector<9x9xf32>
    %409 = vector.extract_strided_slice %324 {offsets = [0, 24], sizes = [9, 8], strides = [1, 1]} : vector<9x32xbf16> to vector<9x8xbf16>
    %410 = arith.truncf %408 : vector<9x9xf32> to vector<9x9xbf16>
    %cst_181 = arith.constant dense<0.000000e+00> : vector<9x8xf32>
    %411 = tpu.matmul %410, %409, %cst_181 {dimension_numbers = #tpu.dot_dimension_numbers<[1], [0], [0], [1], [0, 0, 1, 1], [], []>} : vector<9x9xbf16>, vector<9x8xbf16>, vector<9x8xf32> -> vector<9x8xf32>
    %412 = vector.extract_strided_slice %326 {offsets = [24, 0], sizes = [8, 32], strides = [1, 1]} : vector<32x32xbf16> to vector<8x32xbf16>
    %413 = arith.truncf %411 : vector<9x8xf32> to vector<9x8xbf16>
    %cst_182 = arith.constant dense<0.000000e+00> : vector<9x32xf32>
    %414 = tpu.matmul %413, %412, %cst_182 {dimension_numbers = #tpu.dot_dimension_numbers<[1], [0], [0], [1], [0, 0, 1, 1], [], []>} : vector<9x8xbf16>, vector<8x32xbf16>, vector<9x32xf32> -> vector<9x32xf32>
    %415 = arith.addf %393, %414 : vector<9x32xf32>
    %c1_183 = arith.constant 1 : index
    %c0_184 = arith.constant 0 : index
    %c0_185 = arith.constant 0 : index
    %416 = vector.load %arg15[%c1_183, %c0_184, %c0_185] : memref<2x1x32xf32, #tpu.memory_space<vmem>>, vector<1x1x32xf32>
    %417 = vector.shape_cast %416 : vector<1x1x32xf32> to vector<1x32xf32>
    %418 = vector.broadcast %417 : vector<1x32xf32> to vector<9x32xf32>
    %419 = arith.addf %415, %418 : vector<9x32xf32>
    %420 = arith.addf %419, %246 : vector<9x32xf32>
    %c1_186 = arith.constant 1 : index
    %c0_187 = arith.constant 0 : index
    %c0_188 = arith.constant 0 : index
    %421 = vector.load %arg16[%c1_186, %c0_187, %c0_188] : memref<2x1x32xf32, #tpu.memory_space<vmem>>, vector<1x1x32xf32>
    %422 = vector.shape_cast %421 : vector<1x1x32xf32> to vector<1x32xf32>
    %c1_189 = arith.constant 1 : index
    %c0_190 = arith.constant 0 : index
    %c0_191 = arith.constant 0 : index
    %423 = vector.load %arg17[%c1_189, %c0_190, %c0_191] : memref<2x1x32xf32, #tpu.memory_space<vmem>>, vector<1x1x32xf32>
    %424 = vector.shape_cast %423 : vector<1x1x32xf32> to vector<1x32xf32>
    %cst_192 = arith.constant dense<0.000000e+00> : vector<9xf32>
    %425 = vector.multi_reduction <add>, %420, %cst_192 [1] : vector<9x32xf32> to vector<9xf32>
    %426 = vector.shape_cast %425 : vector<9xf32> to vector<9x1xf32>
    %cst_193 = arith.constant 3.200000e+01 : f32
    %427 = vector.broadcast %cst_193 : f32 to vector<9x1xf32>
    %428 = arith.divf %426, %427 : vector<9x1xf32>
    %429 = vector.broadcast %428 : vector<9x1xf32> to vector<9x32xf32>
    %430 = arith.subf %420, %429 : vector<9x32xf32>
    %431 = arith.mulf %430, %430 : vector<9x32xf32>
    %cst_194 = arith.constant dense<0.000000e+00> : vector<9xf32>
    %432 = vector.multi_reduction <add>, %431, %cst_194 [1] : vector<9x32xf32> to vector<9xf32>
    %433 = vector.shape_cast %432 : vector<9xf32> to vector<9x1xf32>
    %cst_195 = arith.constant 3.200000e+01 : f32
    %434 = vector.broadcast %cst_195 : f32 to vector<9x1xf32>
    %435 = arith.divf %433, %434 : vector<9x1xf32>
    %cst_196 = arith.constant 9.99999997E-7 : f32
    %436 = vector.broadcast %cst_196 : f32 to vector<9x1xf32>
    %437 = arith.addf %435, %436 : vector<9x1xf32>
    %438 = math.rsqrt %437 : vector<9x1xf32>
    %439 = vector.broadcast %438 : vector<9x1xf32> to vector<9x32xf32>
    %440 = arith.mulf %430, %439 : vector<9x32xf32>
    %441 = vector.broadcast %422 : vector<1x32xf32> to vector<9x32xf32>
    %442 = arith.mulf %440, %441 : vector<9x32xf32>
    %443 = vector.broadcast %424 : vector<1x32xf32> to vector<9x32xf32>
    %444 = arith.addf %442, %443 : vector<9x32xf32>
    %c1_197 = arith.constant 1 : index
    %c0_198 = arith.constant 0 : index
    %c0_199 = arith.constant 0 : index
    %445 = vector.load %arg18[%c1_197, %c0_198, %c0_199] : memref<2x32x64xbf16, #tpu.memory_space<vmem>>, vector<1x32x64xbf16>
    %446 = vector.shape_cast %445 : vector<1x32x64xbf16> to vector<32x64xbf16>
    %447 = arith.truncf %444 : vector<9x32xf32> to vector<9x32xbf16>
    %cst_200 = arith.constant dense<0.000000e+00> : vector<9x64xf32>
    %448 = tpu.matmul %447, %446, %cst_200 {dimension_numbers = #tpu.dot_dimension_numbers<[1], [0], [0], [1], [0, 0, 1, 1], [], []>} : vector<9x32xbf16>, vector<32x64xbf16>, vector<9x64xf32> -> vector<9x64xf32>
    %c1_201 = arith.constant 1 : index
    %c0_202 = arith.constant 0 : index
    %c0_203 = arith.constant 0 : index
    %449 = vector.load %arg19[%c1_201, %c0_202, %c0_203] : memref<2x1x64xf32, #tpu.memory_space<vmem>>, vector<1x1x64xf32>
    %450 = vector.shape_cast %449 : vector<1x1x64xf32> to vector<1x64xf32>
    %451 = vector.broadcast %450 : vector<1x64xf32> to vector<9x64xf32>
    %452 = arith.addf %448, %451 : vector<9x64xf32>
    %cst_204 = arith.constant 5.000000e-01 : f32
    %453 = vector.broadcast %cst_204 : f32 to vector<9x64xf32>
    %454 = arith.mulf %453, %452 : vector<9x64xf32>
    %455 = arith.mulf %452, %452 : vector<9x64xf32>
    %456 = arith.mulf %455, %452 : vector<9x64xf32>
    %cst_205 = arith.constant 4.471500e-02 : f32
    %457 = vector.broadcast %cst_205 : f32 to vector<9x64xf32>
    %458 = arith.mulf %457, %456 : vector<9x64xf32>
    %459 = arith.addf %452, %458 : vector<9x64xf32>
    %cst_206 = arith.constant 0.797884583 : f32
    %460 = vector.broadcast %cst_206 : f32 to vector<9x64xf32>
    %461 = arith.mulf %460, %459 : vector<9x64xf32>
    %462 = math.tanh %461 : vector<9x64xf32>
    %cst_207 = arith.constant 1.000000e+00 : f32
    %463 = vector.broadcast %cst_207 : f32 to vector<9x64xf32>
    %464 = arith.addf %463, %462 : vector<9x64xf32>
    %465 = arith.mulf %454, %464 : vector<9x64xf32>
    %c1_208 = arith.constant 1 : index
    %c0_209 = arith.constant 0 : index
    %c0_210 = arith.constant 0 : index
    %466 = vector.load %arg20[%c1_208, %c0_209, %c0_210] : memref<2x64x32xbf16, #tpu.memory_space<vmem>>, vector<1x64x32xbf16>
    %467 = vector.shape_cast %466 : vector<1x64x32xbf16> to vector<64x32xbf16>
    %468 = arith.truncf %465 : vector<9x64xf32> to vector<9x64xbf16>
    %cst_211 = arith.constant dense<0.000000e+00> : vector<9x32xf32>
    %469 = tpu.matmul %468, %467, %cst_211 {dimension_numbers = #tpu.dot_dimension_numbers<[1], [0], [0], [1], [0, 0, 1, 1], [], []>} : vector<9x64xbf16>, vector<64x32xbf16>, vector<9x32xf32> -> vector<9x32xf32>
    %470 = arith.addf %420, %469 : vector<9x32xf32>
    %c1_212 = arith.constant 1 : index
    %c0_213 = arith.constant 0 : index
    %c0_214 = arith.constant 0 : index
    %471 = vector.load %arg21[%c1_212, %c0_213, %c0_214] : memref<2x1x32xf32, #tpu.memory_space<vmem>>, vector<1x1x32xf32>
    %472 = vector.shape_cast %471 : vector<1x1x32xf32> to vector<1x32xf32>
    %473 = vector.broadcast %472 : vector<1x32xf32> to vector<9x32xf32>
    %474 = arith.addf %470, %473 : vector<9x32xf32>
    %c0_215 = arith.constant 0 : index
    %c0_216 = arith.constant 0 : index
    %475 = vector.load %arg22[%c0_215, %c0_216] : memref<1x32xf32, #tpu.memory_space<vmem>>, vector<1x32xf32>
    %c0_217 = arith.constant 0 : index
    %c0_218 = arith.constant 0 : index
    %476 = vector.load %arg23[%c0_217, %c0_218] : memref<1x32xf32, #tpu.memory_space<vmem>>, vector<1x32xf32>
    %cst_219 = arith.constant dense<0.000000e+00> : vector<9xf32>
    %477 = vector.multi_reduction <add>, %474, %cst_219 [1] : vector<9x32xf32> to vector<9xf32>
    %478 = vector.shape_cast %477 : vector<9xf32> to vector<9x1xf32>
    %cst_220 = arith.constant 3.200000e+01 : f32
    %479 = vector.broadcast %cst_220 : f32 to vector<9x1xf32>
    %480 = arith.divf %478, %479 : vector<9x1xf32>
    %481 = vector.broadcast %480 : vector<9x1xf32> to vector<9x32xf32>
    %482 = arith.subf %474, %481 : vector<9x32xf32>
    %483 = arith.mulf %482, %482 : vector<9x32xf32>
    %cst_221 = arith.constant dense<0.000000e+00> : vector<9xf32>
    %484 = vector.multi_reduction <add>, %483, %cst_221 [1] : vector<9x32xf32> to vector<9xf32>
    %485 = vector.shape_cast %484 : vector<9xf32> to vector<9x1xf32>
    %cst_222 = arith.constant 3.200000e+01 : f32
    %486 = vector.broadcast %cst_222 : f32 to vector<9x1xf32>
    %487 = arith.divf %485, %486 : vector<9x1xf32>
    %cst_223 = arith.constant 9.99999997E-7 : f32
    %488 = vector.broadcast %cst_223 : f32 to vector<9x1xf32>
    %489 = arith.addf %487, %488 : vector<9x1xf32>
    %490 = math.rsqrt %489 : vector<9x1xf32>
    %491 = vector.broadcast %490 : vector<9x1xf32> to vector<9x32xf32>
    %492 = arith.mulf %482, %491 : vector<9x32xf32>
    %493 = vector.broadcast %475 : vector<1x32xf32> to vector<9x32xf32>
    %494 = arith.mulf %492, %493 : vector<9x32xf32>
    %495 = vector.broadcast %476 : vector<1x32xf32> to vector<9x32xf32>
    %496 = arith.addf %494, %495 : vector<9x32xf32>
    %c0_224 = arith.constant 0 : index
    %c0_225 = arith.constant 0 : index
    %497 = vector.load %arg24[%c0_224, %c0_225] : memref<32x128xbf16, #tpu.memory_space<vmem>>, vector<32x128xbf16>
    %498 = arith.truncf %496 : vector<9x32xf32> to vector<9x32xbf16>
    %cst_226 = arith.constant dense<0.000000e+00> : vector<9x128xf32>
    %499 = tpu.matmul %498, %497, %cst_226 {dimension_numbers = #tpu.dot_dimension_numbers<[1], [0], [0], [1], [0, 0, 1, 1], [], []>} : vector<9x32xbf16>, vector<32x128xbf16>, vector<9x128xf32> -> vector<9x128xf32>
    %c0_227 = arith.constant 0 : index
    %c0_228 = arith.constant 0 : index
    %500 = vector.load %arg25[%c0_227, %c0_228] : memref<1x128xf32, #tpu.memory_space<vmem>>, vector<1x128xf32>
    %501 = vector.broadcast %500 : vector<1x128xf32> to vector<9x128xf32>
    %502 = arith.addf %499, %501 : vector<9x128xf32>
    %c0_229 = arith.constant 0 : index
    %c0_230 = arith.constant 0 : index
    %503 = vector.load %arg26[%c0_229, %c0_230] : memref<32x128xbf16, #tpu.memory_space<vmem>>, vector<32x128xbf16>
    %504 = arith.truncf %496 : vector<9x32xf32> to vector<9x32xbf16>
    %cst_231 = arith.constant dense<0.000000e+00> : vector<9x128xf32>
    %505 = tpu.matmul %504, %503, %cst_231 {dimension_numbers = #tpu.dot_dimension_numbers<[1], [0], [0], [1], [0, 0, 1, 1], [], []>} : vector<9x32xbf16>, vector<32x128xbf16>, vector<9x128xf32> -> vector<9x128xf32>
    %c0_232 = arith.constant 0 : index
    %c0_233 = arith.constant 0 : index
    %506 = vector.load %arg27[%c0_232, %c0_233] : memref<1x128xf32, #tpu.memory_space<vmem>>, vector<1x128xf32>
    %507 = vector.broadcast %506 : vector<1x128xf32> to vector<9x128xf32>
    %508 = arith.addf %505, %507 : vector<9x128xf32>
    %509 = vector.broadcast %18 : vector<9x1xf32> to vector<9x128xf32>
    %510 = arith.mulf %509, %502 : vector<9x128xf32>
    %cst_234 = arith.constant 1.000000e+00 : f32
    %511 = vector.broadcast %cst_234 : f32 to vector<9x1xf32>
    %512 = arith.subf %511, %18 : vector<9x1xf32>
    %513 = vector.broadcast %512 : vector<9x1xf32> to vector<9x128xf32>
    %514 = arith.mulf %513, %508 : vector<9x128xf32>
    %515 = arith.addf %510, %514 : vector<9x128xf32>
    %516 = arith.negf %515 : vector<9x128xf32>
    %517 = math.exp %516 : vector<9x128xf32>
    %cst_235 = arith.constant 1.000000e+00 : f32
    %518 = vector.broadcast %cst_235 : f32 to vector<9x128xf32>
    %519 = arith.addf %518, %517 : vector<9x128xf32>
    %520 = arith.divf %518, %519 : vector<9x128xf32>
    %c0_236 = arith.constant 0 : index
    %c0_237 = arith.constant 0 : index
    %c0_238 = arith.constant 0 : index
    %521 = vector.load %arg28[%c0_236, %c0_237, %c0_238] : memref<1x9x128xf32, #tpu.memory_space<vmem>>, vector<1x9x128xf32>
    %522 = vector.shape_cast %521 : vector<1x9x128xf32> to vector<9x128xf32>
    %523 = vector.shape_cast %520 : vector<9x128xf32> to vector<1x9x128xf32>
    tpu.vector_store %arg28[%c0_236, %c0_237, %c0_238], %523 {strides = array<i32>} : memref<1x9x128xf32, #tpu.memory_space<vmem>>, vector<1x9x128xf32>,
    return
  }
  func.func @transform_0(%arg0: i32) -> (i32, i32, i32) {
    %c0_i32 = arith.constant 0 : i32
    %c0_i32_0 = arith.constant 0 : i32
    %c0_i32_1 = arith.constant 0 : i32
    return %arg0, %c0_i32, %c0_i32_0 : i32, i32, i32
  }
  func.func @transform_1(%arg0: i32) -> (i32, i32, i32) {
    %c0_i32 = arith.constant 0 : i32
    %c0_i32_0 = arith.constant 0 : i32
    %c0_i32_1 = arith.constant 0 : i32
    %c0_i32_2 = arith.constant 0 : i32
    return %c0_i32, %c0_i32_0, %c0_i32_1 : i32, i32, i32
  }
  func.func @transform_2(%arg0: i32) -> (i32, i32, i32) {
    %c0_i32 = arith.constant 0 : i32
    %c0_i32_0 = arith.constant 0 : i32
    %c0_i32_1 = arith.constant 0 : i32
    %c0_i32_2 = arith.constant 0 : i32
    return %c0_i32, %c0_i32_0, %c0_i32_1 : i32, i32, i32
  }
  func.func @transform_3(%arg0: i32) -> (i32, i32, i32) {
    %c0_i32 = arith.constant 0 : i32
    %c0_i32_0 = arith.constant 0 : i32
    %c0_i32_1 = arith.constant 0 : i32
    %c0_i32_2 = arith.constant 0 : i32
    return %c0_i32, %c0_i32_0, %c0_i32_1 : i32, i32, i32
  }
  func.func @transform_4(%arg0: i32) -> (i32, i32, i32) {
    %c0_i32 = arith.constant 0 : i32
    %c0_i32_0 = arith.constant 0 : i32
    %c0_i32_1 = arith.constant 0 : i32
    %c0_i32_2 = arith.constant 0 : i32
    return %c0_i32, %c0_i32_0, %c0_i32_1 : i32, i32, i32
  }
  func.func @transform_5(%arg0: i32) -> (i32, i32, i32) {
    %c0_i32 = arith.constant 0 : i32
    %c0_i32_0 = arith.constant 0 : i32
    %c0_i32_1 = arith.constant 0 : i32
    %c0_i32_2 = arith.constant 0 : i32
    return %c0_i32, %c0_i32_0, %c0_i32_1 : i32, i32, i32
  }
  func.func @transform_6(%arg0: i32) -> (i32, i32, i32) {
    %c0_i32 = arith.constant 0 : i32
    %c0_i32_0 = arith.constant 0 : i32
    %c0_i32_1 = arith.constant 0 : i32
    %c0_i32_2 = arith.constant 0 : i32
    return %c0_i32, %c0_i32_0, %c0_i32_1 : i32, i32, i32
  }
  func.func @transform_7(%arg0: i32) -> (i32, i32, i32) {
    %c0_i32 = arith.constant 0 : i32
    %c0_i32_0 = arith.constant 0 : i32
    %c0_i32_1 = arith.constant 0 : i32
    %c0_i32_2 = arith.constant 0 : i32
    return %c0_i32, %c0_i32_0, %c0_i32_1 : i32, i32, i32
  }
  func.func @transform_8(%arg0: i32) -> (i32, i32, i32) {
    %c0_i32 = arith.constant 0 : i32
    %c0_i32_0 = arith.constant 0 : i32
    %c0_i32_1 = arith.constant 0 : i32
    %c0_i32_2 = arith.constant 0 : i32
    return %c0_i32, %c0_i32_0, %c0_i32_1 : i32, i32, i32
  }
  func.func @transform_9(%arg0: i32) -> (i32, i32, i32) {
    %c0_i32 = arith.constant 0 : i32
    %c0_i32_0 = arith.constant 0 : i32
    %c0_i32_1 = arith.constant 0 : i32
    %c0_i32_2 = arith.constant 0 : i32
    return %c0_i32, %c0_i32_0, %c0_i32_1 : i32, i32, i32
  }
  func.func @transform_10(%arg0: i32) -> (i32, i32, i32) {
    %c0_i32 = arith.constant 0 : i32
    %c0_i32_0 = arith.constant 0 : i32
    %c0_i32_1 = arith.constant 0 : i32
    %c0_i32_2 = arith.constant 0 : i32
    return %c0_i32, %c0_i32_0, %c0_i32_1 : i32, i32, i32
  }
  func.func @transform_11(%arg0: i32) -> (i32, i32, i32) {
    %c0_i32 = arith.constant 0 : i32
    %c0_i32_0 = arith.constant 0 : i32
    %c0_i32_1 = arith.constant 0 : i32
    %c0_i32_2 = arith.constant 0 : i32
    return %c0_i32, %c0_i32_0, %c0_i32_1 : i32, i32, i32
  }
  func.func @transform_12(%arg0: i32) -> (i32, i32, i32) {
    %c0_i32 = arith.constant 0 : i32
    %c0_i32_0 = arith.constant 0 : i32
    %c0_i32_1 = arith.constant 0 : i32
    %c0_i32_2 = arith.constant 0 : i32
    return %c0_i32, %c0_i32_0, %c0_i32_1 : i32, i32, i32
  }
  func.func @transform_13(%arg0: i32) -> (i32, i32, i32) {
    %c0_i32 = arith.constant 0 : i32
    %c0_i32_0 = arith.constant 0 : i32
    %c0_i32_1 = arith.constant 0 : i32
    %c0_i32_2 = arith.constant 0 : i32
    return %c0_i32, %c0_i32_0, %c0_i32_1 : i32, i32, i32
  }
  func.func @transform_14(%arg0: i32) -> (i32, i32, i32) {
    %c0_i32 = arith.constant 0 : i32
    %c0_i32_0 = arith.constant 0 : i32
    %c0_i32_1 = arith.constant 0 : i32
    %c0_i32_2 = arith.constant 0 : i32
    return %c0_i32, %c0_i32_0, %c0_i32_1 : i32, i32, i32
  }
  func.func @transform_15(%arg0: i32) -> (i32, i32, i32) {
    %c0_i32 = arith.constant 0 : i32
    %c0_i32_0 = arith.constant 0 : i32
    %c0_i32_1 = arith.constant 0 : i32
    %c0_i32_2 = arith.constant 0 : i32
    return %c0_i32, %c0_i32_0, %c0_i32_1 : i32, i32, i32
  }
  func.func @transform_16(%arg0: i32) -> (i32, i32, i32) {
    %c0_i32 = arith.constant 0 : i32
    %c0_i32_0 = arith.constant 0 : i32
    %c0_i32_1 = arith.constant 0 : i32
    %c0_i32_2 = arith.constant 0 : i32
    return %c0_i32, %c0_i32_0, %c0_i32_1 : i32, i32, i32
  }
  func.func @transform_17(%arg0: i32) -> (i32, i32, i32) {
    %c0_i32 = arith.constant 0 : i32
    %c0_i32_0 = arith.constant 0 : i32
    %c0_i32_1 = arith.constant 0 : i32
    %c0_i32_2 = arith.constant 0 : i32
    return %c0_i32, %c0_i32_0, %c0_i32_1 : i32, i32, i32
  }
  func.func @transform_18(%arg0: i32) -> (i32, i32, i32) {
    %c0_i32 = arith.constant 0 : i32
    %c0_i32_0 = arith.constant 0 : i32
    %c0_i32_1 = arith.constant 0 : i32
    %c0_i32_2 = arith.constant 0 : i32
    return %c0_i32, %c0_i32_0, %c0_i32_1 : i32, i32, i32
  }
  func.func @transform_19(%arg0: i32) -> (i32, i32, i32) {
    %c0_i32 = arith.constant 0 : i32
    %c0_i32_0 = arith.constant 0 : i32
    %c0_i32_1 = arith.constant 0 : i32
    %c0_i32_2 = arith.constant 0 : i32
    return %c0_i32, %c0_i32_0, %c0_i32_1 : i32, i32, i32
  }
  func.func @transform_20(%arg0: i32) -> (i32, i32, i32) {
    %c0_i32 = arith.constant 0 : i32
    %c0_i32_0 = arith.constant 0 : i32
    %c0_i32_1 = arith.constant 0 : i32
    %c0_i32_2 = arith.constant 0 : i32
    return %c0_i32, %c0_i32_0, %c0_i32_1 : i32, i32, i32
  }
  func.func @transform_21(%arg0: i32) -> (i32, i32) {
    %c0_i32 = arith.constant 0 : i32
    %c0_i32_0 = arith.constant 0 : i32
    %c0_i32_1 = arith.constant 0 : i32
    return %c0_i32, %c0_i32_0 : i32, i32
  }
  func.func @transform_22(%arg0: i32) -> (i32, i32) {
    %c0_i32 = arith.constant 0 : i32
    %c0_i32_0 = arith.constant 0 : i32
    %c0_i32_1 = arith.constant 0 : i32
    return %c0_i32, %c0_i32_0 : i32, i32
  }
  func.func @transform_23(%arg0: i32) -> (i32, i32) {
    %c0_i32 = arith.constant 0 : i32
    %c0_i32_0 = arith.constant 0 : i32
    %c0_i32_1 = arith.constant 0 : i32
    return %c0_i32, %c0_i32_0 : i32, i32
  }
  func.func @transform_24(%arg0: i32) -> (i32, i32) {
    %c0_i32 = arith.constant 0 : i32
    %c0_i32_0 = arith.constant 0 : i32
    %c0_i32_1 = arith.constant 0 : i32
    return %c0_i32, %c0_i32_0 : i32, i32
  }
  func.func @transform_25(%arg0: i32) -> (i32, i32) {
    %c0_i32 = arith.constant 0 : i32
    %c0_i32_0 = arith.constant 0 : i32
    %c0_i32_1 = arith.constant 0 : i32
    return %c0_i32, %c0_i32_0 : i32, i32
  }
  func.func @transform_26(%arg0: i32) -> (i32, i32) {
    %c0_i32 = arith.constant 0 : i32
    %c0_i32_0 = arith.constant 0 : i32
    %c0_i32_1 = arith.constant 0 : i32
    return %c0_i32, %c0_i32_0 : i32, i32
  }
  func.func @transform_27(%arg0: i32) -> (i32, i32, i32) {
    %c0_i32 = arith.constant 0 : i32
    %c0_i32_0 = arith.constant 0 : i32
    %c0_i32_1 = arith.constant 0 : i32
    return %arg0, %c0_i32, %c0_i32_0 : i32, i32, i32
  }
}

</mosaic_0001>

<bundles_post_ra>
// kernel: msl_transformer_forward.1
= control target key start
LH: loop header
LB: loop body
LE: loop exit
PB: predicated region body
PF: predicated region fallthrough
CT: control target
= control target key end

     0   :  { %s4787_s0 = inlined_call_operand.vmem [shape: f32[2,9,32], index: 0, kind: input, shape index: {}]   ;;  %s4788_s1 = inlined_call_operand.vmem [shape: f32[2,1,32], index: 1, kind: input, shape index: {}]   ;;  %s4789_s2 = inlined_call_operand.vmem [shape: f32[2,1,32], index: 2, kind: input, shape index: {}]   ;;  %s4790_s3 = inlined_call_operand.vmem [shape: f32[2,3,32], index: 3, kind: input, shape index: {}]   ;;  %s4791_s4 = inlined_call_operand.hbm [shape: f32[2,1,32], index: 4, kind: input, shape index: {}]   ;;  %s4792_s5 = inlined_call_operand.vmem [shape: bf16[2,32,32], index: 5, kind: input, shape index: {}]   ;;  %s4793_s6 = inlined_call_operand.vmem [shape: f32[2,1,32], index: 6, kind: input, shape index: {}]   ;;  %s4794_s7 = inlined_call_operand.vmem [shape: bf16[2,32,32], index: 7, kind: input, shape index: {}]   ;;  %s4795_s8 = inlined_call_operand.hbm [shape: f32[2,1,32], index: 8, kind: input, shape index: {}]   ;;  %s4796_s9 = inlined_call_operand.vmem [shape: bf16[2,32,32], index: 9, kind: input, shape index: {}]   ;;  %s4797_s10 = inlined_call_operand.hbm [shape: f32[2,1,32], index: 10, kind: input, shape index: {}]   ;;  %s4798_s11 = inlined_call_operand.vmem [shape: bf16[2,32,32], index: 11, kind: input, shape index: {}]   ;;  %s4799_s12 = inlined_call_operand.hbm [shape: f32[2,1,32], index: 12, kind: input, shape index: {}]   ;;  %s4800_s13 = inlined_call_operand.hbm [shape: bf16[2,32,32], index: 13, kind: input, shape index: {}]   ;;  %s4801_s14 = inlined_call_operand.hbm [shape: f32[2,1,32], index: 14, kind: input, shape index: {}]   ;;  %s4802_s15 = inlined_call_operand.vmem [shape: f32[2,1,32], index: 15, kind: input, shape index: {}]   ;;  %s4803_s16 = inlined_call_operand.hbm [shape: f32[2,1,32], index: 16, kind: input, shape index: {}]   ;;  %s4804_s17 = inlined_call_operand.hbm [shape: bf16[2,32,64], index: 17, kind: input, shape index: {}]   ;;  %s4805_s18 = inlined_call_operand.hbm [shape: f32[2,1,64], index: 18, kind: input, shape index: {}]   ;;  %s4806_s19 = inlined_call_operand.vmem [shape: bf16[2,64,32], index: 19, kind: input, shape index: {}]   ;;  %s4807_s20 = inlined_call_operand.hbm [shape: f32[2,1,32], index: 20, kind: input, shape index: {}]   ;;  %s4808_s21 = inlined_call_operand.vmem [shape: f32[1,32], index: 21, kind: input, shape index: {}]   ;;  %s4809_s22 = inlined_call_operand.vmem [shape: f32[1,32], index: 22, kind: input, shape index: {}]   ;;  %s4810_s23 = inlined_call_operand.vmem [shape: bf16[32,128], index: 23, kind: input, shape index: {}]   ;;  %s4811_s24 = inlined_call_operand.hbm [shape: f32[1,128], index: 24, kind: input, shape index: {}]   ;;  %s4812_s25 = inlined_call_operand.hbm [shape: bf16[32,128], index: 25, kind: input, shape index: {}]   ;;  %s4813_s26 = inlined_call_operand.vmem [shape: f32[1,128], index: 26, kind: input, shape index: {}]   ;;  %s4814_s27 = inlined_call_operand.vmem [shape: f32[2,9,128], index: 27, kind: output, shape index: {}]  }
   0x1   :  { %4831 = sst [smem:[#allocation29_spill]] %s4787_s0 }
   0x2   :  { %4832 = sst [smem:[#allocation30_spill]] %s4788_s1 }
   0x3   :  { %4833 = sst [smem:[#allocation31_spill]] %s4789_s2 }
   0x4   :  { %4834 = sst [smem:[#allocation32_spill]] %s4790_s3 }
   0x5   :  { %4835 = sst [smem:[#allocation33_spill]] %s4791_s4 }
   0x6   :  { %4836 = sst [smem:[#allocation34_spill]] %s4792_s5 }
   0x7   :  { %4837 = sst [smem:[#allocation35_spill]] %s4793_s6 }
   0x8   :  { %4838 = sst [smem:[#allocation36_spill]] %s4794_s7 }
   0x9   :  { %4839 = sst [smem:[#allocation37_spill]] %s4795_s8 }
   0xa   :  { %4840 = sst [smem:[#allocation38_spill]] %s4796_s9 }
   0xb   :  { %4841 = sst [smem:[#allocation39_spill]] %s4797_s10 }
   0xc   :  { %4842 = sst [smem:[#allocation40_spill]] %s4798_s11 }
   0xd   :  { %4843 = sst [smem:[#allocation41_spill]] %s4799_s12 }
   0xe   :  { %4844 = sst [smem:[#allocation42_spill]] %s4801_s14 }
   0xf   :  { %4845 = sst [smem:[#allocation43_spill]] %s4804_s17 }
  0x10   :  { %4846 = sst [smem:[#allocation44_spill]] %s4807_s20 }
  0x11   :  { %4847 = sst [smem:[#allocation45_spill]] %s4814_s27 }
  0x12   :  { %32 = vsyncpa [#allocation3], 0 }
  0x13   :  { %33 = vsyncpa [#allocation5], 0 }
  0x14   :  { %34 = vsyncpa [#allocation8], 0 }
  0x15   :  { %35 = vsyncpa [#allocation11], 0 }
  0x16   :  { %36 = vsyncpa [#allocation14], 0 }
  0x17   :  { %37 = vsyncpa [#allocation17], 0 }
  0x18   :  { %38 = vsyncpa [#allocation20], 0  ;;  %s4236_s7 = smov 0  }
  0x19 LB: > { %4848 = sst [smem:[#allocation28_spill]] %s4072_s7  ;;  %s4242_s4 = sadd.s32 4294967295, %s4072_s7   ;;  %s4072_s7 = sphi %s4236_s7, %s44_s7  }
  0x1a   : > { %p3122_p0 = scmp.ge.s32.totalorder %s4072_s7, 1  ;;  %p647_p1 = scmp.lt.s32.totalorder %s4072_s7, 3 }
  0x1b   : > { %p3494_p2 = scmp.eq.s32.totalorder %s4242_s4, 0  ;;  %s4849_s9 = sld [smem:[#allocation37_spill]] }
  0x1c   : > { %p4250_p3 = pnand %p3122_p0, %p647_p1  ;;  %s4851_s12 = sld [smem:[#allocation41_spill]] }
  0x1d   : > { %s4074_s1 = smov [#allocation4]   ;;  %s4075_s2 = smov [#allocation7]  }
  0x1e   : > { %p3457_p4 = pneg %p4250_p3  ;;  %s692_s6 = sshll.u32 %s4074_s1, 4  ;;  %s693_s6 = int_to_ptr.vmem [resolvable:$true] %s692_s6 }
  0x1f   : > { %s726_s3 = sshll.u32 %s4075_s2, 4  ;;  %s4853_s14 = sld [smem:[#allocation42_spill]]  ;;  %s727_s3 = int_to_ptr.vmem [resolvable:$true] %s726_s3 }
  0x20   : > { %p4261_p5 = pnand %p3494_p2, %p3457_p4  ;;  %s4824_s0 = smov 16  }
  0x21   : > { %s690_s5 = sshll.u32 %s4849_s9, 4  ;;  %s4077_s10 = smov 1   ;;  %s691_s5 = int_to_ptr.hbm [resolvable:$true] %s690_s5 }
  0x22   : > { %s724_s29 = sshll.u32 %s4851_s12, 4  ;;  %s4078_s1 = smov [#allocation10]   ;;  %s725_s29 = int_to_ptr.hbm [resolvable:$true] %s724_s29 }
  0x23   : > { %3463 = dma.hbm_to_vmem [thread:$0]  (!%p4261_p5), %s691_s5, 32, %s693_s6, [#allocation5], %s4824_s0, %s4824_s0, %s4077_s10  }
  0x24   : > { %3469 = dma.hbm_to_vmem [thread:$0]  (!%p4261_p5), %s725_s29, 32, %s727_s3, [#allocation8], %s4824_s0, %s4824_s0, %s4077_s10  }
  0x25   : > { %s752_s9 = sshll.u32 %s4853_s14, 4  ;;  %s754_s2 = sshll.u32 %s4078_s1, 4  ;;  %s753_s9 = int_to_ptr.hbm [resolvable:$true] %s752_s9  ;;  %s755_s2 = int_to_ptr.vmem [resolvable:$true] %s754_s2 }
  0x26   : > { %3475 = dma.hbm_to_vmem [thread:$0]  (!%p4261_p5), %s753_s9, 32, %s755_s2, [#allocation11], %s4824_s0, %s4824_s0, %s4077_s10  }
  0x27   : > { %s4854_s17 = sld [smem:[#allocation43_spill]]  ;;  %s4079_s5 = smov [#allocation13]  }
  0x28   : > { %s785_s6 = sshll.u32 %s4079_s5, 4  ;;  %s4855_s20 = sld [smem:[#allocation44_spill]]  ;;  %s786_s6 = int_to_ptr.vmem [resolvable:$true] %s785_s6 }
  0x29   : > { %s4080_s1 = smov 64   ;;  %s4081_s7 = smov 4  }
  0x2a   : > { %s4082_s9 = smov [#allocation16]   ;;  %s4856_s0 = sld [smem:[#allocation33_spill]] }
  0x2b   : > { %s816_s2 = sshll.u32 %s4082_s9, 4  ;;  %s4857_s14 = smov 16   ;;  %s817_s2 = int_to_ptr.vmem [resolvable:$true] %s816_s2 }
  0x2c   : > { %s4085_s29 = smov [#allocation9]  }
  0x2d   : > { %s783_s12 = sshll.u32 %s4854_s17, 4  ;;  %s838_s17 = sshll.u32 %s4811_s24, 4  ;;  %s784_s12 = int_to_ptr.hbm [resolvable:$true] %s783_s12  ;;  %s839_s17 = int_to_ptr.hbm [resolvable:$true] %s838_s17 }
  0x2e   : > { %s814_s3 = sshll.u32 %s4855_s20, 4  ;;  %s4858_s20 = sld [smem:[#allocation39_spill]]  ;;  %s815_s3 = int_to_ptr.hbm [resolvable:$true] %s814_s3 }
  0x2f   : > { %3481 = dma.hbm_to_vmem [thread:$0]  (!%p4261_p5), %s784_s12, 512, %s786_s6, [#allocation14], %s4080_s1, %s4080_s1, %s4081_s7  }
  0x30   : > { %s667_s5 = sshll.u32 %s4856_s0, 4  ;;  %s4083_s12 = smov [#allocation2]   ;;  %s668_s5 = int_to_ptr.hbm [resolvable:$true] %s667_s5 }
  0x31   : > { %3487 = dma.hbm_to_vmem [thread:$0]  (!%p4261_p5), %s815_s3, 32, %s817_s2, [#allocation17], %s4857_s14, %s4857_s14, %s4077_s10  }
  0x32   : > { %s669_s6 = sshll.u32 %s4083_s12, 4  ;;  %s4084_s0 = smov [#allocation6]   ;;  %s670_s6 = int_to_ptr.vmem [resolvable:$true] %s669_s6 }
  0x33   : > { %3460 = dma.hbm_to_vmem [thread:$0]  (!%p4261_p5), %s668_s5, 32, %s670_s6, [#allocation3], %s4857_s14, %s4857_s14, %s4077_s10  }
  0x34   : > { %s707_s27 = sshll.u32 %s4858_s20, 4  ;;  %s709_s9 = sshll.u32 %s4084_s0, 4  ;;  %s708_s27 = int_to_ptr.hbm [resolvable:$true] %s707_s27  ;;  %s710_s9 = int_to_ptr.vmem [resolvable:$true] %s709_s9 }
  0x35   : > { %s738_s3 = sshll.u32 %s4800_s13, 4  ;;  %s769_s2 = sshll.u32 %s4803_s16, 4  ;;  %s739_s3 = int_to_ptr.hbm [resolvable:$true] %s738_s3  ;;  %s770_s2 = int_to_ptr.hbm [resolvable:$true] %s769_s2 }
  0x36   : > { %3466 = dma.hbm_to_vmem [thread:$0]  (!%p4261_p5), %s708_s27, 32, %s710_s9, [#allocation5], %s4857_s14, %s4857_s14, %s4077_s10  }
  0x37   : > { %s740_s5 = sshll.u32 %s4085_s29, 4  ;;  %s4086_s12 = smov [#allocation12]   ;;  %s741_s5 = int_to_ptr.vmem [resolvable:$true] %s740_s5 }
  0x38   : > { %3472 = dma.hbm_to_vmem [thread:$0]  (!%p4261_p5), %s739_s3, 512, %s741_s5, [#allocation8], %s4080_s1, %s4080_s1, %s4081_s7  }
  0x39   : > { %s771_s6 = sshll.u32 %s4086_s12, 4  ;;  %s797_s27 = sshll.u32 %s4805_s18, 4  ;;  %s772_s6 = int_to_ptr.vmem [resolvable:$true] %s771_s6  ;;  %s798_s27 = int_to_ptr.hbm [resolvable:$true] %s797_s27 }
  0x3a   : > { %3478 = dma.hbm_to_vmem [thread:$0]  (!%p4261_p5), %s770_s2, 32, %s772_s6, [#allocation11], %s4857_s14, %s4857_s14, %s4077_s10  }
  0x3b   : > { %s4087_s3 = smov [#allocation15]   ;;  %s4088_s29 = smov [#allocation18]  }
  0x3c   : > { %s799_s20 = sshll.u32 %s4087_s3, 4  ;;  %s840_s5 = sshll.u32 %s4088_s29, 4  ;;  %s800_s20 = int_to_ptr.vmem [resolvable:$true] %s799_s20  ;;  %s841_s5 = int_to_ptr.vmem [resolvable:$true] %s840_s5 }
  0x3d   : > { %3484 = dma.hbm_to_vmem [thread:$0]  (!%p4261_p5), %s798_s27, 32, %s800_s20, [#allocation14], %s4857_s14, %s4857_s14, %s4077_s10  }
  0x3e   : > { %s849_s2 = sshll.u32 %s4812_s25, 4  ;;  %s4089_s6 = smov [#allocation19]   ;;  %s850_s2 = int_to_ptr.hbm [resolvable:$true] %s849_s2 }
  0x3f   : > { %3490 = dma.hbm_to_vmem [thread:$0]  (!%p4261_p5), %s839_s17, 16, %s841_s5, [#allocation17]  }
  0x40   : > { %s851_s8 = sshll.u32 %s4089_s6, 4  ;;  %878 = sbr.rel (%p4250_p3) target bundleno = 5576 (0x15c8), region = 128  ;;  %s852_s8 = int_to_ptr.vmem [resolvable:$true] %s851_s8 }
  0x41   : > { %3493 = dma.hbm_to_vmem [thread:$0]  (!%p4261_p5), %s850_s2, 256, %s852_s8, [#allocation20], %s4080_s1, %s4080_s1, %s4081_s7  }
  0x45   : > { %4043 = dma.done.wait (%p3494_p2), [#allocation3], 32  }
  0x46   : > { %4045 = vsyncadd (%p3494_p2), [#allocation3], 4294967264 }
  0x47   : > { %4047 = dma.done.wait (%p3494_p2), [#allocation5], 64  }
  0x48   : > { %4049 = vsyncadd (%p3494_p2), [#allocation5], 4294967232 }
  0x49   : > { %4051 = dma.done.wait (%p3494_p2), [#allocation8], 544  }
  0x4a   : > { %4053 = vsyncadd (%p3494_p2), [#allocation8], 4294966752 }
  0x4b   : > { %4055 = dma.done.wait (%p3494_p2), [#allocation11], 64  }
  0x4c   : > { %4057 = vsyncadd (%p3494_p2), [#allocation11], 4294967232 }
  0x4d   : > { %4059 = dma.done.wait (%p3494_p2), [#allocation14], 544  }
  0x4e   : > { %4061 = vsyncadd (%p3494_p2), [#allocation14], 4294966752 }
  0x4f   : > { %4063 = dma.done.wait (%p3494_p2), [#allocation17], 48  }
  0x50   : > { %4065 = vsyncadd (%p3494_p2), [#allocation17], 4294967248 }
  0x51   : > { %4067 = dma.done.wait (%p3494_p2), [#allocation20], 256  }
  0x52   : > { %4069 = vsyncadd (%p3494_p2), [#allocation20], 4294967040  ;;  %p1006_p6 = scmp.lt.s32.totalorder %s4242_s4, 1  ;;  %s4859_s10 = sld [smem:[#allocation29_spill]]  ;;  %vm1052_vm0 = vcmask 253952   ;;  %vm1048_vm1 = vcmask 261120   ;;  %v1019_v31 = vlaneseq }
  0x53   : > { %v4090_v4 = vmov 32.0   ;;  %s4860_s9 = sld [smem:[#allocation30_spill]]  ;;  %vm1119_vm7 = vcmask 1040384   ;;  %v4091_v57 = vmov 0.0   ;;  %vm1112_vm14 = vcmask 72704   ;;  %s4093_s30 = smov 120  }
  0x54   : > { %s4874_s4 = smov (!%p1006_p6, %s4242_s4), 1  ;;  %3576 = vrcp.f32 %v4090_v4  ;;  %v4413_v37 = vshrl.u32 %v1019_v31, 7  ;;  %s4861_s3 = sld [smem:[#allocation31_spill]]  ;;  %v1023_v48 = vand.u32 127, %v1019_v31  ;;  %vm1413_vm15 = vcmask 1043456  }
  0x55   : > { %s4826_s7 = sshll.u32 %s4874_s4, 4  ;;  %s4862_s5 = sld [smem:[#allocation34_spill]] }
  0x56   : > { %v1021_v44 = vadd.s32 8, %v4413_v37  ;;  %v3153_v49 = vadd.s32 4294967295, %v4413_v37  ;;  %v1032_v52 = vadd.s32 1, %v4413_v37  ;;  %s4863_s8 = sld [smem:[#allocation32_spill]]  ;;  %s4829_s17 = smov 104  }
  0x57   : > { %s4865_s27 = sld [smem:[#allocation38_spill]]  ;;  %s4827_s29 = smov 112  }
  0x58   : > { %s1010_s1 = scalar_lea.vmem %s4859_s10, %s4826_s7  ;;  %v3154_v50 = vadd.s32 4294967295, %v1021_v44  ;;  %v1033_v53 = vadd.s32 1, %v1021_v44  ;;  %vm1026_vm10 = vcmp.eq.s32.totalorder %v1023_v48, %v3153_v49  ;;  %vm1034_vm12 = vcmp.eq.s32.totalorder %v1023_v48, %v1032_v52  ;;  %s4864_s10 = sld [smem:[#allocation36_spill]] }
  0x59   : > { %v4392_v0 = vld [vmem:[%s1010_s1 + $0x8] sm:$0x1]  ;;  %v4394_v1 = vld [vmem:[%s1010_s1] sm:$0xff]  ;;  %v4426_v58 = vsel %vm1026_vm10, 1.0, %v4091_v57  ;;  %v4432_v60 = vsel %vm1034_vm12, 1.0, %v4091_v57  ;;  %s4866_s20 = sld [smem:[#allocation40_spill]] }
  0x5a   : > { %v1053_v2 = vsel %vm1052_vm0, %v4392_v0, 0.0  ;;  %v1049_v3 = vsel %vm1048_vm1, %v4394_v1, 0.0  ;;  %v3577_v5 = vpop.eup %3576  ;;  %v3548_v36 = vld [vmem:[%s4860_s9] ss:$0 sm:$0xff]  ;;  %vm1027_vm11 = vcmp.eq.s32.totalorder %v1023_v48, %v3154_v50  ;;  %vm1035_vm13 = vcmp.eq.s32.totalorder %v1023_v48, %v1033_v53  ;;  %s4867_s14 = sld [smem:[#allocation35_spill]] }
  0x5b   : > { %1054 = vadd.xlane.f32.xlu0 %v1053_v2  ;;  %v1057_v6 = vmul.f32 32.0, %v3577_v5  ;;  %vm1061_vm2 = vweird.f32 %v3577_v5  ;;  %v3549_v41 = vld [vmem:[%s4861_s3] ss:$0 sm:$0xff]  ;;  %v4429_v59 = vsel %vm1027_vm11, 1.0, %v4091_v57  ;;  %v4435_v61 = vsel %vm1035_vm13, 1.0, %v4091_v57  ;;  %v3374_v62 = vld [vmem:[%s4862_s5 + $0x8] sm:$0xff] }
  0x5c   : > { %v3373_v63 = vld [vmem:[%s4862_s5] sm:$0xff]  ;;  %vm1888_vm12 = vcmask 523264   ;;  %s4871_s12 = sld [smem:[#allocation45_spill]] }
  0x5d   : > { %v1058_v7 = vsub.f32 1.0, %v1057_v6  ;;  %v1111_v2 = vld [vmem:[%s4863_s8] sm:$0x7] }
  0x5e   : > { %v1178_v6 = vperm.slane %v1111_v2, 1 }
  0x5f   : > { %v1059_v8 = vmul.f32 %v3577_v5, %v1058_v7  ;;  %v1183_v7 = vperm.slane %v1111_v2, 2 }
  0x61   : > { %v1060_v9 = vadd.f32 %v3577_v5, %v1059_v8 }
  0x63   : > { %1050 = vadd.xlane.f32.xlu0 %v1049_v3  ;;  %v4400_v10 = vsel %vm1061_vm2, %v3577_v5, %v1060_v9  ;;  %v1175_v3 = vperm.slane %v1111_v2, 0  ;;  %vm1414_vm2 = vcmask 1044480  }
  0xce   : > { %v1055_v11 = vpop.xlane.xlu0 %1054 }
  0xcf   : > { %v1064_v12 = vmul.f32 %v4400_v10, %v1055_v11 }
  0xd1   : > { %v1066_v13 = vsub.f32 %v4392_v0, %v1064_v12 }
  0xd3   : > { %v1068_v14 = vmul.f32 %v1066_v13, %v1066_v13 }
  0xd5   : > { %v1072_v15 = vsel %vm1052_vm0, %v1068_v14, 0.0 }
  0xd6   : > { %1073 = vadd.xlane.f32.xlu1 %v1072_v15  ;;  %v1051_v16 = vpop.xlane.xlu0 %1050 }
  0xd7   : > { %v1063_v17 = vmul.f32 %v4400_v10, %v1051_v16 }
  0xd9   : > { %v1065_v18 = vsub.f32 %v4394_v1, %v1063_v17 }
  0xdb   : > { %v1067_v19 = vmul.f32 %v1065_v18, %v1065_v18 }
  0xdd   : > { %v1069_v20 = vsel %vm1048_vm1, %v1067_v19, 0.0  ;;  %v3550_v19 = vld [vmem:[#allocation2] ss:$0 sm:$0xff] }
  0xde   : > { %1070 = vadd.xlane.f32.xlu1 %v1069_v20 }
 0x149   : > { %v1074_v21 = vpop.xlane.xlu1 %1073 }
 0x14a   : > { %v1076_v22 = vmul.f32 %v1074_v21, %v4400_v10 }
 0x14c   : > { %v1078_v23 = vadd.f32 1e-06, %v1076_v22 }
 0x14e   : > { %3578 = vrsqrt.f32 %v1078_v23  ;;  %vm1095_vm4 = vweird.f32 %v1078_v23 }
 0x151   : > { %v1071_v24 = vpop.xlane.xlu1 %1070 }
 0x152   : > { %v1075_v25 = vmul.f32 %v1071_v24, %v4400_v10 }
 0x154   : > { %v3579_v26 = vpop.eup %3578  ;;  %v1077_v27 = vadd.f32 1e-06, %v1075_v25  ;;  %v3376_v25 = vld [vmem:[%s4864_s10 + $0x8] sm:$0xff] }
 0x155   : > { %v1090_v28 = vmul.f32 %v3579_v26, %v1078_v23  ;;  %vm1096_vm3 = vweird.f32 %v3579_v26 }
 0x156   : > { %3580 = vrsqrt.f32 %v1077_v27  ;;  %vm1097_vm5 = vmor %vm1095_vm4, %vm1096_vm3  ;;  %vm1085_vm8 = vweird.f32 %v1077_v27  ;;  %vm1358_vm3 = vcmask 64512   ;;  %vm1384_vm4 = vcmask 65536  }
 0x157   : > { %v1091_v29 = vmul.f32 %v3579_v26, %v1090_v28  ;;  %v3375_v28 = vld [vmem:[%s4864_s10] sm:$0xff] }
 0x159   : > { %v1092_v30 = vmul.f32 0.5, %v1091_v29  ;;  %v3377_v29 = vld [vmem:[%s4865_s27] sm:$0xff] }
 0x15b   : > { %v1093_v32 = vsub.f32 1.5, %v1092_v30  ;;  %v3379_v30 = vld [vmem:[%s4866_s20] sm:$0xff] }
 0x15c   : > { %v3581_v33 = vpop.eup %3580 }
 0x15d   : > { %v1094_v34 = vmul.f32 %v3579_v26, %v1093_v32  ;;  %v1080_v35 = vmul.f32 %v3581_v33, %v1077_v27  ;;  %vm1086_vm6 = vweird.f32 %v3581_v33  ;;  %v3380_v27 = vld [vmem:[%s4866_s20 + $0x8] sm:$0xff]  ;;  %v3551_v32 = vld [vmem:[%s4867_s14] ss:$0 sm:$0xff] }
 0x15e   : > { %vm1087_vm9 = vmor %vm1085_vm8, %vm1086_vm6 }
 0x15f   : > { %v1098_v38 = vsel %vm1097_vm5, %v3579_v26, %v1094_v34  ;;  %v1081_v39 = vmul.f32 %v3581_v33, %v1080_v35  ;;  %v3378_v26 = vld [vmem:[%s4865_s27 + $0x8] sm:$0xff] }
 0x160   : > { %v1100_v40 = vmul.f32 %v1098_v38, %v1066_v13 }
 0x161   : > { %v1082_v42 = vmul.f32 0.5, %v1081_v39  ;;  %v3552_v39 = vld [vmem:[#allocation6] ss:$0 sm:$0xff] }
 0x162   : > { %v1105_v43 = vmul.f32 %v3548_v36, %v1100_v40 }
 0x163   : > { %v1083_v45 = vsub.f32 1.5, %v1082_v42 }
 0x164   : > { %v1110_v46 = vadd.f32 %v3549_v41, %v1105_v43 }
 0x165   : > { %v1084_v47 = vmul.f32 %v3581_v33, %v1083_v45 }
 0x166   : > { %3160 = vmatpush.msk.msra.mxu0 %vm1119_vm7, %v1110_v46  ;;  %3405 = vmatpush.msk.msra.mxu2 %vm1119_vm7, %v1110_v46  ;;  %v1180_v15 = vmul.f32 %v1178_v6, %v1110_v46 }
 0x167   : > { %v1088_v51 = vsel %vm1087_vm9, %v3581_v33, %v1084_v47  ;;  %3163 = vmatpush.msk.msra.mxu1 %vm1119_vm7, %v1110_v46  ;;  %3407 = vmatpush.msk.msra.mxu3 %vm1119_vm7, %v1110_v46  ;;  %v3554_v47 = vld [vmem:[#allocation4] ss:$0 sm:$0xff] }
 0x168   : > { %v1099_v54 = vmul.f32 %v1088_v51, %v1065_v18 }
 0x16a   : > { %v1104_v55 = vmul.f32 %v3548_v36, %v1099_v54  ;;  %v4092_v54 = vmov 65535  }
 0x16c   : > { %v1109_v56 = vadd.f32 %v3549_v41, %v1104_v55  ;;  %v3553_v41 = vld [vmem:[#allocation7] ss:$0 sm:$0xff]  ;;  %v1415_v55 = vsel %vm1413_vm15, 4294967295, %v4092_v54 }
 0x16e   : > { %1138 = vmatpush.msra.mxu0 %v1109_v56  ;;  %3406 = vmatpush.msra.mxu2 %v1109_v56  ;;  %v1179_v9 = vmul.f32 %v1178_v6, %v1109_v56 }
 0x16f   : > { %1167 = vmatpush.msra.mxu1 %v1109_v56  ;;  %3408 = vmatpush.msra.mxu3 %v1109_v56 }
 0x170   : > { %3161 = vmatmul.msk.f32.vlgmr.msra.gmra.mxu0 %vm1112_vm14, %v4426_v58  ;;  %3162 = vmatmul.msk.f32.vlgmr.msra.gmra.mxu2 %vm1112_vm14, %v4429_v59 }
 0x171   : > { %3164 = vmatmul.msk.f32.vlgmr.msra.gmra.mxu1 %vm1112_vm14, %v4432_v60  ;;  %3165 = vmatmul.msk.f32.vlgmr.msra.gmra.mxu3 %vm1112_vm14, %v4435_v61 }
 0x172   : > { %1224 = vmatpush.bf16.msrb.mxu2 %v3374_v62  ;;  %1262 = vmatpush.bf16.msrb.mxu3 %v3376_v25 }
 0x173   : > { %1296 = vmatpush.bf16.msrb.mxu0 %v3378_v26  ;;  %1330 = vmatpush.bf16.msrb.mxu1 %v3380_v27 }
 0x176   : > { %1225 = vmatpush.bf16.msrb.mxu2 %v3373_v63  ;;  %1263 = vmatpush.bf16.msrb.mxu3 %v3375_v28 }
 0x177   : > { %1297 = vmatpush.bf16.msrb.mxu0 %v3377_v29  ;;  %1331 = vmatpush.bf16.msrb.mxu1 %v3379_v30 }
 0x1ed   : > { %v1140_v4 = vpop.f32.mrf.mxu0 }
 0x1ee   : > { %v1176_v5 = vmul.f32 %v1175_v3, %v1140_v4  ;;  %v1169_v8 = vpop.f32.mrf.mxu1 }
 0x1ef   : > { %v1184_v12 = vmul.f32 %v1183_v7, %v1169_v8 }
 0x1f0   : > { %v1181_v11 = vadd.f32 %v1179_v9, %v1176_v5 }
 0x1f2   : > { %v1186_v18 = vadd.f32 %v1184_v12, %v1181_v11 }
 0x1f3   : > { %v1143_v13 = vpop.f32.mrf.mxu2 }
 0x1f4   : > { %v1177_v14 = vmul.f32 %v1175_v3, %v1143_v13  ;;  %v1172_v16 = vpop.f32.mrf.mxu3  ;;  %v1192_v22 = vadd.f32 %v3550_v19, %v1186_v18 }
 0x1f5   : > { %v1185_v17 = vmul.f32 %v1183_v7, %v1172_v16  ;;  %v4480_v7 = vsel %vm1414_vm2, %v1415_v55, 0 }
 0x1f6   : > { %v1182_v20 = vadd.f32 %v1180_v15, %v1177_v14 }
 0x1f8   : > { %v1187_v21 = vadd.f32 %v1185_v17, %v1182_v20 }
 0x1fa   : > { %v1193_v23 = vadd.f32 %v3550_v19, %v1187_v21 }
 0x1fc   : > { %v1198_v24 = vpack.c.bf16 %v1193_v23, %v1192_v22 }
 0x1fe   : > { %3174 = vmatmul.msk.bf16.vlgmr.msrb.gmra.mxu2 %vm1048_vm1, %v1198_v24 }
 0x281   : > { %v1227_v31 = vpop.f32.mrf.mxu2 }
 0x282   : > { %v1228_v34 = vadd.f32 %v3551_v32, %v1227_v31 }
 0x289   : > { %v1229_v33 = vpop.f32.mrf.mxu2 }
 0x28a   : > { %v1230_v35 = vadd.f32 %v3551_v32, %v1229_v33 }
 0x28c   : > { %v1236_v36 = vpack.c.bf16 %v1230_v35, %v1228_v34  ;;  %v1344_v35 = vld [vmem:[#allocation9] sm:$0xf] }
 0x28e   : > { %3183 = vmatmul.msk.bf16.vlgmr.msrb.gmra.mxu3 %vm1048_vm1, %v1236_v36  ;;  %3192 = vmatmul.msk.bf16.vlgmr.msrb.gmra.mxu0 %vm1048_vm1, %v1236_v36 }
 0x28f   : > { %3201 = vmatmul.msk.bf16.vlgmr.msrb.gmra.mxu1 %vm1048_vm1, %v1236_v36  ;;  %v1531_v36 = vsel %vm1413_vm15, %v1344_v35, 0 }
 0x30b   : > { %v1299_v38 = vpop.f32.mrf.mxu0 }
 0x30c   : > { %v1333_v40 = vpop.f32.mrf.mxu1  ;;  %v1300_v42 = vadd.f32 %v3552_v39, %v1299_v38 }
 0x30d   : > { %v1334_v43 = vadd.f32 %v3553_v41, %v1333_v40 }
 0x30e   : > { %v1340_v46 = vpack.c.bf16 %v1300_v42, %v1300_v42 }
 0x30f   : > { %v1342_v50 = vpack.c.bf16 %v1334_v43, %v1334_v43 }
 0x310   : > { %v1355_v56 = vunpack.c.l.b16 %v1340_v46 }
 0x311   : > { %v1265_v44 = vpop.f32.mrf.mxu3  ;;  %v1407_v2 = vunpack.c.l.b16 %v1342_v50 }
 0x312   : > { %v1266_v62 = vadd.f32 %v3554_v47, %v1265_v44 }
 0x313   : > { %v1301_v45 = vpop.f32.mrf.mxu0 }
 0x314   : > { %v1302_v48 = vadd.f32 %v3552_v39, %v1301_v45  ;;  %v1335_v49 = vpop.f32.mrf.mxu1  ;;  %v1338_v9 = vpack.c.bf16 %v1266_v62, %v1266_v62 }
 0x315   : > { %v1336_v51 = vadd.f32 %v3553_v41, %v1335_v49 }
 0x316   : > { %v1341_v52 = vpack.c.bf16 %v1302_v48, %v1302_v48  ;;  %v1350_v15 = vunpack.c.l.b16 %v1338_v9 }
 0x317   : > { %v1343_v53 = vpack.c.bf16 %v1336_v51, %v1336_v51 }
 0x318   : > { %v1356_v63 = vunpack.c.l.b16 %v1341_v52 }
 0x319   : > { %v1408_v3 = vunpack.c.l.b16 %v1343_v53  ;;  %v1267_v4 = vpop.f32.mrf.mxu3 }
 0x31a   : > { %v1357_v5 = vpack.c.b16 %v1356_v63, %v1355_v56  ;;  %v1268_v6 = vadd.f32 %v3554_v47, %v1267_v4 }
 0x31b   : > { %v4482_v8 = vpack.c.b16 %v1408_v3, %v1407_v2 }
 0x31c   : > { %v1339_v11 = vpack.c.bf16 %v1268_v6, %v1268_v6  ;;  %v1363_v12 = vsel %vm1358_vm3, %v1357_v5, 0 }
 0x31d   : > { %1372 = vmatpush.bf16.xpose.msra.mxu2 %v1363_v12  ;;  %v1418_v13 = vand.u32 %v4480_v7, %v4482_v8 }
 0x31e   : > { %v1351_v14 = vunpack.c.l.b16 %v1339_v11 }
 0x31f   : > { %1427 = vmatpush.bf16.msra.mxu3 %v1418_v13 }
 0x320   : > { %v1352_v16 = vpack.c.b16 %v1351_v14, %v1350_v15 }
 0x323   : > { %1540 = vmatpush.bf16.msrb.mxu3 %v1531_v36 }
 0x324   : > { %3202 = vmatmul.msk.bf16.vlgmr.msra.gmra.mxu2 %vm1358_vm3, %v1352_v16 }
 0x3a7   : > { %v1374_v17 = vpop.f32.mrf.mxu2 }
 0x3a8   : > { %v1379_v18 = vmul.f32 0.35355338, %v1374_v17 }
 0x3aa   : > { %v1381_v19 = vsel %vm1112_vm14, %v1379_v18, -inf }
 0x3ab   : > { %1382 = vmax.xlane.f32.xlu2 %v1381_v19 }
 0x3af   : > { %v1376_v20 = vpop.f32.mrf.mxu2 }
 0x3b0   : > { %v1380_v21 = vmul.f32 0.35355338, %v1376_v20 }
 0x3b2   : > { %v1385_v22 = vsel %vm1384_vm4, %v1380_v21, -inf }
 0x3b3   : > { %1386 = vmax.xlane.f32.xlu2 %v1385_v22 }
 0x3cb   : > { %1437 = vrot.lane.b32.xlu2 %v1357_v5, %s4093_s30 }
 0x3d3   : > { %1643 = vrot.lane.b32.xlu2 %v1357_v5, %s4829_s17 }
 0x3db   : > { %1641 = vrot.lane.b32.xlu2 %v1352_v16, %s4829_s17 }
 0x41e   : > { %v1383_v23 = vpop.xlane.xlu2 %1382 }
 0x41f   : > { %v1388_v24 = vsub.f32 %v1379_v18, %v1383_v23 }
 0x421   : > { %v1390_v25 = vmul.f32 1.442695, %v1388_v24 }
 0x423   : > { %3582 = vpow2.f32 %v1390_v25 }
 0x426   : > { %v1387_v26 = vpop.xlane.xlu2 %1386 }
 0x427   : > { %v1389_v27 = vsub.f32 %v1380_v21, %v1387_v26 }
 0x429   : > { %v3583_v28 = vpop.eup %3582  ;;  %v1392_v29 = vmul.f32 1.442695, %v1389_v27 }
 0x42a   : > { %v1394_v30 = vsel %vm1112_vm14, %v3583_v28, 0.0 }
 0x42b   : > { %3584 = vpow2.f32 %v1392_v29  ;;  %1395 = vadd.xlane.f32.xlu0 %v1394_v30 }
 0x42e   : > { %v1438_v31 = vpop.permute.xlu2 %1437 }
 0x42f   : > { %v1443_v32 = vsel %vm1358_vm3, %v1438_v31, 0 }
 0x430   : > { %1452 = vmatpush.bf16.xpose.msra.mxu0 %v1443_v32 }
 0x431   : > { %v3585_v33 = vpop.eup %3584 }
 0x432   : > { %v1397_v34 = vsel %vm1384_vm4, %v3585_v33, 0.0 }
 0x433   : > { %1398 = vadd.xlane.f32.xlu1 %v1397_v34 }
 0x436   : > { %v1644_v44 = vpop.permute.xlu2 %1643 }
 0x437   : > { %v1649_v47 = vsel %vm1358_vm3, %v1644_v44, 0 }
 0x43e   : > { %v1642_v11 = vpop.permute.xlu2 %1641 }
 0x43f   : > { %1435 = vrot.lane.b32.xlu0 %v1352_v16, %s4093_s30 }
 0x447   : > { %1547 = vrot.lane.b32.xlu0 %v1352_v16, %s4827_s29 }
 0x44c   : > { %1549 = vrot.lane.b32.xlu1 %v1357_v5, %s4827_s29 }
 0x49e   : > { %v1396_v38 = vpop.xlane.xlu0 %1395 }
 0x49f   : > { %3586 = vrcp.f32 %v1396_v38 }
 0x4a5   : > { %v3587_v40 = vpop.eup %3586 }
 0x4a6   : > { %v1399_v39 = vpop.xlane.xlu1 %1398  ;;  %v1402_v42 = vmul.f32 %v3587_v40, %v3583_v28 }
 0x4a7   : > { %3588 = vrcp.f32 %v1399_v39 }
 0x4ad   : > { %v3589_v41 = vpop.eup %3588 }
 0x4ae   : > { %v1403_v43 = vmul.f32 %v3589_v41, %v3585_v33 }
 0x4b0   : > { %v1404_v45 = vpack.c.bf16 %v1403_v43, %v1402_v42 }
 0x4b1   : > { %v1436_v46 = vpop.permute.xlu0 %1435 }
 0x4b2   : > { %3203 = vmatmul.msk.bf16.vlgmr.msra.gmra.mxu3 %vm1112_vm14, %v1404_v45  ;;  %3204 = vmatmul.msk.bf16.vlgmr.msra.gmra.mxu0 %vm1358_vm3, %v1436_v46 }
 0x4b3   : > { %1658 = vmatpush.bf16.xpose.msra.mxu3 %v1649_v47 }
 0x4b9   : > { %v1548_v50 = vpop.permute.xlu0 %1547 }
 0x4be   : > { %v1550_v48 = vpop.permute.xlu1 %1549 }
 0x4bf   : > { %v1555_v49 = vsel %vm1358_vm3, %v1550_v48, 0 }
 0x4c0   : > { %1564 = vmatpush.bf16.xpose.msrb.mxu0 %v1555_v49 }
 0x4c7   : > { %3208 = vmatmul.msk.bf16.vlgmr.msrb.gmra.mxu0 %vm1358_vm3, %v1548_v50 }
 0x52f   : > { %v1454_v51 = vpop.f32.mrf.mxu0 }
 0x530   : > { %v1459_v52 = vmul.f32 0.35355338, %v1454_v51 }
 0x532   : > { %v1461_v53 = vsel %vm1112_vm14, %v1459_v52, -inf }
 0x533   : > { %1462 = vmax.xlane.f32.xlu1 %v1461_v53 }
 0x535   : > { %v1429_v54 = vpop.f32.mrf.mxu3 }
 0x537   : > { %v1456_v55 = vpop.f32.mrf.mxu0 }
 0x538   : > { %v1460_v56 = vmul.f32 0.35355338, %v1456_v55 }
 0x53a   : > { %v1464_v62 = vsel %vm1384_vm4, %v1460_v56, -inf }
 0x53b   : > { %1465 = vmax.xlane.f32.xlu0 %v1464_v62 }
 0x53d   : > { %v1431_v63 = vpop.f32.mrf.mxu3 }
 0x53e   : > { %v1434_v2 = vpack.c.bf16 %v1431_v63, %v1429_v54 }
 0x540   : > { %3207 = vmatmul.msk.bf16.vlgmr.msrb.gmra.mxu3 %vm1358_vm3, %v1434_v2 }
 0x544   : > { %v1566_v3 = vpop.f32.mrf.mxu0 }
 0x545   : > { %v1571_v4 = vmul.f32 0.35355338, %v1566_v3 }
 0x547   : > { %v1573_v5 = vsel %vm1112_vm14, %v1571_v4, -inf }
 0x548   : > { %1574 = vmax.xlane.f32.xlu2 %v1573_v5 }
 0x54c   : > { %v1568_v6 = vpop.f32.mrf.mxu0 }
 0x54d   : > { %v1572_v9 = vmul.f32 0.35355338, %v1568_v6 }
 0x54f   : > { %v1576_v12 = vsel %vm1384_vm4, %v1572_v9, -inf }
 0x550   : > { %1577 = vmax.xlane.f32.xlu1 %v1576_v12  ;;  %3211 = vmatmul.msk.bf16.vlgmr.msra.gmra.mxu3 %vm1358_vm3, %v1642_v11 }
 0x5a6   : > { %v1463_v13 = vpop.xlane.xlu1 %1462 }
 0x5a7   : > { %v1467_v14 = vsub.f32 %v1459_v52, %v1463_v13 }
 0x5a9   : > { %v1469_v15 = vmul.f32 1.442695, %v1467_v14 }
 0x5ab   : > { %3590 = vpow2.f32 %v1469_v15 }
 0x5ae   : > { %v1466_v24 = vpop.xlane.xlu0 %1465 }
 0x5af   : > { %v1468_v26 = vsub.f32 %v1460_v56, %v1466_v24 }
 0x5b1   : > { %v3591_v16 = vpop.eup %3590  ;;  %v1471_v27 = vmul.f32 1.442695, %v1468_v26 }
 0x5b2   : > { %v1473_v17 = vsel %vm1112_vm14, %v3591_v16, 0.0 }
 0x5b3   : > { %1474 = vadd.xlane.f32.xlu1 %v1473_v17  ;;  %v1345_v17 = vld [vmem:[#allocation9 + $0x4] sm:$0xf] }
 0x5bb   : > { %v1575_v18 = vpop.xlane.xlu2 %1574 }
 0x5bc   : > { %v1579_v19 = vsub.f32 %v1571_v4, %v1575_v18  ;;  %v1511_v18 = vsel %vm1413_vm15, %v1345_v17, 0 }
 0x5bd   : > { %1520 = vmatpush.bf16.msrb.mxu2 %v1511_v18 }
 0x5be   : > { %v1581_v20 = vmul.f32 1.442695, %v1579_v19 }
 0x5c0   : > { %3592 = vpow2.f32 %v1581_v20 }
 0x5c1   : > { %3594 = vpow2.f32 %v1471_v27 }
 0x5c3   : > { %v4512_v21 = vpop.f32.mrf.mxu3  ;;  %v1578_v28 = vpop.xlane.xlu1 %1577 }
 0x5c4   : > { %v1580_v31 = vsub.f32 %v1572_v9, %v1578_v28 }
 0x5c6   : > { %v4514_v22 = vpop.eup %3592  ;;  %v1583_v33 = vmul.f32 1.442695, %v1580_v31 }
 0x5c7   : > { %v1585_v23 = vsel %vm1112_vm14, %v4514_v22, 0.0  ;;  %v3595_v34 = vpop.eup %3594 }
 0x5c8   : > { %1586 = vadd.xlane.f32.xlu1 %v1585_v23  ;;  %3596 = vpow2.f32 %v1583_v33  ;;  %v1476_v38 = vsel %vm1384_vm4, %v3595_v34, 0.0  ;;  %v1346_v23 = vld [vmem:[#allocation9 + $0x8] sm:$0xf] }
 0x5c9   : > { %v1623_v24 = vsel %vm1413_vm15, %v1346_v23, 0 }
 0x5ca   : > { %1632 = vmatpush.bf16.msra.mxu2 %v1623_v24 }
 0x5cb   : > { %v4518_v25 = vpop.f32.mrf.mxu3 }
 0x5ce   : > { %v3597_v40 = vpop.eup %3596 }
 0x5cf   : > { %v1588_v41 = vsel %vm1384_vm4, %v3597_v40, 0.0 }
 0x5d3   : > { %v1660_v29 = vpop.f32.mrf.mxu3 }
 0x5d4   : > { %v1665_v30 = vmul.f32 0.35355338, %v1660_v29 }
 0x5d6   : > { %v1667_v32 = vsel %vm1112_vm14, %v1665_v30, -inf }
 0x5d7   : > { %1668 = vmax.xlane.f32.xlu0 %v1667_v32 }
 0x5db   : > { %v1662_v35 = vpop.f32.mrf.mxu3 }
 0x5dc   : > { %v1666_v36 = vmul.f32 0.35355338, %v1662_v35 }
 0x5de   : > { %v1670_v39 = vsel %vm1384_vm4, %v1666_v36, -inf }
 0x5df   : > { %1477 = vadd.xlane.f32.xlu0 %v1476_v38  ;;  %1671 = vmax.xlane.f32.xlu2 %v1670_v39 }
 0x5e1   : > { %1596 = vrot.lane.b32.xlu1 %v4482_v8, %s4827_s29  ;;  %s4869_s29 = smov 112  }
 0x5e7   : > { %1589 = vadd.xlane.f32.xlu0 %v1588_v41 }
 0x5f7   : > { %1484 = vrot.lane.b32.xlu2 %v4482_v8, %s4093_s30 }
 0x5ff   : > { %1690 = vrot.lane.b32.xlu2 %v4482_v8, %s4829_s17  ;;  %s4868_s17 = smov 104  }
 0x626   : > { %v1475_v42 = vpop.xlane.xlu1 %1474 }
 0x63b   : > { %v1587_v46 = vpop.xlane.xlu1 %1586 }
 0x64a   : > { %v1669_v43 = vpop.xlane.xlu0 %1668 }
 0x64b   : > { %v1673_v44 = vsub.f32 %v1665_v30, %v1669_v43 }
 0x64d   : > { %v1675_v45 = vmul.f32 1.442695, %v1673_v44 }
 0x64f   : > { %3598 = vpow2.f32 %v1675_v45 }
 0x650   : > { %3600 = vrcp.f32 %v1475_v42 }
 0x652   : > { %v1478_v47 = vpop.xlane.xlu0 %1477  ;;  %v1672_v48 = vpop.xlane.xlu2 %1671 }
 0x653   : > { %3602 = vrcp.f32 %v1478_v47  ;;  %v1674_v49 = vsub.f32 %v1666_v36, %v1672_v48  ;;  %v1597_v8 = vpop.permute.xlu1 %1596  ;;  %v1347_v36 = vld [vmem:[#allocation9 + $0xc] sm:$0xf]  ;;  %v3555_v47 = vld [vmem:[#allocation10] ss:$0 sm:$0xff] }
 0x654   : > { %v1602_v2 = vand.u32 %v1597_v8, %v4480_v7  ;;  %v1717_v38 = vsel %vm1413_vm15, %v1347_v36, 0 }
 0x655   : > { %v3599_v50 = vpop.eup %3598  ;;  %v1677_v51 = vmul.f32 1.442695, %v1674_v49 }
 0x656   : > { %v1679_v52 = vsel %vm1112_vm14, %v3599_v50, 0.0  ;;  %v3601_v53 = vpop.eup %3600 }
 0x657   : > { %3604 = vpow2.f32 %v1677_v51  ;;  %1680 = vadd.xlane.f32.xlu0 %v1679_v52  ;;  %v1481_v63 = vmul.f32 %v3601_v53, %v3591_v16 }
 0x659   : > { %v3603_v54 = vpop.eup %3602 }
 0x65a   : > { %v1482_v55 = vmul.f32 %v3603_v54, %v3595_v34  ;;  %v1485_v56 = vpop.permute.xlu2 %1484  ;;  %v1590_v5 = vpop.xlane.xlu0 %1589 }
 0x65b   : > { %v1490_v62 = vand.u32 %v1485_v56, %v4480_v7  ;;  %3606 = vrcp.f32 %v1590_v5 }
 0x65c   : > { %v1483_v4 = vpack.c.bf16 %v1482_v55, %v1481_v63  ;;  %3608 = vrcp.f32 %v1587_v46 }
 0x65d   : > { %v3605_v3 = vpop.eup %3604  ;;  %1499 = vmatpush.bf16.msra.mxu1 %v1490_v62 }
 0x65e   : > { %v1682_v6 = vsel %vm1384_vm4, %v3605_v3, 0.0 }
 0x65f   : > { %1683 = vadd.xlane.f32.xlu0 %v1682_v6 }
 0x660   : > { %3205 = vmatmul.msk.bf16.vlgmr.msra.gmra.mxu1 %vm1112_vm14, %v1483_v4 }
 0x661   : > { %1611 = vmatpush.bf16.msrb.mxu1 %v1602_v2  ;;  %v3607_v12 = vpop.eup %3606 }
 0x662   : > { %v1691_v9 = vpop.permute.xlu2 %1690  ;;  %v3609_v13 = vpop.eup %3608  ;;  %v1594_v14 = vmul.f32 %v3607_v12, %v3597_v40  ;;  %v3382_v12 = vld [vmem:[#allocation13 + $0x8] sm:$0xff] }
 0x663   : > { %v1696_v11 = vand.u32 %v1691_v9, %v4480_v7  ;;  %v1593_v15 = vmul.f32 %v3609_v13, %v4514_v22 }
 0x665   : > { %1705 = vmatpush.bf16.msra.mxu0 %v1696_v11  ;;  %v1595_v16 = vpack.c.bf16 %v1594_v14, %v1593_v15  ;;  %1726 = vmatpush.bf16.msra.mxu1 %v1717_v38 }
 0x670   : > { %3209 = vmatmul.msk.bf16.vlgmr.msrb.gmra.mxu1 %vm1112_vm14, %v1595_v16  ;;  %v3381_v16 = vld [vmem:[#allocation13] sm:$0xff] }
 0x6ca   : > { %v1681_v19 = vpop.xlane.xlu0 %1680 }
 0x6cb   : > { %3610 = vrcp.f32 %v1681_v19 }
 0x6d1   : > { %v3611_v26 = vpop.eup %3610 }
 0x6d2   : > { %v1684_v20 = vpop.xlane.xlu0 %1683  ;;  %v1687_v28 = vmul.f32 %v3611_v26, %v3599_v50 }
 0x6d3   : > { %3612 = vrcp.f32 %v1684_v20 }
 0x6d9   : > { %v3613_v27 = vpop.eup %3612 }
 0x6da   : > { %v1688_v29 = vmul.f32 %v3613_v27, %v3605_v3 }
 0x6dc   : > { %v1689_v22 = vpack.c.bf16 %v1688_v29, %v1687_v28 }
 0x6dd   : > { %v1501_v30 = vpop.f32.mrf.mxu1 }
 0x6de   : > { %3212 = vmatmul.msk.bf16.vlgmr.msra.gmra.mxu0 %vm1112_vm14, %v1689_v22 }
 0x6e5   : > { %v1503_v31 = vpop.f32.mrf.mxu1 }
 0x6e6   : > { %v1506_v32 = vpack.c.bf16 %v1503_v31, %v1501_v30 }
 0x6e8   : > { %3206 = vmatmul.msk.bf16.vlgmr.msrb.gmra.mxu2 %vm1358_vm3, %v1506_v32 }
 0x6e9   : > { %1829 = vmatpush.bf16.msrb.mxu2 %v3382_v12 }
 0x6ed   : > { %v1613_v33 = vpop.f32.mrf.mxu1  ;;  %1830 = vmatpush.bf16.msrb.mxu2 %v3381_v16 }
 0x6f5   : > { %v1615_v34 = vpop.f32.mrf.mxu1 }
 0x6f6   : > { %v1618_v35 = vpack.c.bf16 %v1615_v34, %v1613_v33  ;;  %v3556_v34 = vld [vmem:[%s4802_s15] ss:$0 sm:$0xff] }
 0x6f8   : > { %3210 = vmatmul.msk.bf16.vlgmr.msra.gmra.mxu2 %vm1358_vm3, %v1618_v35 }
 0x75b   : > { %v1707_v39 = vpop.f32.mrf.mxu0 }
 0x763   : > { %v1709_v40 = vpop.f32.mrf.mxu0 }
 0x764   : > { %v1712_v41 = vpack.c.bf16 %v1709_v40, %v1707_v39  ;;  %v3557_v39 = vld [vmem:[#allocation12] ss:$0 sm:$0xff] }
 0x766   : > { %3213 = vmatmul.msk.bf16.vlgmr.msra.gmra.mxu1 %vm1358_vm3, %v1712_v41 }
 0x76b   : > { %v1522_v42 = vpop.f32.mrf.mxu2 }
 0x76c   : > { %v1543_v45 = vadd.f32 %v4512_v21, %v1522_v42 }
 0x773   : > { %v1524_v43 = vpop.f32.mrf.mxu2 }
 0x774   : > { %v1545_v52 = vadd.f32 %v4518_v25, %v1524_v43 }
 0x77b   : > { %v1634_v44 = vpop.f32.mrf.mxu2 }
 0x77c   : > { %v1639_v46 = vadd.f32 %v1634_v44, %v1543_v45 }
 0x783   : > { %v1636_v51 = vpop.f32.mrf.mxu2 }
 0x784   : > { %v1640_v54 = vadd.f32 %v1636_v51, %v1545_v52 }
 0x7e3   : > { %v1728_v48 = vpop.f32.mrf.mxu1 }
 0x7e4   : > { %v1733_v49 = vadd.f32 %v1728_v48, %v1639_v46  ;;  %v3386_v46 = vld [vmem:[%s4806_s19 + $0x18] sm:$0xff]  ;;  %v3384_v48 = vld [vmem:[%s4806_s19 + $0x8] sm:$0xff] }
 0x7e5   : > { %1896 = vmatpush.bf16.msrb.mxu3 %v3386_v46 }
 0x7e6   : > { %v1739_v50 = vadd.f32 %v3555_v47, %v1733_v49  ;;  %v3558_v49 = vld [vmem:[#allocation15] ss:$0 sm:$0xff] }
 0x7e8   : > { %v4548_v53 = vadd.f32 %v1739_v50, %v4394_v1  ;;  %v3383_v50 = vld [vmem:[%s4806_s19] sm:$0xff] }
 0x7ea   : > { %v1745_v8 = vsel %vm1048_vm1, %v4548_v53, 0.0 }
 0x7eb   : > { %1746 = vadd.xlane.f32.xlu0 %v1745_v8  ;;  %v1730_v55 = vpop.f32.mrf.mxu1 }
 0x7ec   : > { %v1734_v56 = vadd.f32 %v1730_v55, %v1640_v54 }
 0x7ee   : > { %v1740_v62 = vadd.f32 %v3555_v47, %v1734_v56  ;;  %v3385_v47 = vld [vmem:[%s4806_s19 + $0x10] sm:$0xff] }
 0x7ef   : > { %1897 = vmatpush.bf16.msrb.mxu3 %v3385_v47 }
 0x7f0   : > { %v4553_v21 = vadd.f32 %v1740_v62, %v4392_v0 }
 0x7f2   : > { %v1748_v63 = vsel %vm1052_vm0, %v4553_v21, 0.0 }
 0x7f3   : > { %1749 = vadd.xlane.f32.xlu2 %v1748_v63  ;;  %1898 = vmatpush.bf16.msrb.mxu3 %v3384_v48 }
 0x7f7   : > { %1899 = vmatpush.bf16.msrb.mxu3 %v3383_v50 }
 0x85e   : > { %v1747_v2 = vpop.xlane.xlu0 %1746 }
 0x85f   : > { %v1751_v25 = vmul.f32 %v1747_v2, %v4400_v10 }
 0x861   : > { %v1753_v1 = vsub.f32 %v4548_v53, %v1751_v25 }
 0x863   : > { %v1755_v3 = vmul.f32 %v1753_v1, %v1753_v1 }
 0x865   : > { %v1757_v4 = vsel %vm1048_vm1, %v1755_v3, 0.0 }
 0x866   : > { %1758 = vadd.xlane.f32.xlu1 %v1757_v4  ;;  %v1750_v5 = vpop.xlane.xlu2 %1749 }
 0x867   : > { %v1752_v6 = vmul.f32 %v1750_v5, %v4400_v10 }
 0x869   : > { %v1754_v9 = vsub.f32 %v4553_v21, %v1752_v6 }
 0x86b   : > { %v1756_v0 = vmul.f32 %v1754_v9, %v1754_v9 }
 0x86d   : > { %v1760_v11 = vsel %vm1052_vm0, %v1756_v0, 0.0 }
 0x86e   : > { %1761 = vadd.xlane.f32.xlu0 %v1760_v11 }
 0x8d9   : > { %v1759_v13 = vpop.xlane.xlu1 %1758 }
 0x8da   : > { %v1763_v14 = vmul.f32 %v1759_v13, %v4400_v10 }
 0x8dc   : > { %v1765_v15 = vadd.f32 1e-06, %v1763_v14 }
 0x8de   : > { %3614 = vrsqrt.f32 %v1765_v15  ;;  %vm1773_vm6 = vweird.f32 %v1765_v15 }
 0x8e1   : > { %v1762_v17 = vpop.xlane.xlu0 %1761 }
 0x8e2   : > { %v1764_v18 = vmul.f32 %v1762_v17, %v4400_v10 }
 0x8e4   : > { %v3615_v19 = vpop.eup %3614  ;;  %v1766_v20 = vadd.f32 1e-06, %v1764_v18 }
 0x8e5   : > { %v1768_v23 = vmul.f32 %v3615_v19, %v1765_v15  ;;  %vm1774_vm5 = vweird.f32 %v3615_v19 }
 0x8e6   : > { %3616 = vrsqrt.f32 %v1766_v20  ;;  %vm1775_vm8 = vmor %vm1773_vm6, %vm1774_vm5  ;;  %vm1783_vm10 = vweird.f32 %v1766_v20 }
 0x8e7   : > { %v1769_v24 = vmul.f32 %v3615_v19, %v1768_v23 }
 0x8e9   : > { %v1770_v26 = vmul.f32 0.5, %v1769_v24 }
 0x8eb   : > { %v1771_v27 = vsub.f32 1.5, %v1770_v26 }
 0x8ec   : > { %v3617_v28 = vpop.eup %3616 }
 0x8ed   : > { %v1772_v29 = vmul.f32 %v3615_v19, %v1771_v27  ;;  %v1778_v22 = vmul.f32 %v3617_v28, %v1766_v20  ;;  %vm1784_vm9 = vweird.f32 %v3617_v28 }
 0x8ee   : > { %vm1785_vm11 = vmor %vm1783_vm10, %vm1784_vm9 }
 0x8ef   : > { %v1779_v30 = vmul.f32 %v3617_v28, %v1778_v22  ;;  %v1776_v31 = vsel %vm1775_vm8, %v3615_v19, %v1772_v29  ;;  %v3559_v19 = vld [vmem:[#allocation16] ss:$0 sm:$0xff] }
 0x8f0   : > { %v1787_v35 = vmul.f32 %v1776_v31, %v1753_v1 }
 0x8f1   : > { %v1780_v32 = vmul.f32 0.5, %v1779_v30 }
 0x8f2   : > { %v1792_v40 = vmul.f32 %v3556_v34, %v1787_v35 }
 0x8f3   : > { %v1781_v33 = vsub.f32 1.5, %v1780_v32 }
 0x8f4   : > { %v1797_v43 = vadd.f32 %v3557_v39, %v1792_v40 }
 0x8f5   : > { %v1782_v36 = vmul.f32 %v3617_v28, %v1781_v33 }
 0x8f7   : > { %v1786_v38 = vsel %vm1785_vm11, %v3617_v28, %v1782_v36 }
 0x8f8   : > { %v1788_v41 = vmul.f32 %v1786_v38, %v1754_v9 }
 0x8fa   : > { %v1793_v42 = vmul.f32 %v3556_v34, %v1788_v41 }
 0x8fc   : > { %v1798_v44 = vadd.f32 %v3557_v39, %v1793_v42 }
 0x8fe   : > { %v1803_v45 = vpack.c.bf16 %v1798_v44, %v1797_v43 }
 0x900   : > { %3222 = vmatmul.msk.bf16.vlgmr.msrb.gmra.mxu2 %vm1048_vm1, %v1803_v45 }
 0x983   : > { %v1832_v51 = vpop.f32.mrf.mxu2 }
 0x984   : > { %v1833_v52 = vadd.f32 %v3558_v49, %v1832_v51  ;;  %v3560_v51 = vld [vmem:[%s4860_s9 + $0x1] ss:$0 sm:$0xff] }
 0x986   : > { %v1839_v54 = vmul.f32 %v1833_v52, %v1833_v52  ;;  %v1837_v11 = vmul.f32 0.5, %v1833_v52 }
 0x988   : > { %v1841_v8 = vmul.f32 %v1839_v54, %v1833_v52 }
 0x98a   : > { %v1843_v55 = vmul.f32 0.044715, %v1841_v8 }
 0x98b   : > { %v1834_v56 = vpop.f32.mrf.mxu2 }
 0x98c   : > { %v1845_v62 = vadd.f32 %v1843_v55, %v1833_v52  ;;  %v1835_v63 = vadd.f32 %v3558_v49, %v1834_v56  ;;  %v3561_v55 = vld [vmem:[%s4861_s3 + $0x1] ss:$0 sm:$0xff] }
 0x98e   : > { %v1840_v2 = vmul.f32 %v1835_v63, %v1835_v63  ;;  %v1847_v25 = vmul.f32 0.7978846, %v1845_v62  ;;  %v1838_v12 = vmul.f32 0.5, %v1835_v63 }
 0x990   : > { %v1842_v1 = vmul.f32 %v1840_v2, %v1835_v63  ;;  %3618 = vtanh.f32 %v1847_v25 }
 0x992   : > { %v1844_v3 = vmul.f32 0.044715, %v1842_v1 }
 0x994   : > { %v1846_v4 = vadd.f32 %v1844_v3, %v1835_v63 }
 0x996   : > { %v1848_v5 = vmul.f32 0.7978846, %v1846_v4  ;;  %v3619_v6 = vpop.eup %3618 }
 0x997   : > { %v1851_v9 = vadd.f32 1.0, %v3619_v6  ;;  %v3388_v6 = vld [vmem:[%s4862_s5 + $0x18] sm:$0xff] }
 0x998   : > { %3620 = vtanh.f32 %v1848_v5  ;;  %2075 = vmatpush.bf16.msra.mxu2 %v3388_v6 }
 0x999   : > { %v1853_v14 = vmul.f32 %v1851_v9, %v1837_v11  ;;  %v3387_v9 = vld [vmem:[%s4862_s5 + $0x10] sm:$0xff] }
 0x99c   : > { %2076 = vmatpush.bf16.msra.mxu2 %v3387_v9 }
 0x99e   : > { %v3621_v0 = vpop.eup %3620 }
 0x99f   : > { %v1852_v13 = vadd.f32 1.0, %v3621_v0 }
 0x9a1   : > { %v1854_v15 = vmul.f32 %v1852_v13, %v1838_v12 }
 0x9a3   : > { %v1863_v16 = vpack.c.bf16 %v1854_v15, %v1853_v14 }
 0x9a5   : > { %3239 = vmatmul.msk.bf16.vlgmr.msrb.gmra.mxu3 %vm1888_vm12, %v1863_v16 }
 0xa28   : > { %v1901_v17 = vpop.f32.mrf.mxu3 }
 0xa29   : > { %v1906_v24 = vadd.f32 %v1901_v17, %v4548_v53 }
 0xa2b   : > { %v4588_v27 = vadd.f32 %v3559_v19, %v1906_v24 }
 0xa2d   : > { %v1918_v28 = vsel %vm1048_vm1, %v4588_v27, 0.0 }
 0xa30   : > { %v1903_v18 = vpop.f32.mrf.mxu3 }
 0xa31   : > { %v1907_v20 = vadd.f32 %v1903_v18, %v4553_v21 }
 0xa33   : > { %v4583_v23 = vadd.f32 %v3559_v19, %v1907_v20 }
 0xa35   : > { %v1921_v26 = vsel %vm1052_vm0, %v4583_v23, 0.0 }
 0xa36   : > { %1922 = vadd.xlane.f32.xlu0 %v1921_v26  ;;  %v3562_v26 = vld [vmem:[#allocation2 + $0x1] ss:$0 sm:$0xff] }
 0xa3e   : > { %1919 = vadd.xlane.f32.xlu0 %v1918_v28 }
 0xaa9   : > { %v1923_v29 = vpop.xlane.xlu0 %1922 }
 0xaaa   : > { %v1925_v22 = vmul.f32 %v1923_v29, %v4400_v10 }
 0xaac   : > { %v1927_v30 = vsub.f32 %v4583_v23, %v1925_v22 }
 0xaae   : > { %v1929_v21 = vmul.f32 %v1927_v30, %v1927_v30 }
 0xab0   : > { %v1933_v31 = vsel %vm1052_vm0, %v1929_v21, 0.0 }
 0xab1   : > { %1934 = vadd.xlane.f32.xlu0 %v1933_v31  ;;  %v1920_v53 = vpop.xlane.xlu0 %1919  ;;  %v3390_v31 = vld [vmem:[%s4864_s10 + $0x18] sm:$0xff] }
 0xab2   : > { %v1924_v32 = vmul.f32 %v1920_v53, %v4400_v10  ;;  %v3392_v53 = vld [vmem:[%s4865_s27 + $0x18] sm:$0xff]  ;;  %2115 = vmatpush.bf16.msra.mxu3 %v3390_v31 }
 0xab4   : > { %v1926_v33 = vsub.f32 %v4588_v27, %v1924_v32  ;;  %v3394_v32 = vld [vmem:[%s4866_s20 + $0x18] sm:$0xff] }
 0xab6   : > { %v1928_v34 = vmul.f32 %v1926_v33, %v1926_v33 }
 0xab8   : > { %v1930_v35 = vsel %vm1048_vm1, %v1928_v34, 0.0  ;;  %v3391_v34 = vld [vmem:[%s4865_s27 + $0x10] sm:$0xff] }
 0xab9   : > { %1931 = vadd.xlane.f32.xlu0 %v1930_v35  ;;  %v3393_v35 = vld [vmem:[%s4866_s20 + $0x10] sm:$0xff] }
 0xb24   : > { %v1935_v36 = vpop.xlane.xlu0 %1934 }
 0xb25   : > { %v1937_v38 = vmul.f32 %v1935_v36, %v4400_v10 }
 0xb27   : > { %v1939_v39 = vadd.f32 1e-06, %v1937_v38  ;;  %v3563_v38 = vld [vmem:[%s4867_s14 + $0x1] ss:$0 sm:$0xff] }
 0xb29   : > { %3622 = vrsqrt.f32 %v1939_v39  ;;  %vm1956_vm2 = vweird.f32 %v1939_v39 }
 0xb2c   : > { %v1932_v40 = vpop.xlane.xlu0 %1931 }
 0xb2d   : > { %v1936_v41 = vmul.f32 %v1932_v40, %v4400_v10 }
 0xb2f   : > { %v3623_v42 = vpop.eup %3622  ;;  %v1938_v43 = vadd.f32 1e-06, %v1936_v41 }
 0xb30   : > { %v1951_v44 = vmul.f32 %v3623_v42, %v1939_v39  ;;  %vm1957_vm13 = vweird.f32 %v3623_v42 }
 0xb31   : > { %3624 = vrsqrt.f32 %v1938_v43  ;;  %vm1958_vm5 = vmor %vm1956_vm2, %vm1957_vm13  ;;  %vm1946_vm8 = vweird.f32 %v1938_v43 }
 0xb32   : > { %v1952_v45 = vmul.f32 %v3623_v42, %v1951_v44  ;;  %v3564_v44 = vld [vmem:[#allocation6 + $0x1] ss:$0 sm:$0xff] }
 0xb34   : > { %v1953_v46 = vmul.f32 0.5, %v1952_v45 }
 0xb36   : > { %v1954_v47 = vsub.f32 1.5, %v1953_v46  ;;  %v3565_v46 = vld [vmem:[#allocation7 + $0x1] ss:$0 sm:$0xff] }
 0xb37   : > { %v3625_v48 = vpop.eup %3624 }
 0xb38   : > { %v1955_v49 = vmul.f32 %v3623_v42, %v1954_v47  ;;  %v1941_v50 = vmul.f32 %v3625_v48, %v1938_v43  ;;  %vm1947_vm6 = vweird.f32 %v3625_v48 }
 0xb39   : > { %vm1948_vm9 = vmor %vm1946_vm8, %vm1947_vm6  ;;  %vm1040_vm6 = vcmp.eq.s32.totalorder %v4413_v37, 0 }
 0xb3a   : > { %v1959_v52 = vsel %vm1958_vm5, %v3623_v42, %v1955_v49  ;;  %v1942_v54 = vmul.f32 %v3625_v48, %v1941_v50 }
 0xb3b   : > { %v1961_v8 = vmul.f32 %v1959_v52, %v1927_v30  ;;  %v3566_v52 = vld [vmem:[#allocation4 + $0x1] ss:$0 sm:$0xff] }
 0xb3c   : > { %v1943_v56 = vmul.f32 0.5, %v1942_v54 }
 0xb3d   : > { %v1966_v62 = vmul.f32 %v3560_v51, %v1961_v8 }
 0xb3e   : > { %v1944_v63 = vsub.f32 1.5, %v1943_v56 }
 0xb3f   : > { %v1971_v2 = vadd.f32 %v3561_v55, %v1966_v62 }
 0xb40   : > { %v1945_v25 = vmul.f32 %v3625_v48, %v1944_v63 }
 0xb41   : > { %3243 = vmatpush.msk.msrb.mxu0 %vm1119_vm7, %v1971_v2  ;;  %3246 = vmatpush.msk.msrb.mxu1 %vm1119_vm7, %v1971_v2 }
 0xb42   : > { %v1949_v1 = vsel %vm1948_vm9, %v3625_v48, %v1945_v25 }
 0xb43   : > { %v1960_v3 = vmul.f32 %v1949_v1, %v1926_v33  ;;  %v3389_v33 = vld [vmem:[%s4864_s10 + $0x10] sm:$0xff] }
 0xb44   : > { %2116 = vmatpush.bf16.msra.mxu3 %v3389_v33 }
 0xb45   : > { %v1965_v4 = vmul.f32 %v3560_v51, %v1960_v3 }
 0xb47   : > { %v1970_v5 = vadd.f32 %v3561_v55, %v1965_v4 }
 0xb49   : > { %1992 = vmatpush.msrb.mxu0 %v1970_v5  ;;  %2015 = vmatpush.msrb.mxu1 %v1970_v5 }
 0xb4a   : > { %3244 = vmatmul.msk.f32.vlgmr.msrb.gmra.mxu0 %vm1112_vm14, %v4426_v58  ;;  %3247 = vmatmul.msk.f32.vlgmr.msrb.gmra.mxu1 %vm1112_vm14, %v4432_v60  ;;  %v3242_v58 = vld [vmem:[%s4863_s8 + $0x4] sm:$0x7] }
 0xb4b   : > { %v2023_v60 = vperm.slane %v3242_v58, 0  ;;  %v2026_v12 = vperm.slane %v3242_v58, 1  ;;  %2151 = vmatpush.bf16.msra.mxu0 %v3392_v53  ;;  %2187 = vmatpush.bf16.msra.mxu1 %v3394_v32 }
 0xb4d   : > { %v2027_v13 = vmul.f32 %v2026_v12, %v1970_v5  ;;  %v2028_v19 = vmul.f32 %v2026_v12, %v1971_v2 }
 0xb4f   : > { %2152 = vmatpush.bf16.msra.mxu0 %v3391_v34  ;;  %2188 = vmatpush.bf16.msra.mxu1 %v3393_v35  ;;  %v2202_v34 = vld [vmem:[#allocation9 + $0x10] sm:$0xf] }
 0xb50   : > { %v2383_v35 = vsel %vm1413_vm15, %v2202_v34, 0 }
 0xb52   : > { %3245 = vmatmul.msk.f32.gmra.mxu0 %vm1112_vm14, %v4429_v59  ;;  %3248 = vmatmul.msk.f32.gmra.mxu1 %vm1112_vm14, %v4435_v61  ;;  %v2031_v61 = vperm.slane %v3242_v58, 2 }
 0xbc7   : > { %v1994_v0 = vpop.f32.mrf.mxu0  ;;  %v2017_v59 = vpop.f32.mrf.mxu1 }
 0xbc8   : > { %v2024_v11 = vmul.f32 %v2023_v60, %v1994_v0  ;;  %v2032_v15 = vmul.f32 %v2031_v61, %v2017_v59 }
 0xbca   : > { %v2029_v14 = vadd.f32 %v2027_v13, %v2024_v11 }
 0xbcc   : > { %v2034_v24 = vadd.f32 %v2032_v15, %v2029_v14 }
 0xbce   : > { %v2041_v22 = vadd.f32 %v3562_v26, %v2034_v24 }
 0xbcf   : > { %v1997_v16 = vpop.f32.mrf.mxu0  ;;  %v2020_v17 = vpop.f32.mrf.mxu1 }
 0xbd0   : > { %v2025_v18 = vmul.f32 %v2023_v60, %v1997_v16  ;;  %v2033_v20 = vmul.f32 %v2031_v61, %v2020_v17 }
 0xbd2   : > { %v2030_v28 = vadd.f32 %v2028_v19, %v2025_v18 }
 0xbd4   : > { %v2035_v29 = vadd.f32 %v2033_v20, %v2030_v28 }
 0xbd6   : > { %v2042_v30 = vadd.f32 %v3562_v26, %v2035_v29 }
 0xbd8   : > { %v2048_v21 = vpack.c.bf16 %v2042_v30, %v2041_v22 }
 0xbda   : > { %3262 = vmatmul.msk.bf16.vlgmr.msra.gmra.mxu2 %vm1048_vm1, %v2048_v21 }
 0xc5d   : > { %v2078_v36 = vpop.f32.mrf.mxu2 }
 0xc5e   : > { %v2079_v40 = vadd.f32 %v3563_v38, %v2078_v36 }
 0xc65   : > { %v2080_v39 = vpop.f32.mrf.mxu2 }
 0xc66   : > { %v2081_v41 = vadd.f32 %v3563_v38, %v2080_v39 }
 0xc68   : > { %v2088_v42 = vpack.c.bf16 %v2081_v41, %v2079_v40 }
 0xc6a   : > { %3275 = vmatmul.msk.bf16.vlgmr.msra.gmra.mxu3 %vm1048_vm1, %v2088_v42  ;;  %3288 = vmatmul.msk.bf16.vlgmr.msra.gmra.mxu0 %vm1048_vm1, %v2088_v42 }
 0xc6b   : > { %3301 = vmatmul.msk.bf16.vlgmr.msra.gmra.mxu1 %vm1048_vm1, %v2088_v42 }
 0xce7   : > { %v2154_v43 = vpop.f32.mrf.mxu0 }
 0xce8   : > { %v2190_v45 = vpop.f32.mrf.mxu1  ;;  %v2155_v47 = vadd.f32 %v3564_v44, %v2154_v43 }
 0xce9   : > { %v2191_v48 = vadd.f32 %v3565_v46, %v2190_v45 }
 0xcea   : > { %v2197_v51 = vpack.c.bf16 %v2155_v47, %v2155_v47 }
 0xceb   : > { %v2199_v55 = vpack.c.bf16 %v2191_v48, %v2191_v48 }
 0xcec   : > { %v2213_v2 = vunpack.c.l.b16 %v2197_v51 }
 0xced   : > { %v2118_v49 = vpop.f32.mrf.mxu3  ;;  %v2263_v3 = vunpack.c.l.b16 %v2199_v55 }
 0xcee   : > { %v2119_v25 = vadd.f32 %v3566_v52, %v2118_v49 }
 0xcef   : > { %v2156_v50 = vpop.f32.mrf.mxu0 }
 0xcf0   : > { %v2157_v54 = vadd.f32 %v3564_v44, %v2156_v50  ;;  %v2192_v8 = vpop.f32.mrf.mxu1  ;;  %v2195_v60 = vpack.c.bf16 %v2119_v25, %v2119_v25 }
 0xcf1   : > { %v2193_v56 = vadd.f32 %v3565_v46, %v2192_v8 }
 0xcf2   : > { %v2198_v62 = vpack.c.bf16 %v2157_v54, %v2157_v54  ;;  %v2208_v61 = vunpack.c.l.b16 %v2195_v60 }
 0xcf3   : > { %v2200_v63 = vpack.c.bf16 %v2193_v56, %v2193_v56 }
 0xcf4   : > { %v2214_v1 = vunpack.c.l.b16 %v2198_v62 }
 0xcf5   : > { %v2264_v4 = vunpack.c.l.b16 %v2200_v63  ;;  %v2120_v5 = vpop.f32.mrf.mxu3 }
 0xcf6   : > { %v2215_v6 = vpack.c.b16 %v2214_v1, %v2213_v2  ;;  %v2121_v9 = vadd.f32 %v3566_v52, %v2120_v5 }
 0xcf7   : > { %v4650_v58 = vpack.c.b16 %v2264_v4, %v2263_v3 }
 0xcf8   : > { %v2196_v0 = vpack.c.bf16 %v2121_v9, %v2121_v9  ;;  %v2220_v59 = vsel %vm1358_vm3, %v2215_v6, 0 }
 0xcf9   : > { %2229 = vmatpush.bf16.xpose.msrb.mxu2 %v2220_v59  ;;  %v2270_v11 = vand.u32 %v4650_v58, %v4480_v7 }
 0xcfa   : > { %v2209_v12 = vunpack.c.l.b16 %v2196_v0 }
 0xcfb   : > { %2279 = vmatpush.bf16.msrb.mxu3 %v2270_v11 }
 0xcfc   : > { %v2210_v13 = vpack.c.b16 %v2209_v12, %v2208_v61 }
 0xcff   : > { %2392 = vmatpush.bf16.msra.mxu3 %v2383_v35 }
 0xd00   : > { %3302 = vmatmul.msk.bf16.vlgmr.msrb.gmra.mxu2 %vm1358_vm3, %v2210_v13 }
 0xd83   : > { %v2231_v14 = vpop.f32.mrf.mxu2 }
 0xd84   : > { %v2236_v15 = vmul.f32 0.35355338, %v2231_v14 }
 0xd86   : > { %v2238_v16 = vsel %vm1112_vm14, %v2236_v15, -inf }
 0xd87   : > { %2239 = vmax.xlane.f32.xlu2 %v2238_v16 }
 0xd8b   : > { %v2233_v17 = vpop.f32.mrf.mxu2 }
 0xd8c   : > { %v2237_v18 = vmul.f32 0.35355338, %v2233_v17 }
 0xd8e   : > { %v2241_v19 = vsel %vm1384_vm4, %v2237_v18, -inf }
 0xd8f   : > { %2242 = vmax.xlane.f32.xlu0 %v2241_v19 }
 0xda3   : > { %2289 = vrot.lane.b32.xlu0 %v2215_v6, %s4093_s30 }
 0xdab   : > { %2495 = vrot.lane.b32.xlu0 %v2215_v6, %s4868_s17 }
 0xdb3   : > { %2493 = vrot.lane.b32.xlu0 %v2210_v13, %s4868_s17 }
 0xdfa   : > { %v2240_v20 = vpop.xlane.xlu2 %2239 }
 0xdfb   : > { %v2244_v24 = vsub.f32 %v2236_v15, %v2240_v20 }
 0xdfd   : > { %v2246_v26 = vmul.f32 1.442695, %v2244_v24 }
 0xdff   : > { %3626 = vpow2.f32 %v2246_v26 }
 0xe02   : > { %v2243_v28 = vpop.xlane.xlu0 %2242 }
 0xe03   : > { %v2245_v29 = vsub.f32 %v2237_v18, %v2243_v28 }
 0xe05   : > { %v3627_v22 = vpop.eup %3626  ;;  %v2248_v30 = vmul.f32 1.442695, %v2245_v29 }
 0xe06   : > { %v2250_v21 = vsel %vm1112_vm14, %v3627_v22, 0.0 }
 0xe07   : > { %3628 = vpow2.f32 %v2248_v30  ;;  %2251 = vadd.xlane.f32.xlu1 %v2250_v21 }
 0xe0d   : > { %v3629_v31 = vpop.eup %3628 }
 0xe0e   : > { %v2253_v53 = vsel %vm1384_vm4, %v3629_v31, 0.0 }
 0xe0f   : > { %2254 = vadd.xlane.f32.xlu2 %v2253_v53 }
 0xe15   : > { %v2290_v32 = vpop.permute.xlu0 %2289 }
 0xe16   : > { %v2295_v33 = vsel %vm1358_vm3, %v2290_v32, 0 }
 0xe17   : > { %2304 = vmatpush.bf16.xpose.msrb.mxu0 %v2295_v33 }
 0xe1d   : > { %v2496_v44 = vpop.permute.xlu0 %2495 }
 0xe1e   : > { %v2501_v47 = vsel %vm1358_vm3, %v2496_v44, 0 }
 0xe20   : > { %2287 = vrot.lane.b32.xlu1 %v2210_v13, %s4093_s30 }
 0xe25   : > { %v2494_v5 = vpop.permute.xlu0 %2493 }
 0xe27   : > { %2401 = vrot.lane.b32.xlu2 %v2215_v6, %s4869_s29 }
 0xe28   : > { %2399 = vrot.lane.b32.xlu1 %v2210_v13, %s4869_s29 }
 0xe7a   : > { %v2252_v36 = vpop.xlane.xlu1 %2251 }
 0xe7b   : > { %3630 = vrcp.f32 %v2252_v36 }
 0xe81   : > { %v3631_v39 = vpop.eup %3630 }
 0xe82   : > { %v2255_v38 = vpop.xlane.xlu2 %2254  ;;  %v2258_v41 = vmul.f32 %v3631_v39, %v3627_v22 }
 0xe83   : > { %3632 = vrcp.f32 %v2255_v38 }
 0xe89   : > { %v3633_v40 = vpop.eup %3632 }
 0xe8a   : > { %v2259_v42 = vmul.f32 %v3633_v40, %v3629_v31  ;;  %v2402_v43 = vpop.permute.xlu2 %2401 }
 0xe8b   : > { %v2407_v45 = vsel %vm1358_vm3, %v2402_v43, 0 }
 0xe8c   : > { %v2260_v46 = vpack.c.bf16 %v2259_v42, %v2258_v41  ;;  %2416 = vmatpush.bf16.xpose.msra.mxu0 %v2407_v45 }
 0xe8e   : > { %3303 = vmatmul.msk.bf16.vlgmr.msrb.gmra.mxu3 %vm1112_vm14, %v2260_v46 }
 0xe8f   : > { %2510 = vmatpush.bf16.xpose.msrb.mxu3 %v2501_v47 }
 0xe92   : > { %v2288_v48 = vpop.permute.xlu1 %2287 }
 0xe93   : > { %3304 = vmatmul.msk.bf16.vlgmr.msrb.gmra.mxu0 %vm1358_vm3, %v2288_v48 }
 0xe9a   : > { %v2400_v49 = vpop.permute.xlu1 %2399 }
 0xea3   : > { %3308 = vmatmul.msk.bf16.vlgmr.msra.gmra.mxu0 %vm1358_vm3, %v2400_v49 }
 0xf10   : > { %v2306_v50 = vpop.f32.mrf.mxu0 }
 0xf11   : > { %v2311_v51 = vmul.f32 0.35355338, %v2306_v50  ;;  %v2281_v52 = vpop.f32.mrf.mxu3 }
 0xf13   : > { %v2313_v54 = vsel %vm1112_vm14, %v2311_v51, -inf }
 0xf14   : > { %2314 = vmax.xlane.f32.xlu2 %v2313_v54 }
 0xf18   : > { %v2308_v8 = vpop.f32.mrf.mxu0 }
 0xf19   : > { %v2312_v55 = vmul.f32 0.35355338, %v2308_v8  ;;  %v2283_v56 = vpop.f32.mrf.mxu3 }
 0xf1a   : > { %v2286_v62 = vpack.c.bf16 %v2283_v56, %v2281_v52 }
 0xf1b   : > { %v2316_v63 = vsel %vm1384_vm4, %v2312_v55, -inf }
 0xf1c   : > { %3307 = vmatmul.msk.bf16.vlgmr.msra.gmra.mxu3 %vm1358_vm3, %v2286_v62  ;;  %2317 = vmax.xlane.f32.xlu1 %v2316_v63 }
 0xf20   : > { %v2418_v2 = vpop.f32.mrf.mxu0 }
 0xf21   : > { %v2423_v25 = vmul.f32 0.35355338, %v2418_v2 }
 0xf23   : > { %v2425_v1 = vsel %vm1112_vm14, %v2423_v25, -inf }
 0xf24   : > { %2426 = vmax.xlane.f32.xlu0 %v2425_v1 }
 0xf28   : > { %v2420_v3 = vpop.f32.mrf.mxu0 }
 0xf29   : > { %v2424_v4 = vmul.f32 0.35355338, %v2420_v3 }
 0xf2b   : > { %v2428_v6 = vsel %vm1384_vm4, %v2424_v4, -inf }
 0xf2c   : > { %2429 = vmax.xlane.f32.xlu2 %v2428_v6  ;;  %3311 = vmatmul.msk.bf16.vlgmr.msrb.gmra.mxu3 %vm1358_vm3, %v2494_v5 }
 0xf87   : > { %v2315_v9 = vpop.xlane.xlu2 %2314 }
 0xf88   : > { %v2319_v60 = vsub.f32 %v2311_v51, %v2315_v9  ;;  %v2203_v9 = vld [vmem:[#allocation9 + $0x14] sm:$0xf] }
 0xf8a   : > { %v2321_v0 = vmul.f32 1.442695, %v2319_v60  ;;  %v2363_v60 = vsel %vm1413_vm15, %v2203_v9, 0 }
 0xf8b   : > { %2372 = vmatpush.bf16.msra.mxu2 %v2363_v60 }
 0xf8c   : > { %3634 = vpow2.f32 %v2321_v0 }
 0xf8f   : > { %v2318_v17 = vpop.xlane.xlu1 %2317 }
 0xf90   : > { %v2320_v19 = vsub.f32 %v2312_v55, %v2318_v17 }
 0xf92   : > { %v3635_v59 = vpop.eup %3634  ;;  %v2323_v20 = vmul.f32 1.442695, %v2320_v19 }
 0xf93   : > { %v2325_v11 = vsel %vm1112_vm14, %v3635_v59, 0.0 }
 0xf94   : > { %2326 = vadd.xlane.f32.xlu0 %v2325_v11  ;;  %v2204_v11 = vld [vmem:[#allocation9 + $0x18] sm:$0xf] }
 0xf97   : > { %v2427_v12 = vpop.xlane.xlu0 %2426 }
 0xf98   : > { %v2431_v61 = vsub.f32 %v2423_v25, %v2427_v12 }
 0xf9a   : > { %v2433_v13 = vmul.f32 1.442695, %v2431_v61 }
 0xf9c   : > { %3636 = vpow2.f32 %v2433_v13 }
 0xf9d   : > { %3638 = vpow2.f32 %v2323_v20 }
 0xf9f   : > { %v4680_v14 = vpop.f32.mrf.mxu3  ;;  %v2430_v24 = vpop.xlane.xlu2 %2429 }
 0xfa0   : > { %v2432_v29 = vsub.f32 %v2424_v4, %v2430_v24 }
 0xfa2   : > { %v4682_v15 = vpop.eup %3636  ;;  %v2435_v30 = vmul.f32 1.442695, %v2432_v29  ;;  %v2205_v29 = vld [vmem:[#allocation9 + $0x1c] sm:$0xf] }
 0xfa3   : > { %v2437_v16 = vsel %vm1112_vm14, %v4682_v15, 0.0  ;;  %v3639_v21 = vpop.eup %3638 }
 0xfa4   : > { %2438 = vadd.xlane.f32.xlu0 %v2437_v16  ;;  %3640 = vpow2.f32 %v2435_v30  ;;  %v2328_v32 = vsel %vm1384_vm4, %v3639_v21, 0.0 }
 0xfa7   : > { %v4686_v18 = vpop.f32.mrf.mxu3 }
 0xfaa   : > { %v3641_v34 = vpop.eup %3640 }
 0xfab   : > { %v2440_v35 = vsel %vm1384_vm4, %v3641_v34, 0.0 }
 0xfaf   : > { %v2512_v26 = vpop.f32.mrf.mxu3 }
 0xfb0   : > { %v2517_v28 = vmul.f32 0.35355338, %v2512_v26 }
 0xfb2   : > { %v2519_v22 = vsel %vm1112_vm14, %v2517_v28, -inf }
 0xfb3   : > { %2520 = vmax.xlane.f32.xlu1 %v2519_v22  ;;  %v2569_v22 = vsel %vm1413_vm15, %v2205_v29, 0 }
 0xfb7   : > { %v2514_v31 = vpop.f32.mrf.mxu3 }
 0xfb8   : > { %v2518_v53 = vmul.f32 0.35355338, %v2514_v31  ;;  %2448 = vrot.lane.b32.xlu0 %v4650_v58, %s4869_s29 }
 0xfba   : > { %v2522_v33 = vsel %vm1384_vm4, %v2518_v53, -inf }
 0xfbb   : > { %2329 = vadd.xlane.f32.xlu1 %v2328_v32  ;;  %2523 = vmax.xlane.f32.xlu2 %v2522_v33 }
 0xfc3   : > { %2441 = vadd.xlane.f32.xlu1 %v2440_v35 }
 0xfd3   : > { %2336 = vrot.lane.b32.xlu2 %v4650_v58, %s4093_s30 }
 0xfdb   : > { %2542 = vrot.lane.b32.xlu2 %v4650_v58, %s4868_s17  ;;  %s4870_s17 = sshll.u32 %s4874_s4, 4 }
 0xfdc   : > { %s1015_s0 = scalar_lea.vmem %s4871_s12, %s4870_s17 }
0x1007   : > { %v2327_v36 = vpop.xlane.xlu0 %2326 }
0x1017   : > { %v2439_v41 = vpop.xlane.xlu0 %2438 }
0x1026   : > { %v2521_v38 = vpop.xlane.xlu1 %2520 }
0x1027   : > { %v2525_v39 = vsub.f32 %v2517_v28, %v2521_v38 }
0x1029   : > { %v2527_v40 = vmul.f32 1.442695, %v2525_v39 }
0x102a   : > { %v2449_v58 = vpop.permute.xlu0 %2448 }
0x102b   : > { %3642 = vpow2.f32 %v2527_v40  ;;  %v2454_v8 = vand.u32 %v2449_v58, %v4480_v7 }
0x102c   : > { %3644 = vrcp.f32 %v2327_v36  ;;  %v3567_v36 = vld [vmem:[#allocation10 + $0x1] ss:$0 sm:$0xff] }
0x102e   : > { %v2330_v42 = vpop.xlane.xlu1 %2329  ;;  %v2524_v43 = vpop.xlane.xlu2 %2523 }
0x102f   : > { %3646 = vrcp.f32 %v2330_v42  ;;  %v2526_v44 = vsub.f32 %v2518_v53, %v2524_v43 }
0x1031   : > { %v3643_v45 = vpop.eup %3642  ;;  %v2529_v46 = vmul.f32 1.442695, %v2526_v44 }
0x1032   : > { %v2531_v47 = vsel %vm1112_vm14, %v3643_v45, 0.0  ;;  %v3645_v48 = vpop.eup %3644 }
0x1033   : > { %3648 = vpow2.f32 %v2529_v46  ;;  %2532 = vadd.xlane.f32.xlu1 %v2531_v47  ;;  %v2333_v54 = vmul.f32 %v3645_v48, %v3635_v59 }
0x1035   : > { %v3647_v49 = vpop.eup %3646 }
0x1036   : > { %v2334_v50 = vmul.f32 %v3647_v49, %v3639_v21  ;;  %v2337_v51 = vpop.permute.xlu2 %2336  ;;  %v2442_v62 = vpop.xlane.xlu1 %2441 }
0x1037   : > { %v2342_v52 = vand.u32 %v2337_v51, %v4480_v7  ;;  %3650 = vrcp.f32 %v2442_v62 }
0x1038   : > { %v2335_v56 = vpack.c.bf16 %v2334_v50, %v2333_v54  ;;  %3652 = vrcp.f32 %v2439_v41 }
0x1039   : > { %v3649_v55 = vpop.eup %3648  ;;  %2351 = vmatpush.bf16.msrb.mxu1 %v2342_v52 }
0x103a   : > { %v2534_v63 = vsel %vm1384_vm4, %v3649_v55, 0.0 }
0x103b   : > { %2535 = vadd.xlane.f32.xlu1 %v2534_v63 }
0x103c   : > { %3305 = vmatmul.msk.bf16.vlgmr.msrb.gmra.mxu1 %vm1112_vm14, %v2335_v56  ;;  %v3396_v56 = vld [vmem:[#allocation13 + $0x18] sm:$0xff] }
0x103d   : > { %2463 = vmatpush.bf16.msra.mxu1 %v2454_v8  ;;  %v3651_v1 = vpop.eup %3650 }
0x103e   : > { %v2543_v2 = vpop.permute.xlu2 %2542  ;;  %v3653_v3 = vpop.eup %3652  ;;  %v2446_v4 = vmul.f32 %v3651_v1, %v3641_v34 }
0x103f   : > { %v2548_v25 = vand.u32 %v2543_v2, %v4480_v7  ;;  %v2445_v5 = vmul.f32 %v3653_v3, %v4682_v15  ;;  %v2475_v7 = vsel %vm1413_vm15, %v2204_v11, 0 }
0x1040   : > { %2484 = vmatpush.bf16.msrb.mxu2 %v2475_v7 }
0x1041   : > { %2557 = vmatpush.bf16.msrb.mxu0 %v2548_v25  ;;  %v2447_v6 = vpack.c.bf16 %v2446_v4, %v2445_v5  ;;  %2578 = vmatpush.bf16.msrb.mxu1 %v2569_v22  ;;  %v3395_v25 = vld [vmem:[#allocation13 + $0x10] sm:$0xff] }
0x104c   : > { %3309 = vmatmul.msk.bf16.vlgmr.msra.gmra.mxu1 %vm1112_vm14, %v2447_v6 }
0x10a6   : > { %v2533_v0 = vpop.xlane.xlu1 %2532 }
0x10a7   : > { %3654 = vrcp.f32 %v2533_v0 }
0x10ad   : > { %v3655_v12 = vpop.eup %3654 }
0x10ae   : > { %v2536_v59 = vpop.xlane.xlu1 %2535  ;;  %v2539_v13 = vmul.f32 %v3655_v12, %v3643_v45 }
0x10af   : > { %3656 = vrcp.f32 %v2536_v59 }
0x10b5   : > { %v3657_v61 = vpop.eup %3656 }
0x10b6   : > { %v2540_v16 = vmul.f32 %v3657_v61, %v3649_v55 }
0x10b8   : > { %v2541_v15 = vpack.c.bf16 %v2540_v16, %v2539_v13 }
0x10b9   : > { %v2353_v17 = vpop.f32.mrf.mxu1 }
0x10ba   : > { %3312 = vmatmul.msk.bf16.vlgmr.msrb.gmra.mxu0 %vm1112_vm14, %v2541_v15  ;;  %v3568_v15 = vld [vmem:[%s4802_s15 + $0x1] ss:$0 sm:$0xff] }
0x10c1   : > { %v2355_v19 = vpop.f32.mrf.mxu1 }
0x10c2   : > { %v2358_v20 = vpack.c.bf16 %v2355_v19, %v2353_v17 }
0x10c4   : > { %3306 = vmatmul.msk.bf16.vlgmr.msra.gmra.mxu2 %vm1358_vm3, %v2358_v20 }
0x10c5   : > { %2686 = vmatpush.bf16.msra.mxu2 %v3396_v56  ;;  %v3571_v56 = vld [vmem:[#allocation16 + $0x1] ss:$0 sm:$0xff] }
0x10c9   : > { %v2465_v24 = vpop.f32.mrf.mxu1  ;;  %2687 = vmatpush.bf16.msra.mxu2 %v3395_v25 }
0x10d1   : > { %v2467_v26 = vpop.f32.mrf.mxu1 }
0x10d2   : > { %v2470_v28 = vpack.c.bf16 %v2467_v26, %v2465_v24  ;;  %v3569_v24 = vld [vmem:[#allocation12 + $0x1] ss:$0 sm:$0xff] }
0x10d4   : > { %3310 = vmatmul.msk.bf16.vlgmr.msrb.gmra.mxu2 %vm1358_vm3, %v2470_v28 }
0x1137   : > { %v2559_v30 = vpop.f32.mrf.mxu0 }
0x113f   : > { %v2561_v21 = vpop.f32.mrf.mxu0 }
0x1140   : > { %v2564_v31 = vpack.c.bf16 %v2561_v21, %v2559_v30 }
0x1142   : > { %3313 = vmatmul.msk.bf16.vlgmr.msrb.gmra.mxu1 %vm1358_vm3, %v2564_v31  ;;  %v3400_v31 = vld [vmem:[%s4806_s19 + $0x38] sm:$0xff] }
0x1143   : > { %2753 = vmatpush.bf16.msra.mxu3 %v3400_v31 }
0x1147   : > { %v2374_v53 = vpop.f32.mrf.mxu2 }
0x1148   : > { %v2395_v34 = vadd.f32 %v4680_v14, %v2374_v53  ;;  %v3399_v53 = vld [vmem:[%s4806_s19 + $0x30] sm:$0xff] }
0x1149   : > { %2754 = vmatpush.bf16.msra.mxu3 %v3399_v53 }
0x114f   : > { %v2376_v32 = vpop.f32.mrf.mxu2 }
0x1150   : > { %v2397_v42 = vadd.f32 %v4686_v18, %v2376_v32  ;;  %v3398_v32 = vld [vmem:[%s4806_s19 + $0x28] sm:$0xff] }
0x1151   : > { %2755 = vmatpush.bf16.msra.mxu3 %v3398_v32 }
0x1157   : > { %v2486_v33 = vpop.f32.mrf.mxu2 }
0x1158   : > { %v2491_v35 = vadd.f32 %v2486_v33, %v2395_v34  ;;  %v3570_v33 = vld [vmem:[#allocation15 + $0x1] ss:$0 sm:$0xff]  ;;  %v3397_v34 = vld [vmem:[%s4806_s19 + $0x20] sm:$0xff] }
0x1159   : > { %2756 = vmatpush.bf16.msra.mxu3 %v3397_v34 }
0x115f   : > { %v2488_v41 = vpop.f32.mrf.mxu2 }
0x1160   : > { %v2492_v44 = vadd.f32 %v2488_v41, %v2397_v42 }
0x11bf   : > { %v2580_v38 = vpop.f32.mrf.mxu1 }
0x11c0   : > { %v2585_v39 = vadd.f32 %v2580_v38, %v2491_v35 }
0x11c2   : > { %v2592_v40 = vadd.f32 %v3567_v36, %v2585_v39 }
0x11c4   : > { %v4716_v43 = vadd.f32 %v2592_v40, %v4588_v27 }
0x11c6   : > { %v2600_v45 = vsel %vm1048_vm1, %v4716_v43, 0.0 }
0x11c7   : > { %v2582_v46 = vpop.f32.mrf.mxu1  ;;  %2601 = vadd.xlane.f32.xlu0 %v2600_v45 }
0x11c8   : > { %v2586_v47 = vadd.f32 %v2582_v46, %v2492_v44 }
0x11ca   : > { %v2593_v48 = vadd.f32 %v3567_v36, %v2586_v47 }
0x11cc   : > { %v4721_v14 = vadd.f32 %v2593_v48, %v4583_v23 }
0x11ce   : > { %v2603_v49 = vsel %vm1052_vm0, %v4721_v14, 0.0 }
0x11cf   : > { %2604 = vadd.xlane.f32.xlu1 %v2603_v49 }
0x123a   : > { %v2602_v58 = vpop.xlane.xlu0 %2601 }
0x123b   : > { %v2606_v18 = vmul.f32 %v2602_v58, %v4400_v10 }
0x123d   : > { %v2608_v27 = vsub.f32 %v4716_v43, %v2606_v18 }
0x123f   : > { %v2610_v50 = vmul.f32 %v2608_v27, %v2608_v27 }
0x1241   : > { %v2612_v51 = vsel %vm1048_vm1, %v2610_v50, 0.0 }
0x1242   : > { %2613 = vadd.xlane.f32.xlu2 %v2612_v51  ;;  %v2605_v52 = vpop.xlane.xlu1 %2604 }
0x1243   : > { %v2607_v54 = vmul.f32 %v2605_v52, %v4400_v10 }
0x1245   : > { %v2609_v8 = vsub.f32 %v4721_v14, %v2607_v54 }
0x1247   : > { %v2611_v23 = vmul.f32 %v2609_v8, %v2609_v8 }
0x1249   : > { %v2615_v55 = vsel %vm1052_vm0, %v2611_v23, 0.0 }
0x124a   : > { %2616 = vadd.xlane.f32.xlu1 %v2615_v55 }
0x12b5   : > { %v2614_v62 = vpop.xlane.xlu2 %2613 }
0x12b6   : > { %v2618_v63 = vmul.f32 %v2614_v62, %v4400_v10 }
0x12b8   : > { %v2620_v2 = vadd.f32 1e-06, %v2618_v63 }
0x12ba   : > { %3658 = vrsqrt.f32 %v2620_v2  ;;  %vm2628_vm14 = vweird.f32 %v2620_v2 }
0x12bd   : > { %v2617_v1 = vpop.xlane.xlu1 %2616 }
0x12be   : > { %v2619_v3 = vmul.f32 %v2617_v1, %v4400_v10 }
0x12c0   : > { %v3659_v4 = vpop.eup %3658  ;;  %v2621_v5 = vadd.f32 1e-06, %v2619_v3 }
0x12c1   : > { %v2623_v6 = vmul.f32 %v3659_v4, %v2620_v2  ;;  %vm2629_vm7 = vweird.f32 %v3659_v4 }
0x12c2   : > { %3660 = vrsqrt.f32 %v2621_v5  ;;  %vm2630_vm15 = vmor %vm2628_vm14, %vm2629_vm7  ;;  %vm2638_vm4 = vweird.f32 %v2621_v5 }
0x12c3   : > { %v2624_v9 = vmul.f32 %v3659_v4, %v2623_v6 }
0x12c5   : > { %v2625_v60 = vmul.f32 0.5, %v2624_v9 }
0x12c7   : > { %v2626_v0 = vsub.f32 1.5, %v2625_v60 }
0x12c8   : > { %v3661_v59 = vpop.eup %3660 }
0x12c9   : > { %v2627_v11 = vmul.f32 %v3659_v4, %v2626_v0  ;;  %v2633_v7 = vmul.f32 %v3661_v59, %v2621_v5  ;;  %vm2639_vm3 = vweird.f32 %v3661_v59 }
0x12ca   : > { %vm2640_vm10 = vmor %vm2638_vm4, %vm2639_vm3 }
0x12cb   : > { %v2634_v12 = vmul.f32 %v3661_v59, %v2633_v7  ;;  %v2631_v61 = vsel %vm2630_vm15, %v3659_v4, %v2627_v11 }
0x12cc   : > { %v2642_v17 = vmul.f32 %v2631_v61, %v2608_v27 }
0x12cd   : > { %v2635_v13 = vmul.f32 0.5, %v2634_v12 }
0x12ce   : > { %v2647_v26 = vmul.f32 %v3568_v15, %v2642_v17 }
0x12cf   : > { %v2636_v16 = vsub.f32 1.5, %v2635_v13  ;;  %v3404_v13 = vld [vmem:[#allocation19 + $0x8] sm:$0xff] }
0x12d0   : > { %v2652_v22 = vadd.f32 %v3569_v24, %v2647_v26  ;;  %2892 = vmatpush.bf16.msra.mxu1 %v3404_v13 }
0x12d1   : > { %v2637_v19 = vmul.f32 %v3661_v59, %v2636_v16 }
0x12d3   : > { %v2641_v20 = vsel %vm2640_vm10, %v3661_v59, %v2637_v19  ;;  %v3401_v19 = vld [vmem:[%s4810_s23] sm:$0xff] }
0x12d4   : > { %v2643_v28 = vmul.f32 %v2641_v20, %v2609_v8  ;;  %v3403_v20 = vld [vmem:[#allocation19] sm:$0xff] }
0x12d5   : > { %2893 = vmatpush.bf16.msra.mxu1 %v3403_v20 }
0x12d6   : > { %v2648_v29 = vmul.f32 %v3568_v15, %v2643_v28 }
0x12d8   : > { %v2653_v30 = vadd.f32 %v3569_v24, %v2648_v29 }
0x12da   : > { %v2659_v21 = vpack.c.bf16 %v2653_v30, %v2652_v22 }
0x12dc   : > { %3323 = vmatmul.msk.bf16.vlgmr.msra.gmra.mxu2 %vm1048_vm1, %v2659_v21 }
0x135f   : > { %v2689_v35 = vpop.f32.mrf.mxu2 }
0x1360   : > { %v2690_v36 = vadd.f32 %v3570_v33, %v2689_v35 }
0x1362   : > { %v2696_v38 = vmul.f32 %v2690_v36, %v2690_v36  ;;  %v2694_v51 = vmul.f32 0.5, %v2690_v36 }
0x1364   : > { %v2698_v39 = vmul.f32 %v2696_v38, %v2690_v36 }
0x1366   : > { %v2700_v40 = vmul.f32 0.044715, %v2698_v39 }
0x1367   : > { %v2691_v41 = vpop.f32.mrf.mxu2 }
0x1368   : > { %v2702_v42 = vadd.f32 %v2700_v40, %v2690_v36  ;;  %v2692_v44 = vadd.f32 %v3570_v33, %v2691_v41 }
0x136a   : > { %v2697_v45 = vmul.f32 %v2692_v44, %v2692_v44  ;;  %v2704_v46 = vmul.f32 0.7978846, %v2702_v42  ;;  %v2695_v52 = vmul.f32 0.5, %v2692_v44  ;;  %v3573_v42 = vld [vmem:[%s4809_s22] ss:$0 sm:$0xff] }
0x136c   : > { %v2699_v47 = vmul.f32 %v2697_v45, %v2692_v44  ;;  %3662 = vtanh.f32 %v2704_v46 }
0x136e   : > { %v2701_v48 = vmul.f32 0.044715, %v2699_v47 }
0x1370   : > { %v2703_v49 = vadd.f32 %v2701_v48, %v2692_v44 }
0x1372   : > { %v2705_v58 = vmul.f32 0.7978846, %v2703_v49  ;;  %v3663_v18 = vpop.eup %3662 }
0x1373   : > { %v2708_v27 = vadd.f32 1.0, %v3663_v18  ;;  %v3574_v18 = vld [vmem:[#allocation18] ss:$0 sm:$0xff] }
0x1374   : > { %3664 = vtanh.f32 %v2705_v58  ;;  %v3159_v58 = vsel %vm1040_vm6, 1.0, %v4091_v57 }
0x1375   : > { %v2710_v8 = vmul.f32 %v2708_v27, %v2694_v51  ;;  %v3575_v27 = vld [vmem:[%s4813_s26] ss:$0 sm:$0xff] }
0x137a   : > { %v3665_v50 = vpop.eup %3664 }
0x137b   : > { %v2709_v54 = vadd.f32 1.0, %v3665_v50  ;;  %v2902_v50 = vsub.f32 1.0, %v3159_v58 }
0x137d   : > { %v2711_v23 = vmul.f32 %v2709_v54, %v2695_v52 }
0x137f   : > { %v2721_v55 = vpack.c.bf16 %v2711_v23, %v2710_v8 }
0x1381   : > { %3348 = vmatmul.msk.bf16.vlgmr.msra.gmra.mxu3 %vm1888_vm12, %v2721_v55 }
0x1404   : > { %v2758_v62 = vpop.f32.mrf.mxu3 }
0x1405   : > { %v2763_v63 = vadd.f32 %v2758_v62, %v4716_v43 }
0x1407   : > { %v2770_v2 = vadd.f32 %v3571_v56, %v2763_v63 }
0x1409   : > { %v2774_v25 = vsel %vm1048_vm1, %v2770_v2, 0.0 }
0x140a   : > { %2775 = vadd.xlane.f32.xlu1 %v2774_v25 }
0x140c   : > { %v2760_v1 = vpop.f32.mrf.mxu3 }
0x140d   : > { %v2764_v3 = vadd.f32 %v2760_v1, %v4721_v14  ;;  %v3402_v14 = vld [vmem:[%s4810_s23 + $0x8] sm:$0xff] }
0x140e   : > { %2858 = vmatpush.bf16.msra.mxu0 %v3402_v14 }
0x140f   : > { %v2771_v4 = vadd.f32 %v3571_v56, %v2764_v3 }
0x1411   : > { %v2777_v5 = vsel %vm1052_vm0, %v2771_v4, 0.0 }
0x1412   : > { %2778 = vadd.xlane.f32.xlu1 %v2777_v5  ;;  %2859 = vmatpush.bf16.msra.mxu0 %v3401_v19 }
0x147d   : > { %v2776_v6 = vpop.xlane.xlu1 %2775 }
0x147e   : > { %v2780_v9 = vmul.f32 %v2776_v6, %v4400_v10 }
0x1480   : > { %v2782_v60 = vsub.f32 %v2770_v2, %v2780_v9 }
0x1482   : > { %v2784_v0 = vmul.f32 %v2782_v60, %v2782_v60 }
0x1484   : > { %v2786_v59 = vsel %vm1048_vm1, %v2784_v0, 0.0 }
0x1485   : > { %2787 = vadd.xlane.f32.xlu1 %v2786_v59  ;;  %v2779_v43 = vpop.xlane.xlu1 %2778 }
0x1486   : > { %v2781_v11 = vmul.f32 %v2779_v43, %v4400_v10 }
0x1488   : > { %v2783_v7 = vsub.f32 %v2771_v4, %v2781_v11 }
0x148a   : > { %v2785_v12 = vmul.f32 %v2783_v7, %v2783_v7 }
0x148c   : > { %v2789_v61 = vsel %vm1052_vm0, %v2785_v12, 0.0 }
0x148d   : > { %2790 = vadd.xlane.f32.xlu1 %v2789_v61 }
0x14f8   : > { %v2788_v16 = vpop.xlane.xlu1 %2787 }
0x14f9   : > { %v2792_v15 = vmul.f32 %v2788_v16, %v4400_v10 }
0x14fb   : > { %v2794_v17 = vadd.f32 1e-06, %v2792_v15 }
0x14fd   : > { %3666 = vrsqrt.f32 %v2794_v17  ;;  %vm2802_vm11 = vweird.f32 %v2794_v17 }
0x1500   : > { %v2791_v24 = vpop.xlane.xlu1 %2790 }
0x1501   : > { %v2793_v26 = vmul.f32 %v2791_v24, %v4400_v10  ;;  %v3572_v10 = vld [vmem:[%s4808_s21] ss:$0 sm:$0xff] }
0x1503   : > { %v3667_v28 = vpop.eup %3666  ;;  %v2795_v29 = vadd.f32 1e-06, %v2793_v26 }
0x1504   : > { %v2797_v22 = vmul.f32 %v3667_v28, %v2794_v17  ;;  %vm2803_vm0 = vweird.f32 %v3667_v28 }
0x1505   : > { %3668 = vrsqrt.f32 %v2795_v29  ;;  %vm2804_vm12 = vmor %vm2802_vm11, %vm2803_vm0  ;;  %vm2812_vm2 = vweird.f32 %v2795_v29 }
0x1506   : > { %v2798_v30 = vmul.f32 %v3667_v28, %v2797_v22 }
0x1508   : > { %v2799_v21 = vmul.f32 0.5, %v2798_v30 }
0x150a   : > { %v2800_v31 = vsub.f32 1.5, %v2799_v21 }
0x150b   : > { %v3669_v53 = vpop.eup %3668 }
0x150c   : > { %v2801_v32 = vmul.f32 %v3667_v28, %v2800_v31  ;;  %v2807_v33 = vmul.f32 %v3669_v53, %v2795_v29  ;;  %vm2813_vm13 = vweird.f32 %v3669_v53 }
0x150d   : > { %vm2814_vm5 = vmor %vm2812_vm2, %vm2813_vm13 }
0x150e   : > { %v2808_v34 = vmul.f32 %v3669_v53, %v2807_v33  ;;  %v2805_v35 = vsel %vm2804_vm12, %v3667_v28, %v2801_v32 }
0x150f   : > { %v2816_v39 = vmul.f32 %v2805_v35, %v2782_v60 }
0x1510   : > { %v2809_v36 = vmul.f32 0.5, %v2808_v34 }
0x1511   : > { %v2821_v44 = vmul.f32 %v3572_v10, %v2816_v39 }
0x1512   : > { %v2810_v38 = vsub.f32 1.5, %v2809_v36 }
0x1513   : > { %v2826_v47 = vadd.f32 %v3573_v42, %v2821_v44 }
0x1514   : > { %v2811_v40 = vmul.f32 %v3669_v53, %v2810_v38 }
0x1516   : > { %v2815_v41 = vsel %vm2814_vm5, %v3669_v53, %v2811_v40 }
0x1517   : > { %v2817_v45 = vmul.f32 %v2815_v41, %v2783_v7 }
0x1519   : > { %v2822_v46 = vmul.f32 %v3572_v10, %v2817_v45 }
0x151b   : > { %v2827_v48 = vadd.f32 %v3573_v42, %v2822_v46 }
0x151d   : > { %v2832_v49 = vpack.c.bf16 %v2827_v48, %v2826_v47 }
0x151f   : > { %3357 = vmatmul.msk.bf16.vlgmr.msra.gmra.mxu0 %vm1048_vm1, %v2832_v49  ;;  %3366 = vmatmul.msk.bf16.vlgmr.msra.gmra.mxu1 %vm1048_vm1, %v2832_v49 }
0x159c   : > { %v2861_v51 = vpop.f32.mrf.mxu0  ;;  %v2895_v52 = vpop.f32.mrf.mxu1 }
0x159d   : > { %v2862_v54 = vadd.f32 %v3574_v18, %v2861_v51  ;;  %v2896_v8 = vadd.f32 %v3575_v27, %v2895_v52 }
0x159f   : > { %v2900_v23 = vmul.f32 %v3159_v58, %v2862_v54  ;;  %v2904_v55 = vmul.f32 %v2902_v50, %v2896_v8 }
0x15a1   : > { %v2906_v56 = vadd.f32 %v2904_v55, %v2900_v23 }
0x15a3   : > { %v3367_v62 = vmul.f32 -1.442695, %v2906_v56 }
0x15a4   : > { %v2863_v63 = vpop.f32.mrf.mxu0  ;;  %v2897_v2 = vpop.f32.mrf.mxu1 }
0x15a5   : > { %3670 = vpow2.f32 %v3367_v62  ;;  %v2864_v37 = vadd.f32 %v3574_v18, %v2863_v63  ;;  %v2898_v57 = vadd.f32 %v3575_v27, %v2897_v2 }
0x15a7   : > { %v2901_v25 = vmul.f32 0.0, %v2864_v37 }
0x15a9   : > { %v2907_v1 = vadd.f32 %v2901_v25, %v2898_v57 }
0x15ab   : > { %v3671_v3 = vpop.eup %3670  ;;  %v3368_v4 = vmul.f32 -1.442695, %v2907_v1 }
0x15ac   : > { %v2914_v5 = vadd.f32 1.0, %v3671_v3 }
0x15ad   : > { %3672 = vpow2.f32 %v3368_v4 }
0x15ae   : > { %3674 = vrcp.f32 %v2914_v5  ;;  %v2927_v43 = vand.u32 2147483648, %v2914_v5  ;;  %v2925_v7 = vand.u32 2147483647, %v2914_v5  ;;  %vm2921_vm8 = vweird.f32 %v2914_v5 }
0x15b0   : > { %v2928_v14 = vor.u32 1.1754944e-38, %v2927_v43  ;;  %vm2926_vm7 = vcmp.eq.f32.partialorder %v2925_v7, 8.507059e+37 }
0x15b3   : > { %v3673_v6 = vpop.eup %3672 }
0x15b4   : > { %v3675_v9 = vpop.eup %3674  ;;  %v2915_v60 = vadd.f32 1.0, %v3673_v6 }
0x15b5   : > { %v2917_v0 = vmul.f32 %v3675_v9, %v2914_v5  ;;  %vm2922_vm1 = vweird.f32 %v3675_v9 }
0x15b6   : > { %3676 = vrcp.f32 %v2915_v60  ;;  %vm2923_vm9 = vmor %vm2921_vm8, %vm2922_vm1  ;;  %v2942_v19 = vand.u32 2147483648, %v2915_v60  ;;  %v2940_v24 = vand.u32 2147483647, %v2915_v60  ;;  %vm2936_vm15 = vweird.f32 %v2915_v60 }
0x15b7   : > { %v2918_v59 = vsub.f32 1.0, %v2917_v0 }
0x15b8   : > { %v2943_v28 = vor.u32 1.1754944e-38, %v2942_v19  ;;  %vm2941_vm4 = vcmp.eq.f32.partialorder %v2940_v24, 8.507059e+37 }
0x15b9   : > { %v2919_v11 = vmul.f32 %v3675_v9, %v2918_v59 }
0x15bb   : > { %v2920_v12 = vadd.f32 %v3675_v9, %v2919_v11 }
0x15bc   : > { %v3677_v61 = vpop.eup %3676 }
0x15bd   : > { %v2924_v13 = vsel %vm2923_vm9, %v3675_v9, %v2920_v12  ;;  %v2932_v16 = vmul.f32 %v3677_v61, %v2915_v60  ;;  %vm2937_vm14 = vweird.f32 %v3677_v61 }
0x15be   : > { %v2929_v15 = vsel %vm2926_vm7, %v2928_v14, %v2924_v13  ;;  %vm2938_vm3 = vmor %vm2936_vm15, %vm2937_vm14 }
0x15bf   : > { %2946 = vst [vmem:[%s1015_s0] sm:$0xff] %v2929_v15  ;;  %v2933_v17 = vsub.f32 1.0, %v2932_v16 }
0x15c1   : > { %v2934_v20 = vmul.f32 %v3677_v61, %v2933_v17 }
0x15c3   : > { %v2935_v26 = vadd.f32 %v3677_v61, %v2934_v20 }
0x15c5   : > { %v2939_v29 = vsel %vm2938_vm3, %v3677_v61, %v2935_v26 }
0x15c6   : > { %v2944_v22 = vsel %vm2941_vm4, %v2943_v28, %v2939_v29 }
0x15c7   : > { %2947 = vst [vmem:[%s1015_s0 + $0x8] sm:$0x1] %v2944_v22 }
0x15c8 PF: > { %s4872_s4 = sld [smem:[#allocation28_spill]] }
0x15ce   : > { %s44_s7 = sadd.s32 1, %s4872_s4  }
0x15cf   : > { %p41_p7 = scmp.ge.s32.totalorder %s44_s7, 4  }
0x15d1   :  { %43 = sbr.rel (!%p41_p7) target bundleno = 25 (0x19), region = 227 }
0x15d6   :  { %2969 = vsyncpa [#allocation3], 1 }
0x15d7   :  { %2971 = vsyncpa [#allocation3 + $0x1], 1 }
0x15d8   :  { %2972 = vsyncpa [#allocation5], 1 }
0x15d9   :  { %2973 = vsyncpa [#allocation8], 1 }
0x15da   :  { %2974 = vsyncpa [#allocation11], 1 }
0x15db   :  { %2975 = vsyncpa [#allocation14], 1 }
0x15dc   :  { %2976 = vsyncpa [#allocation17], 1 }
0x15dd   :  { %2977 = vsyncpa [#allocation20], 1 }

</bundles_post_ra>
